<compile_context>
chip_gen: v6e
topology: v6e:2x2x1
jax: 0.10.0
libtpu: 0.0.40
codegen_flags: <defaults>
</compile_context>

<pallas_src>
import functools
import math

import jax
import jax.numpy as jnp
from jax.experimental import pallas as pl
from jax.experimental.pallas import tpu as pltpu

_F32 = jnp.float32
_MIB = 1024 * 1024


# ----------------------------- tiling helpers -----------------------------

def _row_tile(m, target=512):
    """Largest row tile <= target that divides m (multiple of 8), else the full extent."""
    if m <= target:
        return m
    t = (target // 8) * 8
    while t >= 8:
        if m % t == 0:
            return t
        t -= 8
    return m


def _node_tile(n, row_bytes, budget=8 * _MIB):
    """Row tile over the node axis of per-batch (tn, N)-ish blocks, bounded by a VMEM budget."""
    if n * row_bytes <= budget:
        return n
    cap = max(8, (int(budget // max(row_bytes, 1)) // 8) * 8)
    t = min((n // 8) * 8, cap)
    while t >= 8:
        if n % t == 0:
            return t
        t -= 8
    return n


def _edge_tile(rows, n, target_elems=2048):
    """Source rows per program for the edge MLP (output lane width = tr * n)."""
    tr = max(1, min(rows, target_elems // max(n, 1)))
    while tr >= 1:
        if rows % tr == 0 and ((tr * n) % 8 == 0 or tr == rows):
            return tr
        tr -= 1
    return rows


def _cparams(block_bytes, semantics):
    """Mosaic params: explicit VMEM limit (v5e scoped default is 16 MiB, v7x physical 64 MiB)."""
    need = 2 * int(block_bytes) + 4 * _MIB
    vmem = int(min(max(need, 32 * _MIB), 64 * _MIB))
    return pltpu.CompilerParams(dimension_semantics=semantics, vmem_limit_bytes=vmem)


# ----------------------------- Pallas kernels -----------------------------

def _dense_stack_kernel(*refs, parts, act2):
    # fused (sum_p x_p @ W1_p) + b1 -> tanh -> @W2 + b2 (-> tanh); hidden stays on-chip.
    xs = refs[:parts]
    w1s = refs[parts:2 * parts]
    b1_ref, w2_ref, b2_ref, o_ref = refs[2 * parts:]
    acc = jnp.dot(xs[0][...], w1s[0][...], preferred_element_type=jnp.float32)
    for p in range(1, parts):
        acc = acc + jnp.dot(xs[p][...], w1s[p][...], preferred_element_type=jnp.float32)
    h = jnp.tanh(acc + b1_ref[...])
    y = jnp.dot(h, w2_ref[...], preferred_element_type=jnp.float32) + b2_ref[...]
    if act2:
        y = jnp.tanh(y)
    o_ref[...] = y


def dense_stack(xs, w1s, b1, w2, b2, act2=True):
    """Row-tiled fused 2-layer MLP; K-split first layer (removes the hidden concat)."""
    parts = len(xs)
    M = xs[0].shape[0]
    H = w1s[0].shape[1]
    Nout = w2.shape[1]
    tm = _row_tile(M)
    in_specs = ([pl.BlockSpec((tm, x.shape[1]), lambda i: (i, 0)) for x in xs]
                + [pl.BlockSpec(w.shape, lambda i: (0, 0)) for w in w1s]
                + [pl.BlockSpec((1, H), lambda i: (0, 0)),
                   pl.BlockSpec((w2.shape[0], Nout), lambda i: (0, 0)),
                   pl.BlockSpec((1, Nout), lambda i: (0, 0))])
    blk_bytes = (tm * sum(x.shape[1] for x in xs) + tm * H + tm * Nout) * 4
    return pl.pallas_call(
        functools.partial(_dense_stack_kernel, parts=parts, act2=act2),
        out_shape=jax.ShapeDtypeStruct((M, Nout), _F32),
        grid=(M // tm,),
        in_specs=in_specs,
        out_specs=pl.BlockSpec((tm, Nout), lambda i: (i, 0)),
        compiler_params=_cparams(blk_bytes, ("parallel",)),
    )(*xs, *w1s, b1.reshape(1, H), w2, b2.reshape(1, Nout))


def _edge_mlp_kernel(x_ref, w1_ref, b1_ref, w2t_ref, b2_ref, o_ref):
    # tr*N edges per program: tanh(x@W1+b1) (tr*N,128) stays on-chip; the width-1 second layer
    # is computed as w2^T @ h^T so the per-edge score lands on LANES -> (1, tr*N) dense store.
    h = jnp.tanh(jnp.dot(x_ref[...], w1_ref[...], preferred_element_type=jnp.float32)
                 + b1_ref[...])
    y = jnp.dot(w2t_ref[...], h.T, preferred_element_type=jnp.float32) + b2_ref[...]
    o_ref[0] = jnp.tanh(y)


def edge_mlp(edge_feat, w1, b1, w2, b2):
    B, N, _, E = edge_feat.shape
    rows = B * N
    tr = _edge_tile(rows, N)
    G = rows // tr
    H = w1.shape[1]
    x2d = edge_feat.reshape(rows * N, E)
    out = pl.pallas_call(
        _edge_mlp_kernel,
        out_shape=jax.ShapeDtypeStruct((G, 1, tr * N), _F32),
        grid=(G,),
        in_specs=[pl.BlockSpec((tr * N, E), lambda i: (i, 0)),
                  pl.BlockSpec((E, H), lambda i: (0, 0)),
                  pl.BlockSpec((1, H), lambda i: (0, 0)),
                  pl.BlockSpec((1, H), lambda i: (0, 0)),
                  pl.BlockSpec((1, 1), lambda i: (0, 0))],
        out_specs=pl.BlockSpec((1, 1, tr * N), lambda i: (i, 0, 0)),
        compiler_params=_cparams(tr * N * (E + 2 * H + 1) * 4, ("parallel",)),
    )(x2d, w1, b1.reshape(1, H), w2.reshape(1, H), b2.reshape(1, 1))
    return out.reshape(B, N, N)          # row-major, free reshape


def _gnn_conv_kernel(dinv_ref, adj_ref, h_ref, gw_ref, o_ref):
    # GraphConvSparse: tanh( d * (adj_rows @ (h @ W)) ); d = 1/(rowsum(adj)+1) precomputed.
    xw = jnp.dot(h_ref[0], gw_ref[...], preferred_element_type=jnp.float32)
    o_ref[0] = jnp.tanh(dinv_ref[0] * jnp.dot(adj_ref[0], xw,
                                              preferred_element_type=jnp.float32))


def gnn_conv(dinv, adj, h, gw):
    B, N, _ = adj.shape
    Hin = h.shape[-1]
    Ho = gw.shape[-1]
    tn = _node_tile(N, (N + Ho + 1) * 4)
    blk = (tn * N + tn * Ho + tn + N * Hin + Hin * Ho) * 4
    return pl.pallas_call(
        _gnn_conv_kernel,
        out_shape=jax.ShapeDtypeStruct((B, N, Ho), _F32),
        grid=(B, N // tn),
        in_specs=[pl.BlockSpec((1, tn, 1), lambda b, r: (b, r, 0)),
                  pl.BlockSpec((1, tn, N), lambda b, r: (b, r, 0)),
                  pl.BlockSpec((1, N, Hin), lambda b, r: (b, 0, 0)),
                  pl.BlockSpec((Hin, Ho), lambda b, r: (0, 0))],
        out_specs=pl.BlockSpec((1, tn, Ho), lambda b, r: (b, r, 0)),
        compiler_params=_cparams(blk, ("parallel", "parallel")),
    )(dinv, adj, h, gw)


def _edge_mix_kernel(eh_ref, gfull_ref, gtile_ref, wt_ref, wb_ref, cb_ref, o_ref):
    # mix = tanh(eh_rows @ g_full); cat([g, mix]) @ W_combine == g@W_top + mix@W_bot (no concat)
    mix = jnp.tanh(jnp.dot(eh_ref[0], gfull_ref[0], preferred_element_type=jnp.float32))
    y = (jnp.dot(gtile_ref[0], wt_ref[...], preferred_element_type=jnp.float32)
         + jnp.dot(mix, wb_ref[...], preferred_element_type=jnp.float32)
         + cb_ref[...])
    o_ref[0] = jnp.tanh(y)


def edge_mix_combine(eh, g, w_top, w_bot, cb):
    B, N, Ho = g.shape
    tn = _node_tile(N, (N + 2 * Ho) * 4)
    blk = (tn * N + N * Ho + 2 * tn * Ho + 2 * Ho * Ho) * 4
    return pl.pallas_call(
        _edge_mix_kernel,
        out_shape=jax.ShapeDtypeStruct((B, N, Ho), _F32),
        grid=(B, N // tn),
        in_specs=[pl.BlockSpec((1, tn, N), lambda b, r: (b, r, 0)),
                  pl.BlockSpec((1, N, Ho), lambda b, r: (b, 0, 0)),
                  pl.BlockSpec((1, tn, Ho), lambda b, r: (b, r, 0)),
                  pl.BlockSpec((Ho, Ho), lambda b, r: (0, 0)),
                  pl.BlockSpec((Ho, Ho), lambda b, r: (0, 0)),
                  pl.BlockSpec((1, Ho), lambda b, r: (0, 0))],
        out_specs=pl.BlockSpec((1, tn, Ho), lambda b, r: (b, r, 0)),
        compiler_params=_cparams(blk, ("parallel", "parallel")),
    )(eh, g, g, w_top, w_bot, cb.reshape(1, Ho))


def _shrink_norm_kernel(at_ref, l_ref, o_ref):
    # shrinked = assign^T @ latent ; F.normalize(dim=1) over the cluster axis
    s = jnp.dot(at_ref[0], l_ref[0], preferred_element_type=jnp.float32)
    norm = jnp.sqrt(jnp.sum(s * s, axis=0, keepdims=True))
    o_ref[0] = s / jnp.maximum(norm, 1e-12)


def shrink_normalize(assign_t, latent):
    B, size, curN = assign_t.shape
    Z = latent.shape[-1]
    return pl.pallas_call(
        _shrink_norm_kernel,
        out_shape=jax.ShapeDtypeStruct((B, size, Z), _F32),
        grid=(B,),
        in_specs=[pl.BlockSpec((1, size, curN), lambda b: (b, 0, 0)),
                  pl.BlockSpec((1, curN, Z), lambda b: (b, 0, 0))],
        out_specs=pl.BlockSpec((1, size, Z), lambda b: (b, 0, 0)),
        compiler_params=_cparams((size * curN + curN * Z + size * Z) * 4, ("parallel",)),
    )(assign_t, latent)


def _readout_kernel(fl_ref, sl_ref, w1a_ref, w1b_ref, b1_ref, w2_ref, b2_ref,
                    pred_ref, rep_ref, *, z):
    # fused per-batch: node sums of both latents + fc1 (tanh) + fc2; rep = [sum1, sum2]
    fl = jnp.sum(fl_ref[0], axis=0, keepdims=True)                       # (1, z)
    sl = jnp.sum(sl_ref[0], axis=0, keepdims=True)                       # (1, z)
    h = jnp.tanh(jnp.dot(fl, w1a_ref[...], preferred_element_type=jnp.float32)
                 + jnp.dot(sl, w1b_ref[...], preferred_element_type=jnp.float32)
                 + b1_ref[...])
    pred_ref[0] = jnp.dot(h, w2_ref[...], preferred_element_type=jnp.float32) + b2_ref[...]
    rep_ref[0, :, :z] = fl
    rep_ref[0, :, z:] = sl


def readout(first_latent, second_latent, w1, b1, w2, b2):
    B, N1, Z = first_latent.shape
    N2 = second_latent.shape[1]
    H1 = w1.shape[1]
    Nout = w2.shape[1]
    w1a, w1b = w1[:Z], w1[Z:]        # split fc1 weight so no in-kernel concat is needed
    pred, rep = pl.pallas_call(
        functools.partial(_readout_kernel, z=Z),
        out_shape=(jax.ShapeDtypeStruct((B, 1, Nout), _F32),
                   jax.ShapeDtypeStruct((B, 1, 2 * Z), _F32)),
        grid=(B,),
        in_specs=[pl.BlockSpec((1, N1, Z), lambda b: (b, 0, 0)),
                  pl.BlockSpec((1, N2, Z), lambda b: (b, 0, 0)),
                  pl.BlockSpec((Z, H1), lambda b: (0, 0)),
                  pl.BlockSpec((Z, H1), lambda b: (0, 0)),
                  pl.BlockSpec((1, H1), lambda b: (0, 0)),
                  pl.BlockSpec((H1, Nout), lambda b: (0, 0)),
                  pl.BlockSpec((1, Nout), lambda b: (0, 0))],
        out_specs=(pl.BlockSpec((1, 1, Nout), lambda b: (b, 0, 0)),
                   pl.BlockSpec((1, 1, 2 * Z), lambda b: (b, 0, 0))),
        compiler_params=_cparams(((N1 + N2) * Z + 2 * Z * H1 + H1 * Nout) * 4, ("parallel",)),
    )(first_latent, second_latent, w1a, w1b,
      b1.reshape(1, H1), w2, b2.reshape(1, Nout))
    return pred.reshape(B, Nout), rep.reshape(B, 2 * Z)


# ----------------------------- model forward -----------------------------

def encoder_forward(p, adj, dinv, node_feat, eh, num_layers):
    B, N, _ = adj.shape
    nd = node_feat.shape[-1]
    h0 = dense_stack([node_feat.reshape(B * N, nd)],
                     [p['node_fc1_w']], p['node_fc1_b'],
                     p['node_fc2_w'], p['node_fc2_b'], act2=True)
    Hd = h0.shape[-1]
    h0 = h0.reshape(B, N, Hd)

    hiddens = [h0]
    hidden = h0
    for layer in range(num_layers):
        g = gnn_conv(dinv, adj, hidden, p['gcn_w'][layer])
        if eh is not None:
            cw = p['combine_w'][layer]
            hidden = edge_mix_combine(eh, g, cw[:Hd], cw[Hd:], p['combine_b'][layer])
        else:
            hidden = g
        hiddens.append(hidden)

    # concat-free latent MLP (use_concat_layer == True): latent_fc1 is K-split per layer and
    # the partial dots are accumulated on-chip; the [B*N,(L+1)*H] concat never hits HBM.
    w1 = p['latent_fc1_w']
    w1_parts = [w1[i * Hd:(i + 1) * Hd] for i in range(num_layers + 1)]
    xs = [h.reshape(B * N, Hd) for h in hiddens]
    lat = dense_stack(xs, w1_parts, p['latent_fc1_b'],
                      p['latent_fc2_w'], p['latent_fc2_b'], act2=True)
    return lat.reshape(B, N, -1)


@functools.partial(jax.jit, static_argnames=('num_layers', 'clusters'))
def hvn_forward(params, adj, node_feat, edge_feat, key, *, num_layers, clusters):
    B, N0, _ = adj.shape
    adj = adj.astype(_F32)
    rs_adj = jnp.sum(adj, axis=2)                       # reused for dinv1 AND dinv2
    dinv1 = (1.0 / (rs_adj + 1.0))[..., None]

    p1 = params['enc1']
    eh = None
    if edge_feat is not None and 'edge_fc1_w' in p1:
        eh = edge_mlp(edge_feat, p1['edge_fc1_w'], p1['edge_fc1_b'],
                      p1['edge_fc2_w'], p1['edge_fc2_b'])

    first_latent = encoder_forward(p1, adj, dinv1, node_feat, eh, num_layers)

    # clustering modules are appended from the LAST cluster size to the first (as in torch)
    sizes = tuple(clusters[l] for l in range(len(clusters) - 1, -1, -1))
    levels = len(sizes)
    N_total = N0 + sum(sizes)

    A = jnp.zeros((B, N_total, N_total), _F32).at[:, :N0, :N0].set(adj)
    # analytic row sums of A -> no full [B, N_total, N_total] reduction before encoder 2
    row_sums = jnp.zeros((B, N_total), _F32).at[:, :N0].set(
        rs_adj + (1.0 if levels > 0 else 0.0))

    latent = first_latent
    curN = N0
    row_start, col_start = 0, N0
    for i, size in enumerate(sizes):
        cw, cb = params['cluster_w'][i], params['cluster_b'][i]
        # tiny score matmul in plain jnp so XLA fuses it with the gumbel/argmax/one_hot glue
        score = jnp.einsum('bnz,zs->bns', latent, cw) + cb

        # F.gumbel_softmax(tau=1, hard=True): forward value is the one-hot argmax of
        # logits + gumbel (softmax is monotone).
        # TODO(synk): straight-through gradient of the torch version is not implemented.
        key, sub = jax.random.split(key)
        g = jax.random.gumbel(sub, score.shape, dtype=_F32)
        idx = jnp.argmax(score + g, axis=2)
        assign = jax.nn.one_hot(idx, size, dtype=_F32)          # [B, curN, size]
        assign_t = jnp.swapaxes(assign, 1, 2)                   # reused for A AND the shrink

        A = A.at[:, row_start:row_start + curN, col_start:col_start + size].set(assign)
        A = A.at[:, col_start:col_start + size, row_start:row_start + curN].set(assign_t)
        counts = jnp.sum(assign, axis=1)                        # nodes per cluster
        row_sums = row_sums.at[:, col_start:col_start + size].set(
            counts + (1.0 if i < levels - 1 else 0.0))

        latent = shrink_normalize(assign_t, latent)             # assign^T @ latent, F.normalize

        row_start = col_start
        col_start += size
        curN = size

    # (torch.cat(all_latents) in the reference is computed but never used; dropped here.)

    node_feat2 = jnp.zeros((B, N_total, node_feat.shape[2]), _F32).at[:, :N0, :].set(node_feat)
    dinv2 = (1.0 / (row_sums + 1.0))[..., None]
    second_latent = encoder_forward(params['enc2'], A, dinv2, node_feat2, None, num_layers)

    predict, rep = readout(first_latent, second_latent,
                           params['fc1_w'], params['fc1_b'],
                           params['fc2_w'], params['fc2_b'])    # regression=True (no softmax)
    return predict, rep


# ----------------------------- parameter init -----------------------------

def init_linear(key, in_dim, out_dim):
    kw, kb = jax.random.split(key)
    bound = 1.0 / math.sqrt(in_dim)
    w = jax.random.uniform(kw, (in_dim, out_dim), _F32, -bound, bound)
    b = jax.random.uniform(kb, (out_dim,), _F32, -bound, bound)
    return w, b


def init_encoder(key, num_layers, node_dim, edge_dim, hidden_dim, z_dim):
    ks = jax.random.split(key, 6 + 2 * num_layers)
    p = {}
    p['node_fc1_w'], p['node_fc1_b'] = init_linear(ks[0], node_dim, 256)
    p['node_fc2_w'], p['node_fc2_b'] = init_linear(ks[1], 256, hidden_dim)
    if edge_dim is not None:
        p['edge_fc1_w'], p['edge_fc1_b'] = init_linear(ks[2], edge_dim, 128)
        p['edge_fc2_w'], p['edge_fc2_b'] = init_linear(ks[3], 128, 1)
    p['gcn_w'], p['combine_w'], p['combine_b'] = [], [], []
    r = math.sqrt(6.0 / (hidden_dim + hidden_dim))       # glorot_init
    for l in range(num_layers):
        p['gcn_w'].append(
            jax.random.uniform(ks[6 + 2 * l], (hidden_dim, hidden_dim), _F32, -r, r))
        if edge_dim is not None:
            w, b = init_linear(ks[6 + 2 * l + 1], 2 * hidden_dim, hidden_dim)
            p['combine_w'].append(w)
            p['combine_b'].append(b)
    p['latent_fc1_w'], p['latent_fc1_b'] = init_linear(ks[4], (num_layers + 1) * hidden_dim, 256)
    p['latent_fc2_w'], p['latent_fc2_b'] = init_linear(ks[5], 256, z_dim)
    return p


def init_hvn(key, clusters, num_layers, node_dim, edge_dim, hidden_dim, z_dim, num_outputs):
    k1, k2, k3, k4, k5 = jax.random.split(key, 5)
    params = {}
    params['enc1'] = init_encoder(k1, num_layers, node_dim, edge_dim, hidden_dim, z_dim)
    params['enc2'] = init_encoder(k2, num_layers, node_dim, None, hidden_dim, z_dim)
    params['cluster_w'], params['cluster_b'] = [], []
    cks = jax.random.split(k3, len(clusters))
    # clustering modules are appended from the LAST cluster size to the first (as in torch)
    for j, l in enumerate(range(len(clusters) - 1, -1, -1)):
        w, b = init_linear(cks[j], z_dim, clusters[l])
        params['cluster_w'].append(w)
        params['cluster_b'].append(b)
    params['fc1_w'], params['fc1_b'] = init_linear(k4, 2 * z_dim, 512)
    params['fc2_w'], params['fc2_b'] = init_linear(k5, 512, num_outputs)
    return params


# ----------------------------- main -----------------------------

if __name__ == "__main__":
    B, N, node_dim, edge_dim, hidden_dim, z_dim = 2, 8, 16, 4, 32, 16
    num_layers = 2
    clusters = (4, 2)
    num_outputs = 1

    key = jax.random.PRNGKey(0)
    kp, ka, kn, ke, kg = jax.random.split(key, 5)

    params = init_hvn(kp, clusters, num_layers, node_dim, edge_dim,
                      hidden_dim, z_dim, num_outputs)

    adj = (jax.random.uniform(ka, (B, N, N)) < 0.4).astype(jnp.float32)
    node_feat = jax.random.normal(kn, (B, N, node_dim), jnp.float32)
    edge_feat = jax.random.normal(ke, (B, N, N, edge_dim), jnp.float32)

    predict, rep = hvn_forward(params, adj, node_feat, edge_feat, kg,
                               num_layers=num_layers, clusters=clusters)
    jax.block_until_ready((predict, rep))

    assert predict.shape == (B, num_outputs)
    assert rep.shape == (B, 2 * z_dim)
    print("KERNEL_OK")
</pallas_src>

<mosaic_0001>
module attributes {stable_mosaic.version = 11 : i64} {
  func.func @_dense_stack_kernel(%arg0: i32, %arg1: memref<16x16xf32, #tpu.memory_space<vmem>>, %arg2: memref<16x256xf32, #tpu.memory_space<vmem>>, %arg3: memref<1x256xf32, #tpu.memory_space<vmem>>, %arg4: memref<256x32xf32, #tpu.memory_space<vmem>>, %arg5: memref<1x32xf32, #tpu.memory_space<vmem>>, %arg6: memref<16x32xf32, #tpu.memory_space<vmem>>) attributes {dimension_semantics = [#tpu.dimension_semantics<parallel>], iteration_bounds = array<i64: 1>, scalar_prefetch = 0 : i64, scratch_operands = 0 : i64, tpu.core_type = #tpu.core_type<tc>, window_params = [{transform_indices = @transform_0, window_bounds = array<i64: 16, 16>}, {pipeline_mode = #tpu.pipeline_mode<synchronous>, transform_indices = @transform_1, window_bounds = array<i64: 16, 256>}, {pipeline_mode = #tpu.pipeline_mode<synchronous>, transform_indices = @transform_2, window_bounds = array<i64: 1, 256>}, {pipeline_mode = #tpu.pipeline_mode<synchronous>, transform_indices = @transform_3, window_bounds = array<i64: 256, 32>}, {pipeline_mode = #tpu.pipeline_mode<synchronous>, transform_indices = @transform_4, window_bounds = array<i64: 1, 32>}, {transform_indices = @transform_5, window_bounds = array<i64: 16, 32>}]} {
    %c0 = arith.constant 0 : index
    %c0_0 = arith.constant 0 : index
    %0 = vector.load %arg1[%c0, %c0_0] : memref<16x16xf32, #tpu.memory_space<vmem>>, vector<16x16xf32>
    %c0_1 = arith.constant 0 : index
    %c0_2 = arith.constant 0 : index
    %1 = vector.load %arg2[%c0_1, %c0_2] : memref<16x256xf32, #tpu.memory_space<vmem>>, vector<16x256xf32>
    %cst = arith.constant dense<0.000000e+00> : vector<16x256xf32>
    %2 = tpu.matmul %0, %1, %cst {dimension_numbers = #tpu.dot_dimension_numbers<[1], [0], [0], [1], [0, 0, 1, 1], [], []>} : vector<16x16xf32>, vector<16x256xf32>, vector<16x256xf32> -> vector<16x256xf32>
    %c0_3 = arith.constant 0 : index
    %c0_4 = arith.constant 0 : index
    %3 = vector.load %arg3[%c0_3, %c0_4] : memref<1x256xf32, #tpu.memory_space<vmem>>, vector<1x256xf32>
    %4 = vector.broadcast %3 : vector<1x256xf32> to vector<16x256xf32>
    %5 = arith.addf %2, %4 : vector<16x256xf32>
    %6 = math.tanh %5 : vector<16x256xf32>
    %c0_5 = arith.constant 0 : index
    %c0_6 = arith.constant 0 : index
    %7 = vector.load %arg4[%c0_5, %c0_6] : memref<256x32xf32, #tpu.memory_space<vmem>>, vector<256x32xf32>
    %cst_7 = arith.constant dense<0.000000e+00> : vector<16x32xf32>
    %8 = tpu.matmul %6, %7, %cst_7 {dimension_numbers = #tpu.dot_dimension_numbers<[1], [0], [0], [1], [0, 0, 1, 1], [], []>} : vector<16x256xf32>, vector<256x32xf32>, vector<16x32xf32> -> vector<16x32xf32>
    %c0_8 = arith.constant 0 : index
    %c0_9 = arith.constant 0 : index
    %9 = vector.load %arg5[%c0_8, %c0_9] : memref<1x32xf32, #tpu.memory_space<vmem>>, vector<1x32xf32>
    %10 = vector.broadcast %9 : vector<1x32xf32> to vector<16x32xf32>
    %11 = arith.addf %8, %10 : vector<16x32xf32>
    %12 = math.tanh %11 : vector<16x32xf32>
    %c0_10 = arith.constant 0 : index
    %c0_11 = arith.constant 0 : index
    %13 = vector.load %arg6[%c0_10, %c0_11] : memref<16x32xf32, #tpu.memory_space<vmem>>, vector<16x32xf32>
    tpu.vector_store %arg6[%c0_10, %c0_11], %12 {strides = array<i32>} : memref<16x32xf32, #tpu.memory_space<vmem>>, vector<16x32xf32>,
    return
  }
  func.func @transform_0(%arg0: i32) -> (i32, i32) {
    %c0_i32 = arith.constant 0 : i32
    %c0_i32_0 = arith.constant 0 : i32
    return %arg0, %c0_i32 : i32, i32
  }
  func.func @transform_1(%arg0: i32) -> (i32, i32) {
    %c0_i32 = arith.constant 0 : i32
    %c0_i32_0 = arith.constant 0 : i32
    %c0_i32_1 = arith.constant 0 : i32
    return %c0_i32, %c0_i32_0 : i32, i32
  }
  func.func @transform_2(%arg0: i32) -> (i32, i32) {
    %c0_i32 = arith.constant 0 : i32
    %c0_i32_0 = arith.constant 0 : i32
    %c0_i32_1 = arith.constant 0 : i32
    return %c0_i32, %c0_i32_0 : i32, i32
  }
  func.func @transform_3(%arg0: i32) -> (i32, i32) {
    %c0_i32 = arith.constant 0 : i32
    %c0_i32_0 = arith.constant 0 : i32
    %c0_i32_1 = arith.constant 0 : i32
    return %c0_i32, %c0_i32_0 : i32, i32
  }
  func.func @transform_4(%arg0: i32) -> (i32, i32) {
    %c0_i32 = arith.constant 0 : i32
    %c0_i32_0 = arith.constant 0 : i32
    %c0_i32_1 = arith.constant 0 : i32
    return %c0_i32, %c0_i32_0 : i32, i32
  }
  func.func @transform_5(%arg0: i32) -> (i32, i32) {
    %c0_i32 = arith.constant 0 : i32
    %c0_i32_0 = arith.constant 0 : i32
    return %arg0, %c0_i32 : i32, i32
  }
}

module attributes {stable_mosaic.version = 11 : i64} {
  func.func @_gnn_conv_kernel(%arg0: i32, %arg1: i32, %arg2: memref<1x8x1xf32, #tpu.memory_space<vmem>>, %arg3: memref<1x8x8xf32, #tpu.memory_space<vmem>>, %arg4: memref<1x8x32xf32, #tpu.memory_space<vmem>>, %arg5: memref<32x32xf32, #tpu.memory_space<vmem>>, %arg6: memref<1x8x32xf32, #tpu.memory_space<vmem>>) attributes {dimension_semantics = [#tpu.dimension_semantics<parallel>, #tpu.dimension_semantics<parallel>], iteration_bounds = array<i64: 2, 1>, scalar_prefetch = 0 : i64, scratch_operands = 0 : i64, tpu.core_type = #tpu.core_type<tc>, window_params = [{transform_indices = @transform_0, window_bounds = array<i64: 1, 8, 1>}, {transform_indices = @transform_1, window_bounds = array<i64: 1, 8, 8>}, {transform_indices = @transform_2, window_bounds = array<i64: 1, 8, 32>}, {pipeline_mode = #tpu.pipeline_mode<synchronous>, transform_indices = @transform_3, window_bounds = array<i64: 32, 32>}, {transform_indices = @transform_4, window_bounds = array<i64: 1, 8, 32>}]} {
    %c0 = arith.constant 0 : index
    %c0_0 = arith.constant 0 : index
    %c0_1 = arith.constant 0 : index
    %0 = vector.load %arg4[%c0, %c0_0, %c0_1] : memref<1x8x32xf32, #tpu.memory_space<vmem>>, vector<1x8x32xf32>
    %1 = vector.shape_cast %0 : vector<1x8x32xf32> to vector<8x32xf32>
    %c0_2 = arith.constant 0 : index
    %c0_3 = arith.constant 0 : index
    %2 = vector.load %arg5[%c0_2, %c0_3] : memref<32x32xf32, #tpu.memory_space<vmem>>, vector<32x32xf32>
    %cst = arith.constant dense<0.000000e+00> : vector<8x32xf32>
    %3 = tpu.matmul %1, %2, %cst {dimension_numbers = #tpu.dot_dimension_numbers<[1], [0], [0], [1], [0, 0, 1, 1], [], []>} : vector<8x32xf32>, vector<32x32xf32>, vector<8x32xf32> -> vector<8x32xf32>
    %c0_4 = arith.constant 0 : index
    %c0_5 = arith.constant 0 : index
    %c0_6 = arith.constant 0 : index
    %4 = vector.load %arg2[%c0_4, %c0_5, %c0_6] : memref<1x8x1xf32, #tpu.memory_space<vmem>>, vector<1x8x1xf32>
    %5 = vector.shape_cast %4 : vector<1x8x1xf32> to vector<8x1xf32>
    %c0_7 = arith.constant 0 : index
    %c0_8 = arith.constant 0 : index
    %c0_9 = arith.constant 0 : index
    %6 = vector.load %arg3[%c0_7, %c0_8, %c0_9] : memref<1x8x8xf32, #tpu.memory_space<vmem>>, vector<1x8x8xf32>
    %7 = vector.shape_cast %6 : vector<1x8x8xf32> to vector<8x8xf32>
    %cst_10 = arith.constant dense<0.000000e+00> : vector<8x32xf32>
    %8 = tpu.matmul %7, %3, %cst_10 {dimension_numbers = #tpu.dot_dimension_numbers<[1], [0], [0], [1], [0, 0, 1, 1], [], []>} : vector<8x8xf32>, vector<8x32xf32>, vector<8x32xf32> -> vector<8x32xf32>
    %9 = vector.broadcast %5 : vector<8x1xf32> to vector<8x32xf32>
    %10 = arith.mulf %9, %8 : vector<8x32xf32>
    %11 = math.tanh %10 : vector<8x32xf32>
    %c0_11 = arith.constant 0 : index
    %c0_12 = arith.constant 0 : index
    %c0_13 = arith.constant 0 : index
    %12 = vector.load %arg6[%c0_11, %c0_12, %c0_13] : memref<1x8x32xf32, #tpu.memory_space<vmem>>, vector<1x8x32xf32>
    %13 = vector.shape_cast %12 : vector<1x8x32xf32> to vector<8x32xf32>
    %14 = vector.shape_cast %11 : vector<8x32xf32> to vector<1x8x32xf32>
    tpu.vector_store %arg6[%c0_11, %c0_12, %c0_13], %14 {strides = array<i32>} : memref<1x8x32xf32, #tpu.memory_space<vmem>>, vector<1x8x32xf32>,
    return
  }
  func.func @transform_0(%arg0: i32, %arg1: i32) -> (i32, i32, i32) {
    %c0_i32 = arith.constant 0 : i32
    %c0_i32_0 = arith.constant 0 : i32
    return %arg0, %arg1, %c0_i32 : i32, i32, i32
  }
  func.func @transform_1(%arg0: i32, %arg1: i32) -> (i32, i32, i32) {
    %c0_i32 = arith.constant 0 : i32
    %c0_i32_0 = arith.constant 0 : i32
    return %arg0, %arg1, %c0_i32 : i32, i32, i32
  }
  func.func @transform_2(%arg0: i32, %arg1: i32) -> (i32, i32, i32) {
    %c0_i32 = arith.constant 0 : i32
    %c0_i32_0 = arith.constant 0 : i32
    %c0_i32_1 = arith.constant 0 : i32
    return %arg0, %c0_i32, %c0_i32_0 : i32, i32, i32
  }
  func.func @transform_3(%arg0: i32, %arg1: i32) -> (i32, i32) {
    %c0_i32 = arith.constant 0 : i32
    %c0_i32_0 = arith.constant 0 : i32
    %c0_i32_1 = arith.constant 0 : i32
    return %c0_i32, %c0_i32_0 : i32, i32
  }
  func.func @transform_4(%arg0: i32, %arg1: i32) -> (i32, i32, i32) {
    %c0_i32 = arith.constant 0 : i32
    %c0_i32_0 = arith.constant 0 : i32
    return %arg0, %arg1, %c0_i32 : i32, i32, i32
  }
}

module attributes {stable_mosaic.version = 11 : i64} {
  func.func @_edge_mlp_kernel(%arg0: i32, %arg1: memref<128x4xf32, #tpu.memory_space<vmem>>, %arg2: memref<4x128xf32, #tpu.memory_space<vmem>>, %arg3: memref<1x128xf32, #tpu.memory_space<vmem>>, %arg4: memref<1x128xf32, #tpu.memory_space<vmem>>, %arg5: memref<1x1xf32, #tpu.memory_space<vmem>>, %arg6: memref<1x1x128xf32, #tpu.memory_space<vmem>>) attributes {dimension_semantics = [#tpu.dimension_semantics<parallel>], iteration_bounds = array<i64: 1>, scalar_prefetch = 0 : i64, scratch_operands = 0 : i64, tpu.core_type = #tpu.core_type<tc>, window_params = [{transform_indices = @transform_0, window_bounds = array<i64: 128, 4>}, {pipeline_mode = #tpu.pipeline_mode<synchronous>, transform_indices = @transform_1, window_bounds = array<i64: 4, 128>}, {pipeline_mode = #tpu.pipeline_mode<synchronous>, transform_indices = @transform_2, window_bounds = array<i64: 1, 128>}, {pipeline_mode = #tpu.pipeline_mode<synchronous>, transform_indices = @transform_3, window_bounds = array<i64: 1, 128>}, {pipeline_mode = #tpu.pipeline_mode<synchronous>, transform_indices = @transform_4, window_bounds = array<i64: 1, 1>}, {transform_indices = @transform_5, window_bounds = array<i64: 1, 1, 128>}]} {
    %c0 = arith.constant 0 : index
    %c0_0 = arith.constant 0 : index
    %0 = vector.load %arg1[%c0, %c0_0] : memref<128x4xf32, #tpu.memory_space<vmem>>, vector<128x4xf32>
    %c0_1 = arith.constant 0 : index
    %c0_2 = arith.constant 0 : index
    %1 = vector.load %arg2[%c0_1, %c0_2] : memref<4x128xf32, #tpu.memory_space<vmem>>, vector<4x128xf32>
    %cst = arith.constant dense<0.000000e+00> : vector<128x128xf32>
    %2 = tpu.matmul %0, %1, %cst {dimension_numbers = #tpu.dot_dimension_numbers<[1], [0], [0], [1], [0, 0, 1, 1], [], []>} : vector<128x4xf32>, vector<4x128xf32>, vector<128x128xf32> -> vector<128x128xf32>
    %c0_3 = arith.constant 0 : index
    %c0_4 = arith.constant 0 : index
    %3 = vector.load %arg3[%c0_3, %c0_4] : memref<1x128xf32, #tpu.memory_space<vmem>>, vector<1x128xf32>
    %4 = vector.broadcast %3 : vector<1x128xf32> to vector<128x128xf32>
    %5 = arith.addf %2, %4 : vector<128x128xf32>
    %6 = math.tanh %5 : vector<128x128xf32>
    %c0_5 = arith.constant 0 : index
    %c0_6 = arith.constant 0 : index
    %7 = vector.load %arg4[%c0_5, %c0_6] : memref<1x128xf32, #tpu.memory_space<vmem>>, vector<1x128xf32>
    %8 = tpu.transpose %6, [1, 0] : vector<128x128xf32> -> vector<128x128xf32>
    %cst_7 = arith.constant dense<0.000000e+00> : vector<1x128xf32>
    %9 = tpu.matmul %7, %8, %cst_7 {dimension_numbers = #tpu.dot_dimension_numbers<[1], [0], [0], [1], [0, 0, 1, 1], [], []>} : vector<1x128xf32>, vector<128x128xf32>, vector<1x128xf32> -> vector<1x128xf32>
    %c0_8 = arith.constant 0 : index
    %c0_9 = arith.constant 0 : index
    %10 = vector.load %arg5[%c0_8, %c0_9] : memref<1x1xf32, #tpu.memory_space<vmem>>, vector<1x1xf32>
    %11 = vector.broadcast %10 : vector<1x1xf32> to vector<1x128xf32>
    %12 = arith.addf %9, %11 : vector<1x128xf32>
    %13 = math.tanh %12 : vector<1x128xf32>
    %c0_10 = arith.constant 0 : index
    %c0_11 = arith.constant 0 : index
    %c0_12 = arith.constant 0 : index
    %14 = vector.load %arg6[%c0_10, %c0_11, %c0_12] : memref<1x1x128xf32, #tpu.memory_space<vmem>>, vector<1x1x128xf32>
    %15 = vector.shape_cast %14 : vector<1x1x128xf32> to vector<1x128xf32>
    %16 = vector.shape_cast %13 : vector<1x128xf32> to vector<1x1x128xf32>
    tpu.vector_store %arg6[%c0_10, %c0_11, %c0_12], %16 {strides = array<i32>} : memref<1x1x128xf32, #tpu.memory_space<vmem>>, vector<1x1x128xf32>,
    return
  }
  func.func @transform_0(%arg0: i32) -> (i32, i32) {
    %c0_i32 = arith.constant 0 : i32
    %c0_i32_0 = arith.constant 0 : i32
    return %arg0, %c0_i32 : i32, i32
  }
  func.func @transform_1(%arg0: i32) -> (i32, i32) {
    %c0_i32 = arith.constant 0 : i32
    %c0_i32_0 = arith.constant 0 : i32
    %c0_i32_1 = arith.constant 0 : i32
    return %c0_i32, %c0_i32_0 : i32, i32
  }
  func.func @transform_2(%arg0: i32) -> (i32, i32) {
    %c0_i32 = arith.constant 0 : i32
    %c0_i32_0 = arith.constant 0 : i32
    %c0_i32_1 = arith.constant 0 : i32
    return %c0_i32, %c0_i32_0 : i32, i32
  }
  func.func @transform_3(%arg0: i32) -> (i32, i32) {
    %c0_i32 = arith.constant 0 : i32
    %c0_i32_0 = arith.constant 0 : i32
    %c0_i32_1 = arith.constant 0 : i32
    return %c0_i32, %c0_i32_0 : i32, i32
  }
  func.func @transform_4(%arg0: i32) -> (i32, i32) {
    %c0_i32 = arith.constant 0 : i32
    %c0_i32_0 = arith.constant 0 : i32
    %c0_i32_1 = arith.constant 0 : i32
    return %c0_i32, %c0_i32_0 : i32, i32
  }
  func.func @transform_5(%arg0: i32) -> (i32, i32, i32) {
    %c0_i32 = arith.constant 0 : i32
    %c0_i32_0 = arith.constant 0 : i32
    %c0_i32_1 = arith.constant 0 : i32
    return %arg0, %c0_i32, %c0_i32_0 : i32, i32, i32
  }
}

module attributes {stable_mosaic.version = 11 : i64} {
  func.func @_edge_mix_kernel(%arg0: i32, %arg1: i32, %arg2: memref<1x8x8xf32, #tpu.memory_space<vmem>>, %arg3: memref<1x8x32xf32, #tpu.memory_space<vmem>>, %arg4: memref<1x8x32xf32, #tpu.memory_space<vmem>>, %arg5: memref<32x32xf32, #tpu.memory_space<vmem>>, %arg6: memref<32x32xf32, #tpu.memory_space<vmem>>, %arg7: memref<1x32xf32, #tpu.memory_space<vmem>>, %arg8: memref<1x8x32xf32, #tpu.memory_space<vmem>>) attributes {dimension_semantics = [#tpu.dimension_semantics<parallel>, #tpu.dimension_semantics<parallel>], iteration_bounds = array<i64: 2, 1>, scalar_prefetch = 0 : i64, scratch_operands = 0 : i64, tpu.core_type = #tpu.core_type<tc>, window_params = [{transform_indices = @transform_0, window_bounds = array<i64: 1, 8, 8>}, {transform_indices = @transform_1, window_bounds = array<i64: 1, 8, 32>}, {transform_indices = @transform_2, window_bounds = array<i64: 1, 8, 32>}, {pipeline_mode = #tpu.pipeline_mode<synchronous>, transform_indices = @transform_3, window_bounds = array<i64: 32, 32>}, {pipeline_mode = #tpu.pipeline_mode<synchronous>, transform_indices = @transform_4, window_bounds = array<i64: 32, 32>}, {pipeline_mode = #tpu.pipeline_mode<synchronous>, transform_indices = @transform_5, window_bounds = array<i64: 1, 32>}, {transform_indices = @transform_6, window_bounds = array<i64: 1, 8, 32>}]} {
    %c0 = arith.constant 0 : index
    %c0_0 = arith.constant 0 : index
    %c0_1 = arith.constant 0 : index
    %0 = vector.load %arg2[%c0, %c0_0, %c0_1] : memref<1x8x8xf32, #tpu.memory_space<vmem>>, vector<1x8x8xf32>
    %1 = vector.shape_cast %0 : vector<1x8x8xf32> to vector<8x8xf32>
    %c0_2 = arith.constant 0 : index
    %c0_3 = arith.constant 0 : index
    %c0_4 = arith.constant 0 : index
    %2 = vector.load %arg3[%c0_2, %c0_3, %c0_4] : memref<1x8x32xf32, #tpu.memory_space<vmem>>, vector<1x8x32xf32>
    %3 = vector.shape_cast %2 : vector<1x8x32xf32> to vector<8x32xf32>
    %cst = arith.constant dense<0.000000e+00> : vector<8x32xf32>
    %4 = tpu.matmul %1, %3, %cst {dimension_numbers = #tpu.dot_dimension_numbers<[1], [0], [0], [1], [0, 0, 1, 1], [], []>} : vector<8x8xf32>, vector<8x32xf32>, vector<8x32xf32> -> vector<8x32xf32>
    %5 = math.tanh %4 : vector<8x32xf32>
    %c0_5 = arith.constant 0 : index
    %c0_6 = arith.constant 0 : index
    %c0_7 = arith.constant 0 : index
    %6 = vector.load %arg4[%c0_5, %c0_6, %c0_7] : memref<1x8x32xf32, #tpu.memory_space<vmem>>, vector<1x8x32xf32>
    %7 = vector.shape_cast %6 : vector<1x8x32xf32> to vector<8x32xf32>
    %c0_8 = arith.constant 0 : index
    %c0_9 = arith.constant 0 : index
    %8 = vector.load %arg5[%c0_8, %c0_9] : memref<32x32xf32, #tpu.memory_space<vmem>>, vector<32x32xf32>
    %cst_10 = arith.constant dense<0.000000e+00> : vector<8x32xf32>
    %9 = tpu.matmul %7, %8, %cst_10 {dimension_numbers = #tpu.dot_dimension_numbers<[1], [0], [0], [1], [0, 0, 1, 1], [], []>} : vector<8x32xf32>, vector<32x32xf32>, vector<8x32xf32> -> vector<8x32xf32>
    %c0_11 = arith.constant 0 : index
    %c0_12 = arith.constant 0 : index
    %10 = vector.load %arg6[%c0_11, %c0_12] : memref<32x32xf32, #tpu.memory_space<vmem>>, vector<32x32xf32>
    %cst_13 = arith.constant dense<0.000000e+00> : vector<8x32xf32>
    %11 = tpu.matmul %5, %10, %cst_13 {dimension_numbers = #tpu.dot_dimension_numbers<[1], [0], [0], [1], [0, 0, 1, 1], [], []>} : vector<8x32xf32>, vector<32x32xf32>, vector<8x32xf32> -> vector<8x32xf32>
    %12 = arith.addf %9, %11 : vector<8x32xf32>
    %c0_14 = arith.constant 0 : index
    %c0_15 = arith.constant 0 : index
    %13 = vector.load %arg7[%c0_14, %c0_15] : memref<1x32xf32, #tpu.memory_space<vmem>>, vector<1x32xf32>
    %14 = vector.broadcast %13 : vector<1x32xf32> to vector<8x32xf32>
    %15 = arith.addf %12, %14 : vector<8x32xf32>
    %16 = math.tanh %15 : vector<8x32xf32>
    %c0_16 = arith.constant 0 : index
    %c0_17 = arith.constant 0 : index
    %c0_18 = arith.constant 0 : index
    %17 = vector.load %arg8[%c0_16, %c0_17, %c0_18] : memref<1x8x32xf32, #tpu.memory_space<vmem>>, vector<1x8x32xf32>
    %18 = vector.shape_cast %17 : vector<1x8x32xf32> to vector<8x32xf32>
    %19 = vector.shape_cast %16 : vector<8x32xf32> to vector<1x8x32xf32>
    tpu.vector_store %arg8[%c0_16, %c0_17, %c0_18], %19 {strides = array<i32>} : memref<1x8x32xf32, #tpu.memory_space<vmem>>, vector<1x8x32xf32>,
    return
  }
  func.func @transform_0(%arg0: i32, %arg1: i32) -> (i32, i32, i32) {
    %c0_i32 = arith.constant 0 : i32
    %c0_i32_0 = arith.constant 0 : i32
    return %arg0, %arg1, %c0_i32 : i32, i32, i32
  }
  func.func @transform_1(%arg0: i32, %arg1: i32) -> (i32, i32, i32) {
    %c0_i32 = arith.constant 0 : i32
    %c0_i32_0 = arith.constant 0 : i32
    %c0_i32_1 = arith.constant 0 : i32
    return %arg0, %c0_i32, %c0_i32_0 : i32, i32, i32
  }
  func.func @transform_2(%arg0: i32, %arg1: i32) -> (i32, i32, i32) {
    %c0_i32 = arith.constant 0 : i32
    %c0_i32_0 = arith.constant 0 : i32
    return %arg0, %arg1, %c0_i32 : i32, i32, i32
  }
  func.func @transform_3(%arg0: i32, %arg1: i32) -> (i32, i32) {
    %c0_i32 = arith.constant 0 : i32
    %c0_i32_0 = arith.constant 0 : i32
    %c0_i32_1 = arith.constant 0 : i32
    return %c0_i32, %c0_i32_0 : i32, i32
  }
  func.func @transform_4(%arg0: i32, %arg1: i32) -> (i32, i32) {
    %c0_i32 = arith.constant 0 : i32
    %c0_i32_0 = arith.constant 0 : i32
    %c0_i32_1 = arith.constant 0 : i32
    return %c0_i32, %c0_i32_0 : i32, i32
  }
  func.func @transform_5(%arg0: i32, %arg1: i32) -> (i32, i32) {
    %c0_i32 = arith.constant 0 : i32
    %c0_i32_0 = arith.constant 0 : i32
    %c0_i32_1 = arith.constant 0 : i32
    return %c0_i32, %c0_i32_0 : i32, i32
  }
  func.func @transform_6(%arg0: i32, %arg1: i32) -> (i32, i32, i32) {
    %c0_i32 = arith.constant 0 : i32
    %c0_i32_0 = arith.constant 0 : i32
    return %arg0, %arg1, %c0_i32 : i32, i32, i32
  }
}

module attributes {stable_mosaic.version = 11 : i64} {
  func.func @_dense_stack_kernel(%arg0: i32, %arg1: memref<16x32xf32, #tpu.memory_space<vmem>>, %arg2: memref<16x32xf32, #tpu.memory_space<vmem>>, %arg3: memref<16x32xf32, #tpu.memory_space<vmem>>, %arg4: memref<32x256xf32, #tpu.memory_space<vmem>>, %arg5: memref<32x256xf32, #tpu.memory_space<vmem>>, %arg6: memref<32x256xf32, #tpu.memory_space<vmem>>, %arg7: memref<1x256xf32, #tpu.memory_space<vmem>>, %arg8: memref<256x16xf32, #tpu.memory_space<vmem>>, %arg9: memref<1x16xf32, #tpu.memory_space<vmem>>, %arg10: memref<16x16xf32, #tpu.memory_space<vmem>>) attributes {dimension_semantics = [#tpu.dimension_semantics<parallel>], iteration_bounds = array<i64: 1>, scalar_prefetch = 0 : i64, scratch_operands = 0 : i64, tpu.core_type = #tpu.core_type<tc>, window_params = [{transform_indices = @transform_0, window_bounds = array<i64: 16, 32>}, {transform_indices = @transform_1, window_bounds = array<i64: 16, 32>}, {transform_indices = @transform_2, window_bounds = array<i64: 16, 32>}, {pipeline_mode = #tpu.pipeline_mode<synchronous>, transform_indices = @transform_3, window_bounds = array<i64: 32, 256>}, {pipeline_mode = #tpu.pipeline_mode<synchronous>, transform_indices = @transform_4, window_bounds = array<i64: 32, 256>}, {pipeline_mode = #tpu.pipeline_mode<synchronous>, transform_indices = @transform_5, window_bounds = array<i64: 32, 256>}, {pipeline_mode = #tpu.pipeline_mode<synchronous>, transform_indices = @transform_6, window_bounds = array<i64: 1, 256>}, {pipeline_mode = #tpu.pipeline_mode<synchronous>, transform_indices = @transform_7, window_bounds = array<i64: 256, 16>}, {pipeline_mode = #tpu.pipeline_mode<synchronous>, transform_indices = @transform_8, window_bounds = array<i64: 1, 16>}, {transform_indices = @transform_9, window_bounds = array<i64: 16, 16>}]} {
    %c0 = arith.constant 0 : index
    %c0_0 = arith.constant 0 : index
    %0 = vector.load %arg1[%c0, %c0_0] : memref<16x32xf32, #tpu.memory_space<vmem>>, vector<16x32xf32>
    %c0_1 = arith.constant 0 : index
    %c0_2 = arith.constant 0 : index
    %1 = vector.load %arg4[%c0_1, %c0_2] : memref<32x256xf32, #tpu.memory_space<vmem>>, vector<32x256xf32>
    %cst = arith.constant dense<0.000000e+00> : vector<16x256xf32>
    %2 = tpu.matmul %0, %1, %cst {dimension_numbers = #tpu.dot_dimension_numbers<[1], [0], [0], [1], [0, 0, 1, 1], [], []>} : vector<16x32xf32>, vector<32x256xf32>, vector<16x256xf32> -> vector<16x256xf32>
    %c0_3 = arith.constant 0 : index
    %c0_4 = arith.constant 0 : index
    %3 = vector.load %arg2[%c0_3, %c0_4] : memref<16x32xf32, #tpu.memory_space<vmem>>, vector<16x32xf32>
    %c0_5 = arith.constant 0 : index
    %c0_6 = arith.constant 0 : index
    %4 = vector.load %arg5[%c0_5, %c0_6] : memref<32x256xf32, #tpu.memory_space<vmem>>, vector<32x256xf32>
    %cst_7 = arith.constant dense<0.000000e+00> : vector<16x256xf32>
    %5 = tpu.matmul %3, %4, %cst_7 {dimension_numbers = #tpu.dot_dimension_numbers<[1], [0], [0], [1], [0, 0, 1, 1], [], []>} : vector<16x32xf32>, vector<32x256xf32>, vector<16x256xf32> -> vector<16x256xf32>
    %6 = arith.addf %2, %5 : vector<16x256xf32>
    %c0_8 = arith.constant 0 : index
    %c0_9 = arith.constant 0 : index
    %7 = vector.load %arg3[%c0_8, %c0_9] : memref<16x32xf32, #tpu.memory_space<vmem>>, vector<16x32xf32>
    %c0_10 = arith.constant 0 : index
    %c0_11 = arith.constant 0 : index
    %8 = vector.load %arg6[%c0_10, %c0_11] : memref<32x256xf32, #tpu.memory_space<vmem>>, vector<32x256xf32>
    %cst_12 = arith.constant dense<0.000000e+00> : vector<16x256xf32>
    %9 = tpu.matmul %7, %8, %cst_12 {dimension_numbers = #tpu.dot_dimension_numbers<[1], [0], [0], [1], [0, 0, 1, 1], [], []>} : vector<16x32xf32>, vector<32x256xf32>, vector<16x256xf32> -> vector<16x256xf32>
    %10 = arith.addf %6, %9 : vector<16x256xf32>
    %c0_13 = arith.constant 0 : index
    %c0_14 = arith.constant 0 : index
    %11 = vector.load %arg7[%c0_13, %c0_14] : memref<1x256xf32, #tpu.memory_space<vmem>>, vector<1x256xf32>
    %12 = vector.broadcast %11 : vector<1x256xf32> to vector<16x256xf32>
    %13 = arith.addf %10, %12 : vector<16x256xf32>
    %14 = math.tanh %13 : vector<16x256xf32>
    %c0_15 = arith.constant 0 : index
    %c0_16 = arith.constant 0 : index
    %15 = vector.load %arg8[%c0_15, %c0_16] : memref<256x16xf32, #tpu.memory_space<vmem>>, vector<256x16xf32>
    %cst_17 = arith.constant dense<0.000000e+00> : vector<16x16xf32>
    %16 = tpu.matmul %14, %15, %cst_17 {dimension_numbers = #tpu.dot_dimension_numbers<[1], [0], [0], [1], [0, 0, 1, 1], [], []>} : vector<16x256xf32>, vector<256x16xf32>, vector<16x16xf32> -> vector<16x16xf32>
    %c0_18 = arith.constant 0 : index
    %c0_19 = arith.constant 0 : index
    %17 = vector.load %arg9[%c0_18, %c0_19] : memref<1x16xf32, #tpu.memory_space<vmem>>, vector<1x16xf32>
    %18 = vector.broadcast %17 : vector<1x16xf32> to vector<16x16xf32>
    %19 = arith.addf %16, %18 : vector<16x16xf32>
    %20 = math.tanh %19 : vector<16x16xf32>
    %c0_20 = arith.constant 0 : index
    %c0_21 = arith.constant 0 : index
    %21 = vector.load %arg10[%c0_20, %c0_21] : memref<16x16xf32, #tpu.memory_space<vmem>>, vector<16x16xf32>
    tpu.vector_store %arg10[%c0_20, %c0_21], %20 {strides = array<i32>} : memref<16x16xf32, #tpu.memory_space<vmem>>, vector<16x16xf32>,
    return
  }
  func.func @transform_0(%arg0: i32) -> (i32, i32) {
    %c0_i32 = arith.constant 0 : i32
    %c0_i32_0 = arith.constant 0 : i32
    return %arg0, %c0_i32 : i32, i32
  }
  func.func @transform_1(%arg0: i32) -> (i32, i32) {
    %c0_i32 = arith.constant 0 : i32
    %c0_i32_0 = arith.constant 0 : i32
    return %arg0, %c0_i32 : i32, i32
  }
  func.func @transform_2(%arg0: i32) -> (i32, i32) {
    %c0_i32 = arith.constant 0 : i32
    %c0_i32_0 = arith.constant 0 : i32
    return %arg0, %c0_i32 : i32, i32
  }
  func.func @transform_3(%arg0: i32) -> (i32, i32) {
    %c0_i32 = arith.constant 0 : i32
    %c0_i32_0 = arith.constant 0 : i32
    %c0_i32_1 = arith.constant 0 : i32
    return %c0_i32, %c0_i32_0 : i32, i32
  }
  func.func @transform_4(%arg0: i32) -> (i32, i32) {
    %c0_i32 = arith.constant 0 : i32
    %c0_i32_0 = arith.constant 0 : i32
    %c0_i32_1 = arith.constant 0 : i32
    return %c0_i32, %c0_i32_0 : i32, i32
  }
  func.func @transform_5(%arg0: i32) -> (i32, i32) {
    %c0_i32 = arith.constant 0 : i32
    %c0_i32_0 = arith.constant 0 : i32
    %c0_i32_1 = arith.constant 0 : i32
    return %c0_i32, %c0_i32_0 : i32, i32
  }
  func.func @transform_6(%arg0: i32) -> (i32, i32) {
    %c0_i32 = arith.constant 0 : i32
    %c0_i32_0 = arith.constant 0 : i32
    %c0_i32_1 = arith.constant 0 : i32
    return %c0_i32, %c0_i32_0 : i32, i32
  }
  func.func @transform_7(%arg0: i32) -> (i32, i32) {
    %c0_i32 = arith.constant 0 : i32
    %c0_i32_0 = arith.constant 0 : i32
    %c0_i32_1 = arith.constant 0 : i32
    return %c0_i32, %c0_i32_0 : i32, i32
  }
  func.func @transform_8(%arg0: i32) -> (i32, i32) {
    %c0_i32 = arith.constant 0 : i32
    %c0_i32_0 = arith.constant 0 : i32
    %c0_i32_1 = arith.constant 0 : i32
    return %c0_i32, %c0_i32_0 : i32, i32
  }
  func.func @transform_9(%arg0: i32) -> (i32, i32) {
    %c0_i32 = arith.constant 0 : i32
    %c0_i32_0 = arith.constant 0 : i32
    return %arg0, %c0_i32 : i32, i32
  }
}

module attributes {stable_mosaic.version = 11 : i64} {
  func.func @_shrink_norm_kernel(%arg0: i32, %arg1: memref<1x2x8xf32, #tpu.memory_space<vmem>>, %arg2: memref<1x8x16xf32, #tpu.memory_space<vmem>>, %arg3: memref<1x2x16xf32, #tpu.memory_space<vmem>>) attributes {dimension_semantics = [#tpu.dimension_semantics<parallel>], iteration_bounds = array<i64: 2>, scalar_prefetch = 0 : i64, scratch_operands = 0 : i64, tpu.core_type = #tpu.core_type<tc>, window_params = [{transform_indices = @transform_0, window_bounds = array<i64: 1, 2, 8>}, {transform_indices = @transform_1, window_bounds = array<i64: 1, 8, 16>}, {transform_indices = @transform_2, window_bounds = array<i64: 1, 2, 16>}]} {
    %c0 = arith.constant 0 : index
    %c0_0 = arith.constant 0 : index
    %c0_1 = arith.constant 0 : index
    %0 = vector.load %arg1[%c0, %c0_0, %c0_1] : memref<1x2x8xf32, #tpu.memory_space<vmem>>, vector<1x2x8xf32>
    %1 = vector.shape_cast %0 : vector<1x2x8xf32> to vector<2x8xf32>
    %c0_2 = arith.constant 0 : index
    %c0_3 = arith.constant 0 : index
    %c0_4 = arith.constant 0 : index
    %2 = vector.load %arg2[%c0_2, %c0_3, %c0_4] : memref<1x8x16xf32, #tpu.memory_space<vmem>>, vector<1x8x16xf32>
    %3 = vector.shape_cast %2 : vector<1x8x16xf32> to vector<8x16xf32>
    %cst = arith.constant dense<0.000000e+00> : vector<2x16xf32>
    %4 = tpu.matmul %1, %3, %cst {dimension_numbers = #tpu.dot_dimension_numbers<[1], [0], [0], [1], [0, 0, 1, 1], [], []>} : vector<2x8xf32>, vector<8x16xf32>, vector<2x16xf32> -> vector<2x16xf32>
    %5 = arith.mulf %4, %4 : vector<2x16xf32>
    %cst_5 = arith.constant dense<0.000000e+00> : vector<16xf32>
    %6 = vector.multi_reduction <add>, %5, %cst_5 [0] : vector<2x16xf32> to vector<16xf32>
    %7 = vector.shape_cast %6 : vector<16xf32> to vector<1x16xf32>
    %8 = math.sqrt %7 : vector<1x16xf32>
    %cst_6 = arith.constant 9.99999996E-13 : f32
    %9 = vector.broadcast %cst_6 : f32 to vector<1x16xf32>
    %10 = arith.maximumf %8, %9 : vector<1x16xf32>
    %11 = vector.broadcast %10 : vector<1x16xf32> to vector<2x16xf32>
    %12 = arith.divf %4, %11 : vector<2x16xf32>
    %c0_7 = arith.constant 0 : index
    %c0_8 = arith.constant 0 : index
    %c0_9 = arith.constant 0 : index
    %13 = vector.load %arg3[%c0_7, %c0_8, %c0_9] : memref<1x2x16xf32, #tpu.memory_space<vmem>>, vector<1x2x16xf32>
    %14 = vector.shape_cast %13 : vector<1x2x16xf32> to vector<2x16xf32>
    %15 = vector.shape_cast %12 : vector<2x16xf32> to vector<1x2x16xf32>
    tpu.vector_store %arg3[%c0_7, %c0_8, %c0_9], %15 {strides = array<i32>} : memref<1x2x16xf32, #tpu.memory_space<vmem>>, vector<1x2x16xf32>,
    return
  }
  func.func @transform_0(%arg0: i32) -> (i32, i32, i32) {
    %c0_i32 = arith.constant 0 : i32
    %c0_i32_0 = arith.constant 0 : i32
    %c0_i32_1 = arith.constant 0 : i32
    return %arg0, %c0_i32, %c0_i32_0 : i32, i32, i32
  }
  func.func @transform_1(%arg0: i32) -> (i32, i32, i32) {
    %c0_i32 = arith.constant 0 : i32
    %c0_i32_0 = arith.constant 0 : i32
    %c0_i32_1 = arith.constant 0 : i32
    return %arg0, %c0_i32, %c0_i32_0 : i32, i32, i32
  }
  func.func @transform_2(%arg0: i32) -> (i32, i32, i32) {
    %c0_i32 = arith.constant 0 : i32
    %c0_i32_0 = arith.constant 0 : i32
    %c0_i32_1 = arith.constant 0 : i32
    return %arg0, %c0_i32, %c0_i32_0 : i32, i32, i32
  }
}

module attributes {stable_mosaic.version = 11 : i64} {
  func.func @_dense_stack_kernel(%arg0: i32, %arg1: memref<28x16xf32, #tpu.memory_space<vmem>>, %arg2: memref<16x256xf32, #tpu.memory_space<vmem>>, %arg3: memref<1x256xf32, #tpu.memory_space<vmem>>, %arg4: memref<256x32xf32, #tpu.memory_space<vmem>>, %arg5: memref<1x32xf32, #tpu.memory_space<vmem>>, %arg6: memref<28x32xf32, #tpu.memory_space<vmem>>) attributes {dimension_semantics = [#tpu.dimension_semantics<parallel>], iteration_bounds = array<i64: 1>, scalar_prefetch = 0 : i64, scratch_operands = 0 : i64, tpu.core_type = #tpu.core_type<tc>, window_params = [{transform_indices = @transform_0, window_bounds = array<i64: 28, 16>}, {pipeline_mode = #tpu.pipeline_mode<synchronous>, transform_indices = @transform_1, window_bounds = array<i64: 16, 256>}, {pipeline_mode = #tpu.pipeline_mode<synchronous>, transform_indices = @transform_2, window_bounds = array<i64: 1, 256>}, {pipeline_mode = #tpu.pipeline_mode<synchronous>, transform_indices = @transform_3, window_bounds = array<i64: 256, 32>}, {pipeline_mode = #tpu.pipeline_mode<synchronous>, transform_indices = @transform_4, window_bounds = array<i64: 1, 32>}, {transform_indices = @transform_5, window_bounds = array<i64: 28, 32>}]} {
    %c0 = arith.constant 0 : index
    %c0_0 = arith.constant 0 : index
    %0 = vector.load %arg1[%c0, %c0_0] : memref<28x16xf32, #tpu.memory_space<vmem>>, vector<28x16xf32>
    %c0_1 = arith.constant 0 : index
    %c0_2 = arith.constant 0 : index
    %1 = vector.load %arg2[%c0_1, %c0_2] : memref<16x256xf32, #tpu.memory_space<vmem>>, vector<16x256xf32>
    %cst = arith.constant dense<0.000000e+00> : vector<28x256xf32>
    %2 = tpu.matmul %0, %1, %cst {dimension_numbers = #tpu.dot_dimension_numbers<[1], [0], [0], [1], [0, 0, 1, 1], [], []>} : vector<28x16xf32>, vector<16x256xf32>, vector<28x256xf32> -> vector<28x256xf32>
    %c0_3 = arith.constant 0 : index
    %c0_4 = arith.constant 0 : index
    %3 = vector.load %arg3[%c0_3, %c0_4] : memref<1x256xf32, #tpu.memory_space<vmem>>, vector<1x256xf32>
    %4 = vector.broadcast %3 : vector<1x256xf32> to vector<28x256xf32>
    %5 = arith.addf %2, %4 : vector<28x256xf32>
    %6 = math.tanh %5 : vector<28x256xf32>
    %c0_5 = arith.constant 0 : index
    %c0_6 = arith.constant 0 : index
    %7 = vector.load %arg4[%c0_5, %c0_6] : memref<256x32xf32, #tpu.memory_space<vmem>>, vector<256x32xf32>
    %cst_7 = arith.constant dense<0.000000e+00> : vector<28x32xf32>
    %8 = tpu.matmul %6, %7, %cst_7 {dimension_numbers = #tpu.dot_dimension_numbers<[1], [0], [0], [1], [0, 0, 1, 1], [], []>} : vector<28x256xf32>, vector<256x32xf32>, vector<28x32xf32> -> vector<28x32xf32>
    %c0_8 = arith.constant 0 : index
    %c0_9 = arith.constant 0 : index
    %9 = vector.load %arg5[%c0_8, %c0_9] : memref<1x32xf32, #tpu.memory_space<vmem>>, vector<1x32xf32>
    %10 = vector.broadcast %9 : vector<1x32xf32> to vector<28x32xf32>
    %11 = arith.addf %8, %10 : vector<28x32xf32>
    %12 = math.tanh %11 : vector<28x32xf32>
    %c0_10 = arith.constant 0 : index
    %c0_11 = arith.constant 0 : index
    %13 = vector.load %arg6[%c0_10, %c0_11] : memref<28x32xf32, #tpu.memory_space<vmem>>, vector<28x32xf32>
    tpu.vector_store %arg6[%c0_10, %c0_11], %12 {strides = array<i32>} : memref<28x32xf32, #tpu.memory_space<vmem>>, vector<28x32xf32>,
    return
  }
  func.func @transform_0(%arg0: i32) -> (i32, i32) {
    %c0_i32 = arith.constant 0 : i32
    %c0_i32_0 = arith.constant 0 : i32
    return %arg0, %c0_i32 : i32, i32
  }
  func.func @transform_1(%arg0: i32) -> (i32, i32) {
    %c0_i32 = arith.constant 0 : i32
    %c0_i32_0 = arith.constant 0 : i32
    %c0_i32_1 = arith.constant 0 : i32
    return %c0_i32, %c0_i32_0 : i32, i32
  }
  func.func @transform_2(%arg0: i32) -> (i32, i32) {
    %c0_i32 = arith.constant 0 : i32
    %c0_i32_0 = arith.constant 0 : i32
    %c0_i32_1 = arith.constant 0 : i32
    return %c0_i32, %c0_i32_0 : i32, i32
  }
  func.func @transform_3(%arg0: i32) -> (i32, i32) {
    %c0_i32 = arith.constant 0 : i32
    %c0_i32_0 = arith.constant 0 : i32
    %c0_i32_1 = arith.constant 0 : i32
    return %c0_i32, %c0_i32_0 : i32, i32
  }
  func.func @transform_4(%arg0: i32) -> (i32, i32) {
    %c0_i32 = arith.constant 0 : i32
    %c0_i32_0 = arith.constant 0 : i32
    %c0_i32_1 = arith.constant 0 : i32
    return %c0_i32, %c0_i32_0 : i32, i32
  }
  func.func @transform_5(%arg0: i32) -> (i32, i32) {
    %c0_i32 = arith.constant 0 : i32
    %c0_i32_0 = arith.constant 0 : i32
    return %arg0, %c0_i32 : i32, i32
  }
}

module attributes {stable_mosaic.version = 11 : i64} {
  func.func @_gnn_conv_kernel(%arg0: i32, %arg1: i32, %arg2: memref<1x14x1xf32, #tpu.memory_space<vmem>>, %arg3: memref<1x14x14xf32, #tpu.memory_space<vmem>>, %arg4: memref<1x14x32xf32, #tpu.memory_space<vmem>>, %arg5: memref<32x32xf32, #tpu.memory_space<vmem>>, %arg6: memref<1x14x32xf32, #tpu.memory_space<vmem>>) attributes {dimension_semantics = [#tpu.dimension_semantics<parallel>, #tpu.dimension_semantics<parallel>], iteration_bounds = array<i64: 2, 1>, scalar_prefetch = 0 : i64, scratch_operands = 0 : i64, tpu.core_type = #tpu.core_type<tc>, window_params = [{transform_indices = @transform_0, window_bounds = array<i64: 1, 14, 1>}, {transform_indices = @transform_1, window_bounds = array<i64: 1, 14, 14>}, {transform_indices = @transform_2, window_bounds = array<i64: 1, 14, 32>}, {pipeline_mode = #tpu.pipeline_mode<synchronous>, transform_indices = @transform_3, window_bounds = array<i64: 32, 32>}, {transform_indices = @transform_4, window_bounds = array<i64: 1, 14, 32>}]} {
    %c0 = arith.constant 0 : index
    %c0_0 = arith.constant 0 : index
    %c0_1 = arith.constant 0 : index
    %0 = vector.load %arg4[%c0, %c0_0, %c0_1] : memref<1x14x32xf32, #tpu.memory_space<vmem>>, vector<1x14x32xf32>
    %1 = vector.shape_cast %0 : vector<1x14x32xf32> to vector<14x32xf32>
    %c0_2 = arith.constant 0 : index
    %c0_3 = arith.constant 0 : index
    %2 = vector.load %arg5[%c0_2, %c0_3] : memref<32x32xf32, #tpu.memory_space<vmem>>, vector<32x32xf32>
    %cst = arith.constant dense<0.000000e+00> : vector<14x32xf32>
    %3 = tpu.matmul %1, %2, %cst {dimension_numbers = #tpu.dot_dimension_numbers<[1], [0], [0], [1], [0, 0, 1, 1], [], []>} : vector<14x32xf32>, vector<32x32xf32>, vector<14x32xf32> -> vector<14x32xf32>
    %c0_4 = arith.constant 0 : index
    %c0_5 = arith.constant 0 : index
    %c0_6 = arith.constant 0 : index
    %4 = vector.load %arg2[%c0_4, %c0_5, %c0_6] : memref<1x14x1xf32, #tpu.memory_space<vmem>>, vector<1x14x1xf32>
    %5 = vector.shape_cast %4 : vector<1x14x1xf32> to vector<14x1xf32>
    %c0_7 = arith.constant 0 : index
    %c0_8 = arith.constant 0 : index
    %c0_9 = arith.constant 0 : index
    %6 = vector.load %arg3[%c0_7, %c0_8, %c0_9] : memref<1x14x14xf32, #tpu.memory_space<vmem>>, vector<1x14x14xf32>
    %7 = vector.shape_cast %6 : vector<1x14x14xf32> to vector<14x14xf32>
    %cst_10 = arith.constant dense<0.000000e+00> : vector<14x32xf32>
    %8 = tpu.matmul %7, %3, %cst_10 {dimension_numbers = #tpu.dot_dimension_numbers<[1], [0], [0], [1], [0, 0, 1, 1], [], []>} : vector<14x14xf32>, vector<14x32xf32>, vector<14x32xf32> -> vector<14x32xf32>
    %9 = vector.broadcast %5 : vector<14x1xf32> to vector<14x32xf32>
    %10 = arith.mulf %9, %8 : vector<14x32xf32>
    %11 = math.tanh %10 : vector<14x32xf32>
    %c0_11 = arith.constant 0 : index
    %c0_12 = arith.constant 0 : index
    %c0_13 = arith.constant 0 : index
    %12 = vector.load %arg6[%c0_11, %c0_12, %c0_13] : memref<1x14x32xf32, #tpu.memory_space<vmem>>, vector<1x14x32xf32>
    %13 = vector.shape_cast %12 : vector<1x14x32xf32> to vector<14x32xf32>
    %14 = vector.shape_cast %11 : vector<14x32xf32> to vector<1x14x32xf32>
    tpu.vector_store %arg6[%c0_11, %c0_12, %c0_13], %14 {strides = array<i32>} : memref<1x14x32xf32, #tpu.memory_space<vmem>>, vector<1x14x32xf32>,
    return
  }
  func.func @transform_0(%arg0: i32, %arg1: i32) -> (i32, i32, i32) {
    %c0_i32 = arith.constant 0 : i32
    %c0_i32_0 = arith.constant 0 : i32
    return %arg0, %arg1, %c0_i32 : i32, i32, i32
  }
  func.func @transform_1(%arg0: i32, %arg1: i32) -> (i32, i32, i32) {
    %c0_i32 = arith.constant 0 : i32
    %c0_i32_0 = arith.constant 0 : i32
    return %arg0, %arg1, %c0_i32 : i32, i32, i32
  }
  func.func @transform_2(%arg0: i32, %arg1: i32) -> (i32, i32, i32) {
    %c0_i32 = arith.constant 0 : i32
    %c0_i32_0 = arith.constant 0 : i32
    %c0_i32_1 = arith.constant 0 : i32
    return %arg0, %c0_i32, %c0_i32_0 : i32, i32, i32
  }
  func.func @transform_3(%arg0: i32, %arg1: i32) -> (i32, i32) {
    %c0_i32 = arith.constant 0 : i32
    %c0_i32_0 = arith.constant 0 : i32
    %c0_i32_1 = arith.constant 0 : i32
    return %c0_i32, %c0_i32_0 : i32, i32
  }
  func.func @transform_4(%arg0: i32, %arg1: i32) -> (i32, i32, i32) {
    %c0_i32 = arith.constant 0 : i32
    %c0_i32_0 = arith.constant 0 : i32
    return %arg0, %arg1, %c0_i32 : i32, i32, i32
  }
}

module attributes {stable_mosaic.version = 11 : i64} {
  func.func @_dense_stack_kernel(%arg0: i32, %arg1: memref<28x32xf32, #tpu.memory_space<vmem>>, %arg2: memref<28x32xf32, #tpu.memory_space<vmem>>, %arg3: memref<28x32xf32, #tpu.memory_space<vmem>>, %arg4: memref<32x256xf32, #tpu.memory_space<vmem>>, %arg5: memref<32x256xf32, #tpu.memory_space<vmem>>, %arg6: memref<32x256xf32, #tpu.memory_space<vmem>>, %arg7: memref<1x256xf32, #tpu.memory_space<vmem>>, %arg8: memref<256x16xf32, #tpu.memory_space<vmem>>, %arg9: memref<1x16xf32, #tpu.memory_space<vmem>>, %arg10: memref<28x16xf32, #tpu.memory_space<vmem>>) attributes {dimension_semantics = [#tpu.dimension_semantics<parallel>], iteration_bounds = array<i64: 1>, scalar_prefetch = 0 : i64, scratch_operands = 0 : i64, tpu.core_type = #tpu.core_type<tc>, window_params = [{transform_indices = @transform_0, window_bounds = array<i64: 28, 32>}, {transform_indices = @transform_1, window_bounds = array<i64: 28, 32>}, {transform_indices = @transform_2, window_bounds = array<i64: 28, 32>}, {pipeline_mode = #tpu.pipeline_mode<synchronous>, transform_indices = @transform_3, window_bounds = array<i64: 32, 256>}, {pipeline_mode = #tpu.pipeline_mode<synchronous>, transform_indices = @transform_4, window_bounds = array<i64: 32, 256>}, {pipeline_mode = #tpu.pipeline_mode<synchronous>, transform_indices = @transform_5, window_bounds = array<i64: 32, 256>}, {pipeline_mode = #tpu.pipeline_mode<synchronous>, transform_indices = @transform_6, window_bounds = array<i64: 1, 256>}, {pipeline_mode = #tpu.pipeline_mode<synchronous>, transform_indices = @transform_7, window_bounds = array<i64: 256, 16>}, {pipeline_mode = #tpu.pipeline_mode<synchronous>, transform_indices = @transform_8, window_bounds = array<i64: 1, 16>}, {transform_indices = @transform_9, window_bounds = array<i64: 28, 16>}]} {
    %c0 = arith.constant 0 : index
    %c0_0 = arith.constant 0 : index
    %0 = vector.load %arg1[%c0, %c0_0] : memref<28x32xf32, #tpu.memory_space<vmem>>, vector<28x32xf32>
    %c0_1 = arith.constant 0 : index
    %c0_2 = arith.constant 0 : index
    %1 = vector.load %arg4[%c0_1, %c0_2] : memref<32x256xf32, #tpu.memory_space<vmem>>, vector<32x256xf32>
    %cst = arith.constant dense<0.000000e+00> : vector<28x256xf32>
    %2 = tpu.matmul %0, %1, %cst {dimension_numbers = #tpu.dot_dimension_numbers<[1], [0], [0], [1], [0, 0, 1, 1], [], []>} : vector<28x32xf32>, vector<32x256xf32>, vector<28x256xf32> -> vector<28x256xf32>
    %c0_3 = arith.constant 0 : index
    %c0_4 = arith.constant 0 : index
    %3 = vector.load %arg2[%c0_3, %c0_4] : memref<28x32xf32, #tpu.memory_space<vmem>>, vector<28x32xf32>
    %c0_5 = arith.constant 0 : index
    %c0_6 = arith.constant 0 : index
    %4 = vector.load %arg5[%c0_5, %c0_6] : memref<32x256xf32, #tpu.memory_space<vmem>>, vector<32x256xf32>
    %cst_7 = arith.constant dense<0.000000e+00> : vector<28x256xf32>
    %5 = tpu.matmul %3, %4, %cst_7 {dimension_numbers = #tpu.dot_dimension_numbers<[1], [0], [0], [1], [0, 0, 1, 1], [], []>} : vector<28x32xf32>, vector<32x256xf32>, vector<28x256xf32> -> vector<28x256xf32>
    %6 = arith.addf %2, %5 : vector<28x256xf32>
    %c0_8 = arith.constant 0 : index
    %c0_9 = arith.constant 0 : index
    %7 = vector.load %arg3[%c0_8, %c0_9] : memref<28x32xf32, #tpu.memory_space<vmem>>, vector<28x32xf32>
    %c0_10 = arith.constant 0 : index
    %c0_11 = arith.constant 0 : index
    %8 = vector.load %arg6[%c0_10, %c0_11] : memref<32x256xf32, #tpu.memory_space<vmem>>, vector<32x256xf32>
    %cst_12 = arith.constant dense<0.000000e+00> : vector<28x256xf32>
    %9 = tpu.matmul %7, %8, %cst_12 {dimension_numbers = #tpu.dot_dimension_numbers<[1], [0], [0], [1], [0, 0, 1, 1], [], []>} : vector<28x32xf32>, vector<32x256xf32>, vector<28x256xf32> -> vector<28x256xf32>
    %10 = arith.addf %6, %9 : vector<28x256xf32>
    %c0_13 = arith.constant 0 : index
    %c0_14 = arith.constant 0 : index
    %11 = vector.load %arg7[%c0_13, %c0_14] : memref<1x256xf32, #tpu.memory_space<vmem>>, vector<1x256xf32>
    %12 = vector.broadcast %11 : vector<1x256xf32> to vector<28x256xf32>
    %13 = arith.addf %10, %12 : vector<28x256xf32>
    %14 = math.tanh %13 : vector<28x256xf32>
    %c0_15 = arith.constant 0 : index
    %c0_16 = arith.constant 0 : index
    %15 = vector.load %arg8[%c0_15, %c0_16] : memref<256x16xf32, #tpu.memory_space<vmem>>, vector<256x16xf32>
    %cst_17 = arith.constant dense<0.000000e+00> : vector<28x16xf32>
    %16 = tpu.matmul %14, %15, %cst_17 {dimension_numbers = #tpu.dot_dimension_numbers<[1], [0], [0], [1], [0, 0, 1, 1], [], []>} : vector<28x256xf32>, vector<256x16xf32>, vector<28x16xf32> -> vector<28x16xf32>
    %c0_18 = arith.constant 0 : index
    %c0_19 = arith.constant 0 : index
    %17 = vector.load %arg9[%c0_18, %c0_19] : memref<1x16xf32, #tpu.memory_space<vmem>>, vector<1x16xf32>
    %18 = vector.broadcast %17 : vector<1x16xf32> to vector<28x16xf32>
    %19 = arith.addf %16, %18 : vector<28x16xf32>
    %20 = math.tanh %19 : vector<28x16xf32>
    %c0_20 = arith.constant 0 : index
    %c0_21 = arith.constant 0 : index
    %21 = vector.load %arg10[%c0_20, %c0_21] : memref<28x16xf32, #tpu.memory_space<vmem>>, vector<28x16xf32>
    tpu.vector_store %arg10[%c0_20, %c0_21], %20 {strides = array<i32>} : memref<28x16xf32, #tpu.memory_space<vmem>>, vector<28x16xf32>,
    return
  }
  func.func @transform_0(%arg0: i32) -> (i32, i32) {
    %c0_i32 = arith.constant 0 : i32
    %c0_i32_0 = arith.constant 0 : i32
    return %arg0, %c0_i32 : i32, i32
  }
  func.func @transform_1(%arg0: i32) -> (i32, i32) {
    %c0_i32 = arith.constant 0 : i32
    %c0_i32_0 = arith.constant 0 : i32
    return %arg0, %c0_i32 : i32, i32
  }
  func.func @transform_2(%arg0: i32) -> (i32, i32) {
    %c0_i32 = arith.constant 0 : i32
    %c0_i32_0 = arith.constant 0 : i32
    return %arg0, %c0_i32 : i32, i32
  }
  func.func @transform_3(%arg0: i32) -> (i32, i32) {
    %c0_i32 = arith.constant 0 : i32
    %c0_i32_0 = arith.constant 0 : i32
    %c0_i32_1 = arith.constant 0 : i32
    return %c0_i32, %c0_i32_0 : i32, i32
  }
  func.func @transform_4(%arg0: i32) -> (i32, i32) {
    %c0_i32 = arith.constant 0 : i32
    %c0_i32_0 = arith.constant 0 : i32
    %c0_i32_1 = arith.constant 0 : i32
    return %c0_i32, %c0_i32_0 : i32, i32
  }
  func.func @transform_5(%arg0: i32) -> (i32, i32) {
    %c0_i32 = arith.constant 0 : i32
    %c0_i32_0 = arith.constant 0 : i32
    %c0_i32_1 = arith.constant 0 : i32
    return %c0_i32, %c0_i32_0 : i32, i32
  }
  func.func @transform_6(%arg0: i32) -> (i32, i32) {
    %c0_i32 = arith.constant 0 : i32
    %c0_i32_0 = arith.constant 0 : i32
    %c0_i32_1 = arith.constant 0 : i32
    return %c0_i32, %c0_i32_0 : i32, i32
  }
  func.func @transform_7(%arg0: i32) -> (i32, i32) {
    %c0_i32 = arith.constant 0 : i32
    %c0_i32_0 = arith.constant 0 : i32
    %c0_i32_1 = arith.constant 0 : i32
    return %c0_i32, %c0_i32_0 : i32, i32
  }
  func.func @transform_8(%arg0: i32) -> (i32, i32) {
    %c0_i32 = arith.constant 0 : i32
    %c0_i32_0 = arith.constant 0 : i32
    %c0_i32_1 = arith.constant 0 : i32
    return %c0_i32, %c0_i32_0 : i32, i32
  }
  func.func @transform_9(%arg0: i32) -> (i32, i32) {
    %c0_i32 = arith.constant 0 : i32
    %c0_i32_0 = arith.constant 0 : i32
    return %arg0, %c0_i32 : i32, i32
  }
}

module attributes {stable_mosaic.version = 11 : i64} {
  func.func @_readout_kernel(%arg0: i32, %arg1: memref<1x8x16xf32, #tpu.memory_space<vmem>>, %arg2: memref<1x14x16xf32, #tpu.memory_space<vmem>>, %arg3: memref<16x512xf32, #tpu.memory_space<vmem>>, %arg4: memref<16x512xf32, #tpu.memory_space<vmem>>, %arg5: memref<1x512xf32, #tpu.memory_space<vmem>>, %arg6: memref<512x1xf32, #tpu.memory_space<vmem>>, %arg7: memref<1x1xf32, #tpu.memory_space<vmem>>, %arg8: memref<1x1x1xf32, #tpu.memory_space<vmem>>, %arg9: memref<1x1x32xf32, #tpu.memory_space<vmem>>) attributes {dimension_semantics = [#tpu.dimension_semantics<parallel>], iteration_bounds = array<i64: 2>, scalar_prefetch = 0 : i64, scratch_operands = 0 : i64, tpu.core_type = #tpu.core_type<tc>, window_params = [{transform_indices = @transform_0, window_bounds = array<i64: 1, 8, 16>}, {transform_indices = @transform_1, window_bounds = array<i64: 1, 14, 16>}, {pipeline_mode = #tpu.pipeline_mode<synchronous>, transform_indices = @transform_2, window_bounds = array<i64: 16, 512>}, {pipeline_mode = #tpu.pipeline_mode<synchronous>, transform_indices = @transform_3, window_bounds = array<i64: 16, 512>}, {pipeline_mode = #tpu.pipeline_mode<synchronous>, transform_indices = @transform_4, window_bounds = array<i64: 1, 512>}, {pipeline_mode = #tpu.pipeline_mode<synchronous>, transform_indices = @transform_5, window_bounds = array<i64: 512, 1>}, {pipeline_mode = #tpu.pipeline_mode<synchronous>, transform_indices = @transform_6, window_bounds = array<i64: 1, 1>}, {transform_indices = @transform_7, window_bounds = array<i64: 1, 1, 1>}, {transform_indices = @transform_8, window_bounds = array<i64: 1, 1, 32>}]} {
    %c0 = arith.constant 0 : index
    %c0_0 = arith.constant 0 : index
    %c0_1 = arith.constant 0 : index
    %0 = vector.load %arg1[%c0, %c0_0, %c0_1] : memref<1x8x16xf32, #tpu.memory_space<vmem>>, vector<1x8x16xf32>
    %1 = vector.shape_cast %0 : vector<1x8x16xf32> to vector<8x16xf32>
    %cst = arith.constant dense<0.000000e+00> : vector<16xf32>
    %2 = vector.multi_reduction <add>, %1, %cst [0] : vector<8x16xf32> to vector<16xf32>
    %3 = vector.shape_cast %2 : vector<16xf32> to vector<1x16xf32>
    %c0_2 = arith.constant 0 : index
    %c0_3 = arith.constant 0 : index
    %c0_4 = arith.constant 0 : index
    %4 = vector.load %arg2[%c0_2, %c0_3, %c0_4] : memref<1x14x16xf32, #tpu.memory_space<vmem>>, vector<1x14x16xf32>
    %5 = vector.shape_cast %4 : vector<1x14x16xf32> to vector<14x16xf32>
    %cst_5 = arith.constant dense<0.000000e+00> : vector<16xf32>
    %6 = vector.multi_reduction <add>, %5, %cst_5 [0] : vector<14x16xf32> to vector<16xf32>
    %7 = vector.shape_cast %6 : vector<16xf32> to vector<1x16xf32>
    %c0_6 = arith.constant 0 : index
    %c0_7 = arith.constant 0 : index
    %8 = vector.load %arg3[%c0_6, %c0_7] : memref<16x512xf32, #tpu.memory_space<vmem>>, vector<16x512xf32>
    %cst_8 = arith.constant dense<0.000000e+00> : vector<1x512xf32>
    %9 = tpu.matmul %3, %8, %cst_8 {dimension_numbers = #tpu.dot_dimension_numbers<[1], [0], [0], [1], [0, 0, 1, 1], [], []>} : vector<1x16xf32>, vector<16x512xf32>, vector<1x512xf32> -> vector<1x512xf32>
    %c0_9 = arith.constant 0 : index
    %c0_10 = arith.constant 0 : index
    %10 = vector.load %arg4[%c0_9, %c0_10] : memref<16x512xf32, #tpu.memory_space<vmem>>, vector<16x512xf32>
    %cst_11 = arith.constant dense<0.000000e+00> : vector<1x512xf32>
    %11 = tpu.matmul %7, %10, %cst_11 {dimension_numbers = #tpu.dot_dimension_numbers<[1], [0], [0], [1], [0, 0, 1, 1], [], []>} : vector<1x16xf32>, vector<16x512xf32>, vector<1x512xf32> -> vector<1x512xf32>
    %12 = arith.addf %9, %11 : vector<1x512xf32>
    %c0_12 = arith.constant 0 : index
    %c0_13 = arith.constant 0 : index
    %13 = vector.load %arg5[%c0_12, %c0_13] : memref<1x512xf32, #tpu.memory_space<vmem>>, vector<1x512xf32>
    %14 = arith.addf %12, %13 : vector<1x512xf32>
    %15 = math.tanh %14 : vector<1x512xf32>
    %c0_14 = arith.constant 0 : index
    %c0_15 = arith.constant 0 : index
    %16 = vector.load %arg6[%c0_14, %c0_15] : memref<512x1xf32, #tpu.memory_space<vmem>>, vector<512x1xf32>
    %cst_16 = arith.constant dense<0.000000e+00> : vector<1x1xf32>
    %17 = tpu.matmul %15, %16, %cst_16 {dimension_numbers = #tpu.dot_dimension_numbers<[1], [0], [0], [1], [0, 0, 1, 1], [], []>} : vector<1x512xf32>, vector<512x1xf32>, vector<1x1xf32> -> vector<1x1xf32>
    %c0_17 = arith.constant 0 : index
    %c0_18 = arith.constant 0 : index
    %18 = vector.load %arg7[%c0_17, %c0_18] : memref<1x1xf32, #tpu.memory_space<vmem>>, vector<1x1xf32>
    %19 = arith.addf %17, %18 : vector<1x1xf32>
    %c0_19 = arith.constant 0 : index
    %c0_20 = arith.constant 0 : index
    %c0_21 = arith.constant 0 : index
    %20 = vector.load %arg8[%c0_19, %c0_20, %c0_21] : memref<1x1x1xf32, #tpu.memory_space<vmem>>, vector<1x1x1xf32>
    %21 = vector.shape_cast %20 : vector<1x1x1xf32> to vector<1x1xf32>
    %22 = vector.shape_cast %19 : vector<1x1xf32> to vector<1x1x1xf32>
    tpu.vector_store %arg8[%c0_19, %c0_20, %c0_21], %22 {strides = array<i32>} : memref<1x1x1xf32, #tpu.memory_space<vmem>>, vector<1x1x1xf32>,
    %c0_22 = arith.constant 0 : index
    %c0_23 = arith.constant 0 : index
    %c0_24 = arith.constant 0 : index
    %23 = vector.load %arg9[%c0_22, %c0_23, %c0_24] : memref<1x1x32xf32, #tpu.memory_space<vmem>>, vector<1x1x16xf32>
    %24 = vector.shape_cast %23 : vector<1x1x16xf32> to vector<1x16xf32>
    %25 = vector.shape_cast %3 : vector<1x16xf32> to vector<1x1x16xf32>
    tpu.vector_store %arg9[%c0_22, %c0_23, %c0_24], %25 {strides = array<i32>} : memref<1x1x32xf32, #tpu.memory_space<vmem>>, vector<1x1x16xf32>,
    %c0_25 = arith.constant 0 : index
    %c0_26 = arith.constant 0 : index
    %c16 = arith.constant 16 : index
    %26 = vector.load %arg9[%c0_25, %c0_26, %c16] : memref<1x1x32xf32, #tpu.memory_space<vmem>>, vector<1x1x16xf32>
    %27 = vector.shape_cast %26 : vector<1x1x16xf32> to vector<1x16xf32>
    %28 = vector.shape_cast %7 : vector<1x16xf32> to vector<1x1x16xf32>
    tpu.vector_store %arg9[%c0_25, %c0_26, %c16], %28 {strides = array<i32>} : memref<1x1x32xf32, #tpu.memory_space<vmem>>, vector<1x1x16xf32>,
    return
  }
  func.func @transform_0(%arg0: i32) -> (i32, i32, i32) {
    %c0_i32 = arith.constant 0 : i32
    %c0_i32_0 = arith.constant 0 : i32
    %c0_i32_1 = arith.constant 0 : i32
    return %arg0, %c0_i32, %c0_i32_0 : i32, i32, i32
  }
  func.func @transform_1(%arg0: i32) -> (i32, i32, i32) {
    %c0_i32 = arith.constant 0 : i32
    %c0_i32_0 = arith.constant 0 : i32
    %c0_i32_1 = arith.constant 0 : i32
    return %arg0, %c0_i32, %c0_i32_0 : i32, i32, i32
  }
  func.func @transform_2(%arg0: i32) -> (i32, i32) {
    %c0_i32 = arith.constant 0 : i32
    %c0_i32_0 = arith.constant 0 : i32
    %c0_i32_1 = arith.constant 0 : i32
    return %c0_i32, %c0_i32_0 : i32, i32
  }
  func.func @transform_3(%arg0: i32) -> (i32, i32) {
    %c0_i32 = arith.constant 0 : i32
    %c0_i32_0 = arith.constant 0 : i32
    %c0_i32_1 = arith.constant 0 : i32
    return %c0_i32, %c0_i32_0 : i32, i32
  }
  func.func @transform_4(%arg0: i32) -> (i32, i32) {
    %c0_i32 = arith.constant 0 : i32
    %c0_i32_0 = arith.constant 0 : i32
    %c0_i32_1 = arith.constant 0 : i32
    return %c0_i32, %c0_i32_0 : i32, i32
  }
  func.func @transform_5(%arg0: i32) -> (i32, i32) {
    %c0_i32 = arith.constant 0 : i32
    %c0_i32_0 = arith.constant 0 : i32
    %c0_i32_1 = arith.constant 0 : i32
    return %c0_i32, %c0_i32_0 : i32, i32
  }
  func.func @transform_6(%arg0: i32) -> (i32, i32) {
    %c0_i32 = arith.constant 0 : i32
    %c0_i32_0 = arith.constant 0 : i32
    %c0_i32_1 = arith.constant 0 : i32
    return %c0_i32, %c0_i32_0 : i32, i32
  }
  func.func @transform_7(%arg0: i32) -> (i32, i32, i32) {
    %c0_i32 = arith.constant 0 : i32
    %c0_i32_0 = arith.constant 0 : i32
    %c0_i32_1 = arith.constant 0 : i32
    return %arg0, %c0_i32, %c0_i32_0 : i32, i32, i32
  }
  func.func @transform_8(%arg0: i32) -> (i32, i32, i32) {
    %c0_i32 = arith.constant 0 : i32
    %c0_i32_0 = arith.constant 0 : i32
    %c0_i32_1 = arith.constant 0 : i32
    return %arg0, %c0_i32, %c0_i32_0 : i32, i32, i32
  }
}

</mosaic_0001>

<bundles_post_ra>
// kernel: hvn_forward.17
= control target key start
LH: loop header
LB: loop body
LE: loop exit
PB: predicated region body
PF: predicated region fallthrough
CT: control target
= control target key end

     0   :  { %s651_s15 = smov 0   ;;  %s653_s16 = smov 0   ;;  %s710_s0 = inlined_call_operand.vmem [shape: f32[2,8,1], index: 0, kind: input, shape index: {}]   ;;  %s711_s1 = inlined_call_operand.vmem [shape: f32[2,8,8], index: 1, kind: input, shape index: {}]   ;;  %s712_s2 = inlined_call_operand.vmem [shape: f32[2,8,32], index: 2, kind: input, shape index: {}]   ;;  %s713_s3 = inlined_call_operand.vmem [shape: f32[32,32], index: 3, kind: input, shape index: {}]   ;;  %s714_s4 = inlined_call_operand.vmem [shape: f32[2,8,32], index: 4, kind: output, shape index: {}]  }
   0x1   :  { %s655_s17 = smov 0  }
   0x2 LB: > { %s26_s18 = sadd.s32 1, %s617_s16  ;;  %p537_p0 = scmp.ge.s32.totalorder %s621_s17, 1  ;;  %s621_s17 = sphi %s655_s17, %s14_s17   ;;  %s617_s16 = sphi %s653_s16, %s716_s16   ;;  %s613_s15 = sphi %s651_s15, %s715_s15  }
   0x3   : > { %p28_p1 = scmp.ge.s32.totalorder %s26_s18, 2  ;;  %p203_p2 = scmp.lt.s32.totalorder %s621_s17, 3 }
   0x5   : > { %s718_s18 = smov (%p28_p1, %s26_s18), 0  ;;  %p204_p3 = pnand %p537_p0, %p203_p2 }
   0x6   : > { %p244_p4 = scmp.lt.s32.totalorder (!%p204_p3), %s613_s15, 1 }
   0x7   : > { %207 = sbr.rel (%p204_p3) target bundleno = 425 (0x1a9), region = 36 }
   0xc   : > { %v273_v0 = vld [vmem:[%s713_s3 + $0x18] sm:$0xff]  ;;  %v623_v1 = vmov 0.0   ;;  %v272_v2 = vld [vmem:[%s713_s3 + $0x10] sm:$0xff]  ;;  %vm624_vm0 = vmmov 0   ;;  %s720_s15 = smov (!%p244_p4, %s613_s15), 1  ;;  %v271_v3 = vld [vmem:[%s713_s3 + $0x8] sm:$0xff] }
   0xd   : > { %553 = vmatprep.subr.mxu0 %v623_v1  ;;  %561 = vmatprep.mubr.msk.f32.mxu0 %vm624_vm0, %v623_v1  ;;  %s678_s25 = sshll.u32 %s720_s15, 3  ;;  %v270_v4 = vld [vmem:[%s713_s3] sm:$0xff]  ;;  %vm274_vm1 = vcmask 261120   ;;  %v625_v6 = vmov 0   ;;  %vm350_vm2 = vcmask 64512  }
   0xe   : > { %554 = vmatpush3.msra.mxu0 %v273_v0  ;;  %564 = vmatprep.subr.mxu1 %v623_v1  ;;  %s261_s30 = scalar_lea.vmem %s712_s2, %s678_s25  ;;  %s250_s7 = scalar_lea.vmem %s710_s0, %s678_s25 }
   0xf   : > { %555 = vmatprep.subr.mxu0 %v623_v1  ;;  %566 = vmatprep.mubr.msk.f32.mxu1 %vm624_vm0, %v623_v1  ;;  %v269_v5 = vld [vmem:[%s261_s30] sm:$0xff]  ;;  %s257_s10 = scalar_lea.vmem %s711_s1, %s678_s25  ;;  %s268_s13 = scalar_lea.vmem %s714_s4, %s678_s25 }
  0x10   : > { %556 = vmatpush3.msra.mxu0 %v272_v2  ;;  %596 = vset.pattern.permute.xlu0 %v625_v6  ;;  %v348_v7 = vld [vmem:[%s250_s7] sm:$0xff] }
  0x11   : > { %557 = vmatprep.subr.mxu0 %v623_v1  ;;  %426 = vperm.xlu0 %596, %v348_v7   ;;  %v349_v8 = vld [vmem:[%s257_s10] sm:$0xff] }
  0x12   : > { %558 = vmatpush3.msra.mxu0 %v271_v3 }
  0x13   : > { %559 = vmatprep.subr.mxu0 %v623_v1 }
  0x14   : > { %560 = vmatpush3.msra.mxu0 %v270_v4 }
  0x15   : > { %562 = vmatmul.mubr.msk.f32.vlgmr.msra.gmra.mxu0 %vm274_vm1, %v269_v5 }
  0x8c   : > { %v427_v11 = vpop.permute.xlu0 %426 }
  0xd5   : > { %v344_v9 = vpop.f32.mrf.mxu0 }
  0xd6   : > { %565 = vmatpush3.msra.mxu1 %v344_v9 }
  0xd7   : > { %v563_v10 = vpop.f32.mrf.mxu0  ;;  %567 = vmatmul.mubr.msk.f32.vlgmr.msra.gmra.mxu1 %vm350_vm2, %v349_v8 }
 0x197   : > { %v420_v12 = vpop.f32.mrf.mxu1 }
 0x198   : > { %v429_v13 = vmul.f32 %v427_v11, %v420_v12 }
 0x199   : > { %v568_v14 = vpop.f32.mrf.mxu1 }
 0x19a   : > { %597 = vtanh.f32 %v429_v13 }
 0x1a7   : > { %v598_v15 = vpop.eup %597 }
 0x1a8   : > { %431 = vst.msk [vmem:[%s268_s13] sm:$0xff] %vm274_vm1, %v598_v15 }
 0x1a9 PF: > { %s14_s17 = sadd.s32 1, %s621_s17   ;;  %s715_s15 = smov %s617_s16 }
 0x1aa   : > { %p11_p5 = scmp.ge.s32.totalorder %s14_s17, 4   ;;  %s716_s16 = smov %s718_s18 }
 0x1ac   :  { %13 = sbr.rel (!%p11_p5) target bundleno = 2 (0x2), region = 72 }

// kernel: hvn_forward.16
= control target key start
LH: loop header
LB: loop body
LE: loop exit
PB: predicated region body
PF: predicated region fallthrough
CT: control target
= control target key end

     0   :  { %vm95_vm0 = vcmask 1043456   ;;  %vm46_vm1 = vcmask 31744   ;;  %v498_v17 = vmov 0.0   ;;  %vm499_vm2 = vmmov 0   ;;  %s657_s1 = inlined_call_operand.vmem [shape: f32[4,128], index: 1, kind: input, shape index: {}]   ;;  %s658_s0 = inlined_call_operand.vmem [shape: f32[128,4], index: 0, kind: input, shape index: {}]   ;;  %s659_s4 = inlined_call_operand.<no memory space> [shape: f32[1,1], index: 4, kind: input, shape index: {}]   ;;  %s660_s2 = inlined_call_operand.vmem [shape: f32[1,128], index: 2, kind: input, shape index: {}]   ;;  %s661_s3 = inlined_call_operand.vmem [shape: f32[1,128], index: 3, kind: input, shape index: {}]   ;;  %s662_s5 = inlined_call_operand.vmem [shape: f32[1,1,128], index: 5, kind: output, shape index: {}]  }
   0x1   :  { %v38_v0 = vld [vmem:[%s657_s1] sm:$0xf]  ;;  %v23_v2 = vld [vmem:[%s658_s0 + $0x8] sm:$0xff]  ;;  %v24_v3 = vld [vmem:[%s658_s0 + $0x10] sm:$0xff]  ;;  %425 = vmatprep.subr.mxu1 %v498_v17  ;;  %457 = vmatprep.mubr.msk.f32.mxu1 %vm499_vm2, %v498_v17  ;;  %v500_v18 = vmov 0   ;;  %v10_v19 = vstv %s659_s4 }
   0x2   :  { %v22_v1 = vld [vmem:[%s658_s0] sm:$0xff]  ;;  %399 = vmatprep.subr.msk.mxu0 %vm95_vm0, %v38_v0  ;;  %v25_v4 = vld [vmem:[%s658_s0 + $0x18] sm:$0xff]  ;;  %v27_v6 = vld [vmem:[%s658_s0 + $0x28] sm:$0xff]  ;;  %463 = vset.pattern.permute.xlu0 %v500_v18  ;;  %11 = vst [vmem:[#allocation2] sm:$0x1] %v10_v19 }
   0x3   :  { %401 = vmatprep.mubr.msk.f32.mxu0 %vm46_vm1, %v22_v1  ;;  %400 = vmatpush3.msk.msra.mxu0 %vm95_vm0, %v38_v0  ;;  %v26_v5 = vld [vmem:[%s658_s0 + $0x20] sm:$0xff]  ;;  %v28_v7 = vld [vmem:[%s658_s0 + $0x30] sm:$0xff]  ;;  %v29_v8 = vld [vmem:[%s658_s0 + $0x38] sm:$0xff] }
   0x4   :  { %402 = vmatmul.mubr.msk.f32.vlgmr.msra.gmra.mxu0 %vm46_vm1, %v23_v2  ;;  %v30_v9 = vld [vmem:[%s658_s0 + $0x40] sm:$0xff]  ;;  %v31_v10 = vld [vmem:[%s658_s0 + $0x48] sm:$0xff]  ;;  %v32_v11 = vld [vmem:[%s658_s0 + $0x50] sm:$0xff] }
   0x5   :  { %404 = vmatprep.mubr.msk.f32.mxu0 %vm46_vm1, %v24_v3  ;;  %v33_v12 = vld [vmem:[%s658_s0 + $0x58] sm:$0xff]  ;;  %v34_v13 = vld [vmem:[%s658_s0 + $0x60] sm:$0xff]  ;;  %v35_v14 = vld [vmem:[%s658_s0 + $0x68] sm:$0xff] }
   0x6   :  { %v36_v15 = vld [vmem:[%s658_s0 + $0x70] sm:$0xff]  ;;  %v37_v16 = vld [vmem:[%s658_s0 + $0x78] sm:$0xff]  ;;  %v614_v35 = vld [vmem:[%s660_s2] ss:$0 sm:$0xff] }
   0x8   :  { %405 = vmatmul.mubr.msk.f32.gmra.mxu0 %vm46_vm1, %v25_v4 }
   0x9   :  { %407 = vmatprep.mubr.msk.f32.mxu0 %vm46_vm1, %v26_v5  ;;  %v261_v20 = vld [vmem:[#allocation2] sm:$0x1] }
   0xa   :  { %264 = vperm.xlu0 %463, %v261_v20  }
   0xc   :  { %408 = vmatmul.mubr.msk.f32.gmra.mxu0 %vm46_vm1, %v27_v6  ;;  %v260_v6 = vld [vmem:[%s661_s3] sm:$0x1] }
   0xd   :  { %410 = vmatprep.mubr.msk.f32.mxu0 %vm46_vm1, %v28_v7  ;;  %v267_v7 = vlaneseq }
  0x10   :  { %411 = vmatmul.mubr.msk.f32.gmra.mxu0 %vm46_vm1, %v29_v8  ;;  %v268_v8 = vshrl.u32 %v267_v7, 7 }
  0x11   :  { %413 = vmatprep.mubr.msk.f32.mxu0 %vm46_vm1, %v30_v9 }
  0x12   :  { %v269_v9 = vsub.s32 0, %v268_v8 }
  0x14   :  { %414 = vmatmul.mubr.msk.f32.gmra.mxu0 %vm46_vm1, %v31_v10 }
  0x15   :  { %416 = vmatprep.mubr.msk.f32.mxu0 %vm46_vm1, %v32_v11 }
  0x18   :  { %417 = vmatmul.mubr.msk.f32.gmra.mxu0 %vm46_vm1, %v33_v12 }
  0x19   :  { %419 = vmatprep.mubr.msk.f32.mxu0 %vm46_vm1, %v34_v13 }
  0x1c   :  { %420 = vmatmul.mubr.msk.f32.gmra.mxu0 %vm46_vm1, %v35_v14 }
  0x1d   :  { %422 = vmatprep.mubr.msk.f32.mxu0 %vm46_vm1, %v36_v15 }
  0x20   :  { %423 = vmatmul.mubr.msk.f32.gmra.mxu0 %vm46_vm1, %v37_v16 }
  0x85   :  { %v265_v10 = vpop.permute.xlu0 %264 }
  0x86   :  { %v270_v11 = vrot.slane %v265_v10, %v269_v9 }
  0xc4   :  { %v603_v21 = vpop.f32.mrf.mxu0 }
  0xc5   :  { %v171_v62 = vadd.f32 %v603_v21, %v614_v35 }
  0xc6   :  { %v605_v22 = vpop.f32.mrf.mxu0 }
  0xc7   :  { %v166_v0 = vadd.f32 %v614_v35, %v605_v22 }
  0xc8   :  { %v607_v23 = vpop.f32.mrf.mxu0 }
  0xc9   :  { %v181_v58 = vadd.f32 %v607_v23, %v614_v35 }
  0xca   :  { %v609_v24 = vpop.f32.mrf.mxu0 }
  0xcb   :  { %v176_v60 = vadd.f32 %v614_v35, %v609_v24 }
  0xcc   :  { %v409_v25 = vpop.f32.mrf.mxu0 }
  0xcd   :  { %v191_v54 = vadd.f32 %v409_v25, %v614_v35 }
  0xce   :  { %v185_v26 = vpop.f32.mrf.mxu0 }
  0xcf   :  { %v186_v56 = vadd.f32 %v614_v35, %v185_v26 }
  0xd0   :  { %v412_v27 = vpop.f32.mrf.mxu0 }
  0xd1   :  { %v201_v50 = vadd.f32 %v412_v27, %v614_v35 }
  0xd2   :  { %v195_v28 = vpop.f32.mrf.mxu0 }
  0xd3   :  { %v196_v52 = vadd.f32 %v614_v35, %v195_v28 }
  0xd4   :  { %v415_v29 = vpop.f32.mrf.mxu0 }
  0xd5   :  { %v211_v46 = vadd.f32 %v415_v29, %v614_v35 }
  0xd6   :  { %v205_v30 = vpop.f32.mrf.mxu0 }
  0xd7   :  { %v206_v48 = vadd.f32 %v614_v35, %v205_v30 }
  0xd8   :  { %v418_v31 = vpop.f32.mrf.mxu0 }
  0xd9   :  { %v221_v42 = vadd.f32 %v418_v31, %v614_v35 }
  0xda   :  { %v215_v32 = vpop.f32.mrf.mxu0 }
  0xdb   :  { %v216_v44 = vadd.f32 %v614_v35, %v215_v32 }
  0xdc   :  { %v421_v33 = vpop.f32.mrf.mxu0 }
  0xdd   :  { %v231_v40 = vadd.f32 %v421_v33, %v614_v35 }
  0xde   :  { %v225_v34 = vpop.f32.mrf.mxu0 }
  0xdf   :  { %v226_v41 = vadd.f32 %v614_v35, %v225_v34 }
  0xe0   :  { %v424_v36 = vpop.f32.mrf.mxu0 }
  0xe1   :  { %v241_v37 = vadd.f32 %v424_v36, %v614_v35 }
  0xe2   :  { %v235_v38 = vpop.f32.mrf.mxu0 }
  0xe3   :  { %464 = vtanh.f32 %v241_v37  ;;  %v236_v39 = vadd.f32 %v614_v35, %v235_v38 }
  0xe5   :  { %466 = vtanh.f32 %v236_v39 }
  0xe6   :  { %468 = vtanh.f32 %v231_v40 }
  0xe7   :  { %470 = vtanh.f32 %v226_v41 }
  0xe8   :  { %472 = vtanh.f32 %v221_v42 }
  0xe9   :  { %474 = vtanh.f32 %v216_v44 }
  0xea   :  { %476 = vtanh.f32 %v211_v46 }
  0xeb   :  { %478 = vtanh.f32 %v206_v48 }
  0xec   :  { %480 = vtanh.f32 %v201_v50 }
  0xed   :  { %482 = vtanh.f32 %v196_v52 }
  0xee   :  { %484 = vtanh.f32 %v191_v54 }
  0xef   :  { %486 = vtanh.f32 %v186_v56 }
  0xf0   :  { %v465_v43 = vpop.eup %464  ;;  %488 = vtanh.f32 %v181_v58 }
  0xf1   :  { %426 = vmatpush3.xpose.msra.mxu1 %v465_v43  ;;  %490 = vtanh.f32 %v176_v60 }
  0xf2   :  { %427 = vmatprep.subr.mxu1 %v498_v17  ;;  %v467_v45 = vpop.eup %466  ;;  %492 = vtanh.f32 %v171_v62 }
  0xf3   :  { %v469_v47 = vpop.eup %468  ;;  %494 = vtanh.f32 %v166_v0 }
  0xf4   :  { %v471_v49 = vpop.eup %470 }
  0xf5   :  { %428 = vmatpush3.xpose.msra.mxu1 %v467_v45  ;;  %v473_v51 = vpop.eup %472 }
  0xf6   :  { %429 = vmatprep.subr.mxu1 %v498_v17  ;;  %v475_v53 = vpop.eup %474 }
  0xf7   :  { %v477_v55 = vpop.eup %476 }
  0xf8   :  { %v479_v57 = vpop.eup %478 }
  0xf9   :  { %430 = vmatpush3.xpose.msra.mxu1 %v469_v47  ;;  %v481_v59 = vpop.eup %480 }
  0xfa   :  { %431 = vmatprep.subr.mxu1 %v498_v17  ;;  %v483_v61 = vpop.eup %482 }
  0xfb   :  { %v485_v63 = vpop.eup %484 }
  0xfc   :  { %v487_v1 = vpop.eup %486 }
  0xfd   :  { %432 = vmatpush3.xpose.msra.mxu1 %v471_v49  ;;  %v489_v2 = vpop.eup %488 }
  0xfe   :  { %433 = vmatprep.subr.mxu1 %v498_v17  ;;  %v491_v3 = vpop.eup %490 }
  0xff   :  { %v493_v4 = vpop.eup %492 }
 0x100   :  { %v495_v5 = vpop.eup %494 }
 0x101   :  { %434 = vmatpush3.xpose.msra.mxu1 %v473_v51 }
 0x102   :  { %435 = vmatprep.subr.mxu1 %v498_v17 }
 0x105   :  { %436 = vmatpush3.xpose.msra.mxu1 %v475_v53 }
 0x106   :  { %437 = vmatprep.subr.mxu1 %v498_v17 }
 0x109   :  { %438 = vmatpush3.xpose.msra.mxu1 %v477_v55 }
 0x10a   :  { %439 = vmatprep.subr.mxu1 %v498_v17 }
 0x10d   :  { %440 = vmatpush3.xpose.msra.mxu1 %v479_v57 }
 0x10e   :  { %441 = vmatprep.subr.mxu1 %v498_v17 }
 0x111   :  { %442 = vmatpush3.xpose.msra.mxu1 %v481_v59 }
 0x112   :  { %443 = vmatprep.subr.mxu1 %v498_v17 }
 0x115   :  { %444 = vmatpush3.xpose.msra.mxu1 %v483_v61 }
 0x116   :  { %445 = vmatprep.subr.mxu1 %v498_v17 }
 0x119   :  { %446 = vmatpush3.xpose.msra.mxu1 %v485_v63 }
 0x11a   :  { %447 = vmatprep.subr.mxu1 %v498_v17 }
 0x11d   :  { %448 = vmatpush3.xpose.msra.mxu1 %v487_v1 }
 0x11e   :  { %449 = vmatprep.subr.mxu1 %v498_v17 }
 0x121   :  { %450 = vmatpush3.xpose.msra.mxu1 %v489_v2 }
 0x122   :  { %451 = vmatprep.subr.mxu1 %v498_v17 }
 0x125   :  { %452 = vmatpush3.xpose.msra.mxu1 %v491_v3 }
 0x126   :  { %453 = vmatprep.subr.mxu1 %v498_v17 }
 0x129   :  { %454 = vmatpush3.xpose.msra.mxu1 %v493_v4 }
 0x12a   :  { %455 = vmatprep.subr.mxu1 %v498_v17 }
 0x12d   :  { %456 = vmatpush3.xpose.msra.mxu1 %v495_v5 }
 0x130   :  { %458 = vmatmul.mubr.f32.vlgmr.msra.gmra.mxu1 %v260_v6 }
 0x1f0   :  { %v337_v12 = vpop.f32.mrf.mxu1 }
 0x1f1   :  { %v338_v13 = vadd.f32 %v337_v12, %v270_v11 }
 0x1f2   :  { %v459_v14 = vpop.f32.mrf.mxu1 }
 0x1f3   :  { %496 = vtanh.f32 %v338_v13 }
 0x200   :  { %v497_v15 = vpop.eup %496 }
 0x201   :  { %342 = vst [vmem:[%s662_s5] sm:$0x1] %v497_v15 }

// kernel: hvn_forward.15
= control target key start
LH: loop header
LB: loop body
LE: loop exit
PB: predicated region body
PF: predicated region fallthrough
CT: control target
= control target key end

     0   :  { %v303_v3 = vmov 0.0   ;;  %vm38_vm0 = vcmask 130048   ;;  %v28_v39 = vlaneseq  ;;  %vm242_vm1 = vcmask 261120   ;;  %s462_s1 = inlined_call_operand.vmem [shape: f32[16,256], index: 1, kind: input, shape index: {}]   ;;  %s463_s0 = inlined_call_operand.vmem [shape: f32[16,16], index: 0, kind: input, shape index: {}]   ;;  %s464_s3 = inlined_call_operand.vmem [shape: f32[256,32], index: 3, kind: input, shape index: {}]   ;;  %s465_s2 = inlined_call_operand.vmem [shape: f32[1,256], index: 2, kind: input, shape index: {}]   ;;  %s466_s4 = inlined_call_operand.vmem [shape: f32[1,32], index: 4, kind: input, shape index: {}]   ;;  %s467_s5 = inlined_call_operand.vmem [shape: f32[16,32], index: 5, kind: output, shape index: {}]  }
   0x1   :  { %v25_v0 = vld [vmem:[%s462_s1 + $0x18] sm:$0xff]  ;;  %v24_v1 = vld [vmem:[%s462_s1 + $0x10] sm:$0xff]  ;;  %v23_v2 = vld [vmem:[%s462_s1 + $0x8] sm:$0xff]  ;;  %109 = vmatprep.mubr.f32.mxu0 %v303_v3 }
   0x2   :  { %73 = vmatprep.subr.mxu0 %v25_v0  ;;  %v22_v4 = vld [vmem:[%s462_s1] sm:$0xff]  ;;  %v157_v6 = vld [vmem:[%s464_s3 + $0xf8] sm:$0xff]  ;;  %v156_v8 = vld [vmem:[%s464_s3 + $0xf0] sm:$0xff]  ;;  %v29_v40 = vshrl.u32 %v28_v39, 7 }
   0x3   :  { %v20_v5 = vld [vmem:[%s463_s0] sm:$0xff]  ;;  %74 = vmatpush1.msra.mxu0 %v24_v1  ;;  %v141_v7 = vld [vmem:[%s464_s3 + $0x78] sm:$0xff]  ;;  %252 = vmatprep.subr.mxu1 %v157_v6  ;;  %v140_v9 = vld [vmem:[%s464_s3 + $0x70] sm:$0xff] }
   0x4   :  { %75 = vmatprep.subr.mxu0 %v23_v2  ;;  %253 = vmatpush3.msra.mxu1 %v141_v7  ;;  %v155_v10 = vld [vmem:[%s464_s3 + $0xe8] sm:$0xff]  ;;  %v154_v13 = vld [vmem:[%s464_s3 + $0xe0] sm:$0xff]  ;;  %v153_v15 = vld [vmem:[%s464_s3 + $0xd8] sm:$0xff]  ;;  %v30_v41 = vsub.s32 0, %v29_v40  ;;  %v34_v43 = vsub.s32 1, %v29_v40 }
   0x5   :  { %76 = vmatpush1.msra.mxu0 %v22_v4  ;;  %254 = vmatprep.subr.mxu1 %v156_v8  ;;  %v139_v11 = vld [vmem:[%s464_s3 + $0x68] sm:$0xff]  ;;  %v138_v14 = vld [vmem:[%s464_s3 + $0x60] sm:$0xff]  ;;  %v137_v16 = vld [vmem:[%s464_s3 + $0x58] sm:$0xff] }
   0x6   :  { %249 = vmatmul.mubr.msk.f32.vlgmr.msra.gmra.mxu0 %vm38_vm0, %v20_v5  ;;  %v21_v12 = vld [vmem:[%s463_s0 + $0x8] sm:$0xff]  ;;  %255 = vmatpush3.msra.mxu1 %v140_v9  ;;  %v152_v17 = vld [vmem:[%s464_s3 + $0xd0] sm:$0xff]  ;;  %v150_v21 = vld [vmem:[%s464_s3 + $0xc0] sm:$0xff] }
   0x7   :  { %115 = vmatprep.mubr.f32.mxu0 %v303_v3  ;;  %256 = vmatprep.subr.mxu1 %v155_v10  ;;  %v136_v18 = vld [vmem:[%s464_s3 + $0x50] sm:$0xff]  ;;  %v151_v19 = vld [vmem:[%s464_s3 + $0xc8] sm:$0xff]  ;;  %v134_v22 = vld [vmem:[%s464_s3 + $0x40] sm:$0xff] }
   0x8   :  { %257 = vmatpush3.msra.mxu1 %v139_v11  ;;  %v135_v20 = vld [vmem:[%s464_s3 + $0x48] sm:$0xff]  ;;  %v149_v23 = vld [vmem:[%s464_s3 + $0xb8] sm:$0xff]  ;;  %v148_v25 = vld [vmem:[%s464_s3 + $0xb0] sm:$0xff] }
   0x9   :  { %258 = vmatprep.subr.mxu1 %v154_v13  ;;  %v133_v24 = vld [vmem:[%s464_s3 + $0x38] sm:$0xff]  ;;  %v132_v26 = vld [vmem:[%s464_s3 + $0x30] sm:$0xff]  ;;  %v147_v27 = vld [vmem:[%s464_s3 + $0xa8] sm:$0xff] }
   0xa   :  { %250 = vmatmul.mubr.msk.f32.gmra.mxu0 %vm38_vm0, %v21_v12  ;;  %259 = vmatpush3.msra.mxu1 %v138_v14  ;;  %v131_v28 = vld [vmem:[%s464_s3 + $0x28] sm:$0xff]  ;;  %v146_v29 = vld [vmem:[%s464_s3 + $0xa0] sm:$0xff]  ;;  %v145_v31 = vld [vmem:[%s464_s3 + $0x98] sm:$0xff] }
   0xb   :  { %260 = vmatprep.subr.mxu1 %v153_v15  ;;  %v130_v30 = vld [vmem:[%s464_s3 + $0x20] sm:$0xff]  ;;  %v129_v32 = vld [vmem:[%s464_s3 + $0x18] sm:$0xff]  ;;  %v144_v33 = vld [vmem:[%s464_s3 + $0x90] sm:$0xff] }
   0xc   :  { %261 = vmatpush3.msra.mxu1 %v137_v16  ;;  %v128_v34 = vld [vmem:[%s464_s3 + $0x10] sm:$0xff]  ;;  %v143_v35 = vld [vmem:[%s464_s3 + $0x88] sm:$0xff]  ;;  %v142_v37 = vld [vmem:[%s464_s3 + $0x80] sm:$0xff] }
   0xd   :  { %262 = vmatprep.subr.mxu1 %v152_v17  ;;  %v127_v36 = vld [vmem:[%s464_s3 + $0x8] sm:$0xff]  ;;  %v126_v38 = vld [vmem:[%s464_s3] sm:$0xff] }
   0xe   :  { %263 = vmatpush3.msra.mxu1 %v136_v18  ;;  %v26_v42 = vld [vmem:[%s465_s2] sm:$0x3] }
   0xf   :  { %264 = vmatprep.subr.mxu1 %v151_v19  ;;  %v31_v44 = vrot.slane %v26_v42, %v30_v41  ;;  %v35_v45 = vrot.slane %v26_v42, %v34_v43  ;;  %v251_v59 = vld [vmem:[%s466_s4] ss:$0 sm:$0xff] }
  0x10   :  { %265 = vmatpush3.msra.mxu1 %v135_v20 }
  0x11   :  { %266 = vmatprep.subr.mxu1 %v150_v21 }
  0x12   :  { %267 = vmatpush3.msra.mxu1 %v134_v22 }
  0x13   :  { %268 = vmatprep.subr.mxu1 %v149_v23 }
  0x14   :  { %269 = vmatpush3.msra.mxu1 %v133_v24 }
  0x15   :  { %270 = vmatprep.subr.mxu1 %v148_v25 }
  0x16   :  { %271 = vmatpush3.msra.mxu1 %v132_v26 }
  0x17   :  { %272 = vmatprep.subr.mxu1 %v147_v27 }
  0x18   :  { %273 = vmatpush3.msra.mxu1 %v131_v28 }
  0x19   :  { %274 = vmatprep.subr.mxu1 %v146_v29 }
  0x1a   :  { %275 = vmatpush3.msra.mxu1 %v130_v30 }
  0x1b   :  { %276 = vmatprep.subr.mxu1 %v145_v31 }
  0x1c   :  { %277 = vmatpush3.msra.mxu1 %v129_v32 }
  0x1d   :  { %278 = vmatprep.subr.mxu1 %v144_v33 }
  0x1e   :  { %279 = vmatpush3.msra.mxu1 %v128_v34 }
  0x1f   :  { %280 = vmatprep.subr.mxu1 %v143_v35 }
  0x20   :  { %281 = vmatpush3.msra.mxu1 %v127_v36 }
  0x21   :  { %282 = vmatprep.subr.mxu1 %v142_v37 }
  0x22   :  { %283 = vmatpush3.msra.mxu1 %v126_v38 }
  0xc6   :  { %v111_v46 = vpop.f32.mrf.mxu0 }
  0xc7   :  { %v112_v47 = vadd.f32 %v111_v46, %v31_v44 }
  0xc8   :  { %v113_v48 = vpop.f32.mrf.mxu0 }
  0xc9   :  { %v114_v49 = vadd.f32 %v113_v48, %v35_v45 }
  0xca   :  { %v117_v50 = vpop.f32.mrf.mxu0 }
  0xcb   :  { %291 = vtanh.f32 %v114_v49  ;;  %v118_v51 = vadd.f32 %v117_v50, %v31_v44 }
  0xcc   :  { %293 = vtanh.f32 %v112_v47  ;;  %v119_v52 = vpop.f32.mrf.mxu0 }
  0xcd   :  { %v120_v53 = vadd.f32 %v119_v52, %v35_v45 }
  0xcf   :  { %295 = vtanh.f32 %v120_v53 }
  0xd0   :  { %297 = vtanh.f32 %v118_v51 }
  0xd8   :  { %v292_v54 = vpop.eup %291 }
  0xd9   :  { %v294_v55 = vpop.eup %293  ;;  %229 = vmatprep.mubr.f32.mxu1 %v292_v54 }
  0xda   :  { %230 = vmatmul.mubr.f32.vlgmr.msra.gmra.mxu1 %v294_v55 }
  0xdc   :  { %v296_v56 = vpop.eup %295 }
  0xdd   :  { %v298_v57 = vpop.eup %297  ;;  %234 = vmatprep.mubr.f32.mxu1 %v296_v56 }
  0xde   :  { %235 = vmatmul.mubr.f32.gmra.mxu1 %v298_v57 }
 0x19a   :  { %v284_v58 = vpop.f32.mrf.mxu1 }
 0x19c   :  { %v285_v60 = vpop.f32.mrf.mxu1 }
 0x19d   :  { %v286_v61 = vadd.f32 %v285_v60, %v284_v58 }
 0x19e   :  { %v287_v62 = vpop.f32.mrf.mxu1 }
 0x19f   :  { %v232_v63 = vadd.f32 %v286_v61, %v251_v59 }
 0x1a0   :  { %v288_v0 = vpop.f32.mrf.mxu1 }
 0x1a1   :  { %299 = vtanh.f32 %v232_v63  ;;  %v289_v1 = vadd.f32 %v288_v0, %v287_v62 }
 0x1a3   :  { %v237_v2 = vadd.f32 %v289_v1, %v251_v59 }
 0x1a5   :  { %301 = vtanh.f32 %v237_v2 }
 0x1ae   :  { %v300_v3 = vpop.eup %299 }
 0x1af   :  { %243 = vst.msk [vmem:[%s467_s5] sm:$0xff] %vm242_vm1, %v300_v3 }
 0x1b2   :  { %v302_v4 = vpop.eup %301 }
 0x1b3   :  { %244 = vst.msk [vmem:[%s467_s5 + $0x8] sm:$0xff] %vm242_vm1, %v302_v4 }

// kernel: hvn_forward.18
= control target key start
LH: loop header
LB: loop body
LE: loop exit
PB: predicated region body
PF: predicated region fallthrough
CT: control target
= control target key end

     0   :  { %s812_s21 = smov 0   ;;  %s814_s22 = smov 0   ;;  %s887_s0 = inlined_call_operand.vmem [shape: f32[2,8,8], index: 0, kind: input, shape index: {}]   ;;  %s888_s1 = inlined_call_operand.vmem [shape: f32[2,8,32], index: 1, kind: input, shape index: {}, may-alias: {1,2}]   ;;  %s889_s2 = inlined_call_operand.vmem [shape: f32[2,8,32], index: 2, kind: input, shape index: {}, may-alias: {1,2}]   ;;  %s890_s3 = inlined_call_operand.vmem [shape: f32[32,32], index: 3, kind: input, shape index: {}]   ;;  %s891_s4 = inlined_call_operand.vmem [shape: f32[32,32], index: 4, kind: input, shape index: {}]   ;;  %s892_s5 = inlined_call_operand.vmem [shape: f32[1,32], index: 5, kind: input, shape index: {}]   ;;  %s893_s6 = inlined_call_operand.vmem [shape: f32[2,8,32], index: 6, kind: output, shape index: {}]  }
   0x1   :  { %s816_s23 = smov 0  }
   0x2 LB: > { %s28_s24 = sadd.s32 1, %s769_s22  ;;  %p671_p0 = scmp.ge.s32.totalorder %s773_s23, 1  ;;  %s773_s23 = sphi %s816_s23, %s16_s23   ;;  %s769_s22 = sphi %s814_s22, %s895_s22   ;;  %s765_s21 = sphi %s812_s21, %s894_s21  }
   0x3   : > { %p30_p1 = scmp.ge.s32.totalorder %s28_s24, 2  ;;  %p253_p2 = scmp.lt.s32.totalorder %s773_s23, 3 }
   0x5   : > { %s897_s24 = smov (%p30_p1, %s28_s24), 0  ;;  %p254_p3 = pnand %p671_p0, %p253_p2 }
   0x6   : > { %p298_p4 = scmp.lt.s32.totalorder (!%p254_p3), %s765_s21, 1 }
   0x7   : > { %257 = sbr.rel (%p254_p3) target bundleno = 436 (0x1b4), region = 44 }
   0xc   : > { %v775_v0 = vmov 0.0   ;;  %vm776_vm0 = vmmov 0   ;;  %s899_s21 = smov (!%p298_p4, %s765_s21), 1  ;;  %vm325_vm1 = vcmask 64512   ;;  %v404_v3 = vld [vmem:[%s890_s3 + $0x18] sm:$0xff]  ;;  %v403_v5 = vld [vmem:[%s890_s3 + $0x10] sm:$0xff] }
   0xd   : > { %694 = vmatprep.subr.mxu0 %v775_v0  ;;  %696 = vmatprep.mubr.msk.f32.mxu0 %vm776_vm0, %v775_v0  ;;  %s830_s25 = sshll.u32 %s899_s21, 3  ;;  %v408_v4 = vld [vmem:[%s891_s4 + $0x18] sm:$0xff]  ;;  %v407_v6 = vld [vmem:[%s891_s4 + $0x10] sm:$0xff]  ;;  %v402_v7 = vld [vmem:[%s890_s3 + $0x8] sm:$0xff]  ;;  %vm409_vm2 = vcmask 261120  }
   0xe   : > { %699 = vmatprep.subr.mxu1 %v775_v0  ;;  %707 = vmatprep.mubr.msk.f32.mxu1 %vm776_vm0, %v775_v0  ;;  %s308_s28 = scalar_lea.vmem %s888_s1, %s830_s25  ;;  %s304_s7 = scalar_lea.vmem %s887_s0, %s830_s25  ;;  %v406_v8 = vld [vmem:[%s891_s4 + $0x8] sm:$0xff]  ;;  %v401_v9 = vld [vmem:[%s890_s3] sm:$0xff] }
   0xf   : > { %v324_v1 = vld [vmem:[%s308_s28] sm:$0xff]  ;;  %700 = vmatpush3.msra.mxu1 %v408_v4  ;;  %s315_s26 = scalar_lea.vmem %s889_s2, %s830_s25  ;;  %s322_s11 = scalar_lea.vmem %s893_s6, %s830_s25 }
  0x10   : > { %695 = vmatpush3.msra.mxu0 %v324_v1  ;;  %v323_v2 = vld [vmem:[%s304_s7] sm:$0xff]  ;;  %701 = vmatprep.subr.mxu1 %v775_v0 }
  0x11   : > { %697 = vmatmul.mubr.msk.f32.vlgmr.msra.gmra.mxu0 %vm325_vm1, %v323_v2  ;;  %710 = vmatprep.subr.mxu0 %v775_v0  ;;  %v405_v10 = vld [vmem:[%s891_s4] sm:$0xff] }
  0x12   : > { %718 = vmatprep.mubr.msk.f32.mxu0 %vm776_vm0, %v775_v0  ;;  %711 = vmatpush3.msra.mxu0 %v404_v3  ;;  %v400_v11 = vld [vmem:[%s315_s26] sm:$0xff] }
  0x13   : > { %712 = vmatprep.subr.mxu0 %v775_v0  ;;  %702 = vmatpush3.msra.mxu1 %v407_v6  ;;  %v679_v18 = vld [vmem:[%s892_s5] ss:$0 sm:$0xff] }
  0x14   : > { %713 = vmatpush3.msra.mxu0 %v403_v5  ;;  %703 = vmatprep.subr.mxu1 %v775_v0 }
  0x15   : > { %714 = vmatprep.subr.mxu0 %v775_v0  ;;  %704 = vmatpush3.msra.mxu1 %v406_v8 }
  0x16   : > { %715 = vmatpush3.msra.mxu0 %v402_v7  ;;  %705 = vmatprep.subr.mxu1 %v775_v0 }
  0x17   : > { %716 = vmatprep.subr.mxu0 %v775_v0  ;;  %706 = vmatpush3.msra.mxu1 %v405_v10 }
  0x18   : > { %717 = vmatpush3.msra.mxu0 %v401_v9 }
  0x19   : > { %719 = vmatmul.mubr.msk.f32.vlgmr.msra.gmra.mxu0 %vm409_vm2, %v400_v11 }
  0xd1   : > { %v395_v12 = vpop.f32.mrf.mxu0 }
  0xd2   : > { %747 = vtanh.f32 %v395_v12 }
  0xd3   : > { %v698_v13 = vpop.f32.mrf.mxu0 }
  0xd9   : > { %v552_v15 = vpop.f32.mrf.mxu0 }
  0xdb   : > { %v720_v16 = vpop.f32.mrf.mxu0 }
  0xdf   : > { %v748_v14 = vpop.eup %747 }
  0xe0   : > { %708 = vmatmul.mubr.msk.f32.vlgmr.msra.gmra.mxu1 %vm409_vm2, %v748_v14 }
 0x1a0   : > { %v479_v17 = vpop.f32.mrf.mxu1 }
 0x1a1   : > { %v553_v19 = vadd.f32 %v552_v15, %v479_v17 }
 0x1a2   : > { %v709_v20 = vpop.f32.mrf.mxu1 }
 0x1a3   : > { %v563_v21 = vadd.f32 %v679_v18, %v553_v19 }
 0x1a5   : > { %749 = vtanh.f32 %v563_v21 }
 0x1b2   : > { %v750_v22 = vpop.eup %749 }
 0x1b3   : > { %565 = vst.msk [vmem:[%s322_s11] sm:$0xff] %vm409_vm2, %v750_v22 }
 0x1b4 PF: > { %s16_s23 = sadd.s32 1, %s773_s23   ;;  %s894_s21 = smov %s769_s22 }
 0x1b5   : > { %p13_p5 = scmp.ge.s32.totalorder %s16_s23, 4   ;;  %s895_s22 = smov %s897_s24 }
 0x1b7   :  { %15 = sbr.rel (!%p13_p5) target bundleno = 2 (0x2), region = 80 }

// kernel: hvn_forward.21
= control target key start
LH: loop header
LB: loop body
LE: loop exit
PB: predicated region body
PF: predicated region fallthrough
CT: control target
= control target key end

     0   :  { %v517_v3 = vmov 0.0   ;;  %vm52_vm0 = vcmask 261120   ;;  %vm452_vm1 = vcmask 130048   ;;  %s778_s4 = inlined_call_operand.vmem [shape: f32[32,256], index: 4, kind: input, shape index: {}]   ;;  %s779_s1 = inlined_call_operand.vmem [shape: f32[16,32], index: 1, kind: input, shape index: {}]   ;;  %s780_s3 = inlined_call_operand.vmem [shape: f32[32,256], index: 3, kind: input, shape index: {}]   ;;  %s781_s0 = inlined_call_operand.vmem [shape: f32[16,32], index: 0, kind: input, shape index: {}]   ;;  %s782_s5 = inlined_call_operand.vmem [shape: f32[32,256], index: 5, kind: input, shape index: {}]   ;;  %s783_s2 = inlined_call_operand.vmem [shape: f32[16,32], index: 2, kind: input, shape index: {}]   ;;  %s784_s7 = inlined_call_operand.vmem [shape: f32[256,16], index: 7, kind: input, shape index: {}]   ;;  %s785_s6 = inlined_call_operand.vmem [shape: f32[1,256], index: 6, kind: input, shape index: {}]   ;;  %s786_s8 = inlined_call_operand.vmem [shape: f32[1,16], index: 8, kind: input, shape index: {}]   ;;  %s787_s9 = inlined_call_operand.vmem [shape: f32[16,16], index: 9, kind: output, shape index: {}]  }
   0x1   :  { %v51_v0 = vld [vmem:[%s778_s4 + $0x38] sm:$0xff]  ;;  %v50_v1 = vld [vmem:[%s778_s4 + $0x30] sm:$0xff]  ;;  %v49_v2 = vld [vmem:[%s778_s4 + $0x28] sm:$0xff]  ;;  %123 = vmatprep.mubr.f32.mxu0 %v517_v3 }
   0x2   :  { %83 = vmatprep.subr.mxu0 %v51_v0  ;;  %v48_v4 = vld [vmem:[%s778_s4 + $0x20] sm:$0xff]  ;;  %v47_v5 = vld [vmem:[%s778_s4 + $0x18] sm:$0xff]  ;;  %v46_v6 = vld [vmem:[%s778_s4 + $0x10] sm:$0xff] }
   0x3   :  { %84 = vmatpush1.msra.mxu0 %v50_v1  ;;  %v45_v7 = vld [vmem:[%s778_s4 + $0x8] sm:$0xff]  ;;  %v44_v8 = vld [vmem:[%s778_s4] sm:$0xff]  ;;  %v41_v10 = vld [vmem:[%s780_s3 + $0x38] sm:$0xff] }
   0x4   :  { %85 = vmatprep.subr.mxu0 %v49_v2  ;;  %v42_v9 = vld [vmem:[%s779_s1] sm:$0xff]  ;;  %v40_v11 = vld [vmem:[%s780_s3 + $0x30] sm:$0xff]  ;;  %v39_v12 = vld [vmem:[%s780_s3 + $0x28] sm:$0xff]  ;;  %v318_v2 = vlaneseq }
   0x5   :  { %86 = vmatpush1.msra.mxu0 %v48_v4  ;;  %v38_v13 = vld [vmem:[%s780_s3 + $0x20] sm:$0xff]  ;;  %v43_v14 = vld [vmem:[%s779_s1 + $0x8] sm:$0xff]  ;;  %v37_v15 = vld [vmem:[%s780_s3 + $0x18] sm:$0xff] }
   0x6   :  { %87 = vmatprep.subr.mxu0 %v47_v5  ;;  %v36_v16 = vld [vmem:[%s780_s3 + $0x10] sm:$0xff]  ;;  %v35_v17 = vld [vmem:[%s780_s3 + $0x8] sm:$0xff]  ;;  %v34_v18 = vld [vmem:[%s780_s3] sm:$0xff]  ;;  %v319_v5 = vshrl.u32 %v318_v2, 7 }
   0x7   :  { %88 = vmatpush1.msra.mxu0 %v46_v6  ;;  %v32_v19 = vld [vmem:[%s781_s0] sm:$0xff]  ;;  %v228_v20 = vld [vmem:[%s782_s5 + $0x38] sm:$0xff]  ;;  %v227_v21 = vld [vmem:[%s782_s5 + $0x30] sm:$0xff] }
   0x8   :  { %89 = vmatprep.subr.mxu0 %v45_v7  ;;  %v226_v22 = vld [vmem:[%s782_s5 + $0x28] sm:$0xff]  ;;  %v225_v23 = vld [vmem:[%s782_s5 + $0x20] sm:$0xff]  ;;  %v224_v25 = vld [vmem:[%s782_s5 + $0x18] sm:$0xff] }
   0x9   :  { %90 = vmatpush1.msra.mxu0 %v44_v8  ;;  %v33_v24 = vld [vmem:[%s781_s0 + $0x8] sm:$0xff]  ;;  %v223_v26 = vld [vmem:[%s782_s5 + $0x10] sm:$0xff]  ;;  %v221_v28 = vld [vmem:[%s782_s5] sm:$0xff]  ;;  %v320_v8 = vsub.s32 0, %v319_v5 }
   0xa   :  { %459 = vmatmul.mubr.msk.f32.vlgmr.msra.gmra.mxu0 %vm52_vm0, %v42_v9  ;;  %166 = vmatprep.subr.mxu0 %v41_v10  ;;  %v222_v27 = vld [vmem:[%s782_s5 + $0x8] sm:$0xff]  ;;  %v219_v29 = vld [vmem:[%s783_s2] sm:$0xff]  ;;  %v367_v31 = vld [vmem:[%s784_s7 + $0xf8] sm:$0xff]  ;;  %v324_v10 = vsub.s32 1, %v319_v5 }
   0xb   :  { %167 = vmatpush1.msra.mxu0 %v40_v11  ;;  %129 = vmatprep.mubr.f32.mxu0 %v517_v3  ;;  %v220_v30 = vld [vmem:[%s783_s2 + $0x8] sm:$0xff]  ;;  %v351_v32 = vld [vmem:[%s784_s7 + $0x78] sm:$0xff]  ;;  %v366_v33 = vld [vmem:[%s784_s7 + $0xf0] sm:$0xff] }
   0xc   :  { %168 = vmatprep.subr.mxu0 %v39_v12  ;;  %466 = vmatprep.subr.mxu1 %v367_v31  ;;  %v350_v34 = vld [vmem:[%s784_s7 + $0x70] sm:$0xff]  ;;  %v365_v35 = vld [vmem:[%s784_s7 + $0xe8] sm:$0xff]  ;;  %v364_v37 = vld [vmem:[%s784_s7 + $0xe0] sm:$0xff] }
   0xd   :  { %169 = vmatpush1.msra.mxu0 %v38_v13  ;;  %467 = vmatpush3.msra.mxu1 %v351_v32  ;;  %v349_v36 = vld [vmem:[%s784_s7 + $0x68] sm:$0xff]  ;;  %v348_v38 = vld [vmem:[%s784_s7 + $0x60] sm:$0xff]  ;;  %v363_v39 = vld [vmem:[%s784_s7 + $0xd8] sm:$0xff] }
   0xe   :  { %460 = vmatmul.mubr.msk.f32.gmra.mxu0 %vm52_vm0, %v43_v14  ;;  %170 = vmatprep.subr.mxu0 %v37_v15  ;;  %v347_v40 = vld [vmem:[%s784_s7 + $0x58] sm:$0xff]  ;;  %v362_v41 = vld [vmem:[%s784_s7 + $0xd0] sm:$0xff]  ;;  %v361_v43 = vld [vmem:[%s784_s7 + $0xc8] sm:$0xff] }
   0xf   :  { %171 = vmatpush1.msra.mxu0 %v36_v16  ;;  %206 = vmatprep.mubr.f32.mxu0 %v517_v3  ;;  %v346_v42 = vld [vmem:[%s784_s7 + $0x50] sm:$0xff]  ;;  %v345_v44 = vld [vmem:[%s784_s7 + $0x48] sm:$0xff]  ;;  %v360_v45 = vld [vmem:[%s784_s7 + $0xc0] sm:$0xff] }
  0x10   :  { %172 = vmatprep.subr.mxu0 %v35_v17  ;;  %468 = vmatprep.subr.mxu1 %v366_v33  ;;  %v344_v46 = vld [vmem:[%s784_s7 + $0x40] sm:$0xff]  ;;  %v359_v47 = vld [vmem:[%s784_s7 + $0xb8] sm:$0xff]  ;;  %v358_v49 = vld [vmem:[%s784_s7 + $0xb0] sm:$0xff] }
  0x11   :  { %173 = vmatpush1.msra.mxu0 %v34_v18  ;;  %469 = vmatpush3.msra.mxu1 %v350_v34  ;;  %v343_v48 = vld [vmem:[%s784_s7 + $0x38] sm:$0xff]  ;;  %v342_v50 = vld [vmem:[%s784_s7 + $0x30] sm:$0xff]  ;;  %v357_v51 = vld [vmem:[%s784_s7 + $0xa8] sm:$0xff] }
  0x12   :  { %461 = vmatmul.mubr.msk.f32.vlgmr.msra.gmra.mxu0 %vm52_vm0, %v32_v19  ;;  %259 = vmatprep.subr.mxu0 %v228_v20  ;;  %v341_v52 = vld [vmem:[%s784_s7 + $0x28] sm:$0xff]  ;;  %v356_v53 = vld [vmem:[%s784_s7 + $0xa0] sm:$0xff]  ;;  %v355_v55 = vld [vmem:[%s784_s7 + $0x98] sm:$0xff] }
  0x13   :  { %260 = vmatpush1.msra.mxu0 %v227_v21  ;;  %212 = vmatprep.mubr.f32.mxu0 %v517_v3  ;;  %v340_v54 = vld [vmem:[%s784_s7 + $0x20] sm:$0xff]  ;;  %v339_v56 = vld [vmem:[%s784_s7 + $0x18] sm:$0xff]  ;;  %v354_v57 = vld [vmem:[%s784_s7 + $0x90] sm:$0xff] }
  0x14   :  { %261 = vmatprep.subr.mxu0 %v226_v22  ;;  %470 = vmatprep.subr.mxu1 %v365_v35  ;;  %v338_v58 = vld [vmem:[%s784_s7 + $0x10] sm:$0xff]  ;;  %v353_v59 = vld [vmem:[%s784_s7 + $0x88] sm:$0xff]  ;;  %v352_v61 = vld [vmem:[%s784_s7 + $0x80] sm:$0xff] }
  0x15   :  { %262 = vmatpush1.msra.mxu0 %v225_v23  ;;  %471 = vmatpush3.msra.mxu1 %v349_v36  ;;  %v337_v60 = vld [vmem:[%s784_s7 + $0x8] sm:$0xff]  ;;  %v336_v62 = vld [vmem:[%s784_s7] sm:$0xff] }
  0x16   :  { %462 = vmatmul.mubr.msk.f32.gmra.mxu0 %vm52_vm0, %v33_v24  ;;  %263 = vmatprep.subr.mxu0 %v224_v25  ;;  %v316_v9 = vld [vmem:[%s785_s6] sm:$0x3] }
  0x17   :  { %264 = vmatpush1.msra.mxu0 %v223_v26  ;;  %299 = vmatprep.mubr.f32.mxu0 %v517_v3  ;;  %v321_v14 = vrot.slane %v316_v9, %v320_v8  ;;  %v325_v17 = vrot.slane %v316_v9, %v324_v10  ;;  %v465_v35 = vld [vmem:[%s786_s8] ss:$0 sm:$0xff] }
  0x18   :  { %265 = vmatprep.subr.mxu0 %v222_v27  ;;  %472 = vmatprep.subr.mxu1 %v364_v37 }
  0x19   :  { %266 = vmatpush1.msra.mxu0 %v221_v28  ;;  %473 = vmatpush3.msra.mxu1 %v348_v38 }
  0x1a   :  { %463 = vmatmul.mubr.msk.f32.vlgmr.msra.gmra.mxu0 %vm52_vm0, %v219_v29  ;;  %474 = vmatprep.subr.mxu1 %v363_v39 }
  0x1b   :  { %305 = vmatprep.mubr.f32.mxu0 %v517_v3  ;;  %475 = vmatpush3.msra.mxu1 %v347_v40 }
  0x1c   :  { %476 = vmatprep.subr.mxu1 %v362_v41 }
  0x1d   :  { %477 = vmatpush3.msra.mxu1 %v346_v42 }
  0x1e   :  { %464 = vmatmul.mubr.msk.f32.gmra.mxu0 %vm52_vm0, %v220_v30  ;;  %478 = vmatprep.subr.mxu1 %v361_v43 }
  0x1f   :  { %479 = vmatpush3.msra.mxu1 %v345_v44 }
  0x20   :  { %480 = vmatprep.subr.mxu1 %v360_v45 }
  0x21   :  { %481 = vmatpush3.msra.mxu1 %v344_v46 }
  0x22   :  { %482 = vmatprep.subr.mxu1 %v359_v47 }
  0x23   :  { %483 = vmatpush3.msra.mxu1 %v343_v48 }
  0x24   :  { %484 = vmatprep.subr.mxu1 %v358_v49 }
  0x25   :  { %485 = vmatpush3.msra.mxu1 %v342_v50 }
  0x26   :  { %486 = vmatprep.subr.mxu1 %v357_v51 }
  0x27   :  { %487 = vmatpush3.msra.mxu1 %v341_v52 }
  0x28   :  { %488 = vmatprep.subr.mxu1 %v356_v53 }
  0x29   :  { %489 = vmatpush3.msra.mxu1 %v340_v54 }
  0x2a   :  { %490 = vmatprep.subr.mxu1 %v355_v55 }
  0x2b   :  { %491 = vmatpush3.msra.mxu1 %v339_v56 }
  0x2c   :  { %492 = vmatprep.subr.mxu1 %v354_v57 }
  0x2d   :  { %493 = vmatpush3.msra.mxu1 %v338_v58 }
  0x2e   :  { %494 = vmatprep.subr.mxu1 %v353_v59 }
  0x2f   :  { %495 = vmatpush3.msra.mxu1 %v337_v60 }
  0x30   :  { %496 = vmatprep.subr.mxu1 %v352_v61 }
  0x31   :  { %497 = vmatpush3.msra.mxu1 %v336_v62 }
  0xca   :  { %v125_v63 = vpop.f32.mrf.mxu0 }
  0xcc   :  { %v127_v0 = vpop.f32.mrf.mxu0 }
  0xce   :  { %v131_v1 = vpop.f32.mrf.mxu0 }
  0xd0   :  { %v133_v3 = vpop.f32.mrf.mxu0 }
  0xd2   :  { %v208_v4 = vpop.f32.mrf.mxu0 }
  0xd3   :  { %v209_v12 = vadd.f32 %v208_v4, %v125_v63 }
  0xd4   :  { %v210_v6 = vpop.f32.mrf.mxu0 }
  0xd5   :  { %v211_v15 = vadd.f32 %v210_v6, %v127_v0 }
  0xd6   :  { %v214_v7 = vpop.f32.mrf.mxu0 }
  0xd7   :  { %v215_v19 = vadd.f32 %v214_v7, %v131_v1 }
  0xd8   :  { %v216_v11 = vpop.f32.mrf.mxu0 }
  0xd9   :  { %v217_v23 = vadd.f32 %v216_v11, %v133_v3 }
  0xda   :  { %v301_v13 = vpop.f32.mrf.mxu0 }
  0xdb   :  { %v312_v16 = vadd.f32 %v301_v13, %v209_v12 }
  0xdc   :  { %v303_v18 = vpop.f32.mrf.mxu0 }
  0xdd   :  { %v313_v20 = vadd.f32 %v303_v18, %v211_v15  ;;  %v328_v21 = vadd.f32 %v321_v14, %v312_v16 }
  0xde   :  { %v307_v22 = vpop.f32.mrf.mxu0 }
  0xdf   :  { %v329_v24 = vadd.f32 %v325_v17, %v313_v20  ;;  %v314_v25 = vadd.f32 %v307_v22, %v215_v19 }
  0xe0   :  { %v309_v26 = vpop.f32.mrf.mxu0 }
  0xe1   :  { %v315_v27 = vadd.f32 %v309_v26, %v217_v23  ;;  %505 = vtanh.f32 %v329_v24  ;;  %v330_v28 = vadd.f32 %v321_v14, %v314_v25 }
  0xe2   :  { %507 = vtanh.f32 %v328_v21 }
  0xe3   :  { %v331_v29 = vadd.f32 %v325_v17, %v315_v27 }
  0xe5   :  { %509 = vtanh.f32 %v331_v29 }
  0xe6   :  { %511 = vtanh.f32 %v330_v28 }
  0xee   :  { %v506_v30 = vpop.eup %505 }
  0xef   :  { %v508_v31 = vpop.eup %507  ;;  %439 = vmatprep.mubr.f32.mxu1 %v506_v30 }
  0xf0   :  { %440 = vmatmul.mubr.f32.vlgmr.msra.gmra.mxu1 %v508_v31 }
  0xf2   :  { %v510_v32 = vpop.eup %509 }
  0xf3   :  { %v512_v33 = vpop.eup %511  ;;  %444 = vmatprep.mubr.f32.mxu1 %v510_v32 }
  0xf4   :  { %445 = vmatmul.mubr.f32.gmra.mxu1 %v512_v33 }
 0x1b0   :  { %v498_v34 = vpop.f32.mrf.mxu1 }
 0x1b2   :  { %v499_v36 = vpop.f32.mrf.mxu1 }
 0x1b3   :  { %v500_v37 = vadd.f32 %v499_v36, %v498_v34 }
 0x1b4   :  { %v501_v38 = vpop.f32.mrf.mxu1 }
 0x1b5   :  { %v442_v39 = vadd.f32 %v500_v37, %v465_v35 }
 0x1b6   :  { %v502_v40 = vpop.f32.mrf.mxu1 }
 0x1b7   :  { %513 = vtanh.f32 %v442_v39  ;;  %v503_v41 = vadd.f32 %v502_v40, %v501_v38 }
 0x1b9   :  { %v447_v42 = vadd.f32 %v503_v41, %v465_v35 }
 0x1bb   :  { %515 = vtanh.f32 %v447_v42 }
 0x1c4   :  { %v514_v43 = vpop.eup %513 }
 0x1c5   :  { %453 = vst.msk [vmem:[%s787_s9] sm:$0xff] %vm452_vm1, %v514_v43 }
 0x1c8   :  { %v516_v44 = vpop.eup %515 }
 0x1c9   :  { %454 = vst.msk [vmem:[%s787_s9 + $0x8] sm:$0xff] %vm452_vm1, %v516_v44 }

// kernel: hvn_forward.23
= control target key start
LH: loop header
LB: loop body
LE: loop exit
PB: predicated region body
PF: predicated region fallthrough
CT: control target
= control target key end

     0   :  { %s374_s9 = smov 0   ;;  %s404_s0 = inlined_call_operand.vmem [shape: f32[2,2,8], index: 0, kind: input, shape index: {}]   ;;  %s405_s1 = inlined_call_operand.vmem [shape: f32[2,8,16], index: 1, kind: input, shape index: {}]   ;;  %s406_s2 = inlined_call_operand.vmem [shape: f32[2,2,16], index: 2, kind: output, shape index: {}]  }
   0x1 LB: > { %s317_s10 = sadd.s32 4294967295, %s355_s9   ;;  %p321_p0 = scmp.ge.s32.totalorder %s355_s9, 1  ;;  %s355_s9 = sphi %s374_s9, %s12_s9  }
   0x2   : > { %p120_p1 = scmp.lt.s32.totalorder %s355_s9, 3 }
   0x4   : > { %p121_p2 = pnand %p321_p0, %p120_p1 }
   0x5   : > { %p144_p3 = scmp.lt.s32.totalorder (!%p121_p2), %s317_s10, 1 }
   0x6   : > { %124 = sbr.rel (%p121_p2) target bundleno = 261 (0x105), region = 28 }
   0xb   : > { %v357_v0 = vmov 0.0   ;;  %vm358_vm0 = vmmov 0   ;;  %s408_s10 = smov (!%p144_p3, %s317_s10), 1  ;;  %vm158_vm1 = vcmask 64512   ;;  %vm233_vm2 = vcmask 123904  }
   0xc   : > { %330 = vmatprep.subr.mxu0 %v357_v0  ;;  %332 = vmatprep.mubr.msk.f32.mxu0 %vm358_vm0, %v357_v0  ;;  %s323_s11 = sshll.u32 %s408_s10, 3  ;;  %s322_s12 = sshll.u32 %s408_s10, 1 }
   0xd   : > { %s151_s15 = scalar_lea.vmem %s405_s1, %s323_s11  ;;  %s147_s18 = scalar_lea.vmem %s404_s0, %s322_s12 }
   0xe   : > { %v157_v1 = vld [vmem:[%s151_s15] sm:$0xff]  ;;  %s155_s21 = scalar_lea.vmem %s406_s2, %s322_s12 }
   0xf   : > { %v156_v2 = vld [vmem:[%s147_s18] sm:$0x3]  ;;  %331 = vmatpush3.msra.mxu0 %v157_v1 }
  0x10   : > { %333 = vmatmul.mubr.msk.f32.vlgmr.msra.gmra.mxu0 %vm158_vm1, %v156_v2 }
  0xd0   : > { %v228_v3 = vpop.f32.mrf.mxu0 }
  0xd1   : > { %v232_v4 = vmul.f32 %v228_v3, %v228_v3 }
  0xd2   : > { %v334_v5 = vpop.f32.mrf.mxu0 }
  0xd3   : > { %v234_v6 = vsel %vm233_vm2, %v232_v4, 0.0 }
  0xd4   : > { %v235_v7 = vrot.slane %v234_v6, 4 }
  0xd6   : > { %v236_v8 = vadd.f32 %v235_v7, %v234_v6 }
  0xd8   : > { %v237_v9 = vrot.slane %v236_v8, 2 }
  0xda   : > { %v238_v10 = vadd.f32 %v237_v9, %v236_v8 }
  0xdc   : > { %v239_v11 = vrot.slane %v238_v10, 1 }
  0xde   : > { %v240_v12 = vadd.f32 %v239_v11, %v238_v10 }
  0xe0   : > { %345 = vrsqrt.f32 %v240_v12  ;;  %vm243_vm3 = vcmp.eq.f32.partialorder %v240_v12, inf  ;;  %v246_v15 = vand.u32 2147483648, %v240_v12  ;;  %vm245_vm4 = vcmp.eq.f32.partialorder %v240_v12, 0.0 }
  0xed   : > { %v346_v13 = vpop.eup %345 }
  0xee   : > { %v242_v14 = vmul.f32 %v346_v13, %v240_v12 }
  0xf0   : > { %v244_v16 = vsel %vm243_vm3, %v240_v12, %v242_v14 }
  0xf1   : > { %v247_v17 = vsel %vm245_vm4, %v246_v15, %v244_v16 }
  0xf2   : > { %v248_v18 = vmax.f32 %v247_v17, 1e-12 }
  0xf4   : > { %347 = vrcp.f32 %v248_v18 }
 0x101   : > { %v348_v19 = vpop.eup %347 }
 0x102   : > { %v250_v20 = vmul.f32 %v348_v19, %v228_v3 }
 0x104   : > { %251 = vst.msk [vmem:[%s155_s21] sm:$0x3] %vm233_vm2, %v250_v20 }
 0x105 PF: > { %s12_s9 = sadd.s32 1, %s355_s9  }
 0x106   : > { %p9_p4 = scmp.ge.s32.totalorder %s12_s9, 4  }
 0x108   :  { %11 = sbr.rel (!%p9_p4) target bundleno = 1 (0x1), region = 61 }

// kernel: hvn_forward.22
= control target key start
LH: loop header
LB: loop body
LE: loop exit
PB: predicated region body
PF: predicated region fallthrough
CT: control target
= control target key end

     0   :  { %v394_v3 = vmov 0.0   ;;  %vm40_vm0 = vcmask 130048   ;;  %v30_v41 = vlaneseq  ;;  %vm278_vm1 = vcmask 261120   ;;  %s567_s1 = inlined_call_operand.vmem [shape: f32[16,256], index: 1, kind: input, shape index: {}]   ;;  %s568_s0 = inlined_call_operand.vmem [shape: f32[28,16], index: 0, kind: input, shape index: {}]   ;;  %s569_s3 = inlined_call_operand.vmem [shape: f32[256,32], index: 3, kind: input, shape index: {}]   ;;  %s570_s2 = inlined_call_operand.vmem [shape: f32[1,256], index: 2, kind: input, shape index: {}]   ;;  %s571_s4 = inlined_call_operand.vmem [shape: f32[1,32], index: 4, kind: input, shape index: {}]   ;;  %s572_s5 = inlined_call_operand.vmem [shape: f32[28,32], index: 5, kind: output, shape index: {}]  }
   0x1   :  { %v27_v0 = vld [vmem:[%s567_s1 + $0x18] sm:$0xff]  ;;  %v26_v1 = vld [vmem:[%s567_s1 + $0x10] sm:$0xff]  ;;  %v25_v2 = vld [vmem:[%s567_s1 + $0x8] sm:$0xff]  ;;  %117 = vmatprep.mubr.f32.mxu0 %v394_v3  ;;  %vm282_vm2 = vcmask 257024  }
   0x2   :  { %81 = vmatprep.subr.mxu0 %v27_v0  ;;  %v24_v4 = vld [vmem:[%s567_s1] sm:$0xff]  ;;  %v181_v6 = vld [vmem:[%s569_s3 + $0xf8] sm:$0xff]  ;;  %v180_v8 = vld [vmem:[%s569_s3 + $0xf0] sm:$0xff]  ;;  %v31_v42 = vshrl.u32 %v30_v41, 7 }
   0x3   :  { %82 = vmatpush1.msra.mxu0 %v26_v1  ;;  %v20_v5 = vld [vmem:[%s568_s0] sm:$0xff]  ;;  %v165_v7 = vld [vmem:[%s569_s3 + $0x78] sm:$0xff]  ;;  %337 = vmatprep.subr.mxu1 %v181_v6  ;;  %v164_v9 = vld [vmem:[%s569_s3 + $0x70] sm:$0xff] }
   0x4   :  { %83 = vmatprep.subr.mxu0 %v25_v2  ;;  %353 = vmatpush3.msra.mxu1 %v165_v7  ;;  %v21_v10 = vld [vmem:[%s568_s0 + $0x8] sm:$0xff]  ;;  %v178_v13 = vld [vmem:[%s569_s3 + $0xe0] sm:$0xff]  ;;  %v22_v15 = vld [vmem:[%s568_s0 + $0x10] sm:$0xff]  ;;  %v32_v43 = vsub.s32 0, %v31_v42  ;;  %v36_v45 = vsub.s32 1, %v31_v42 }
   0x5   :  { %84 = vmatpush1.msra.mxu0 %v24_v4  ;;  %v179_v11 = vld [vmem:[%s569_s3 + $0xe8] sm:$0xff]  ;;  %338 = vmatprep.subr.mxu1 %v180_v8  ;;  %v162_v14 = vld [vmem:[%s569_s3 + $0x60] sm:$0xff]  ;;  %v177_v16 = vld [vmem:[%s569_s3 + $0xd8] sm:$0xff] }
   0x6   :  { %288 = vmatmul.mubr.msk.f32.vlgmr.msra.gmra.mxu0 %vm40_vm0, %v20_v5  ;;  %293 = vmatprep.subr.mxu0 %v181_v6  ;;  %v163_v12 = vld [vmem:[%s569_s3 + $0x68] sm:$0xff]  ;;  %v161_v17 = vld [vmem:[%s569_s3 + $0x58] sm:$0xff]  ;;  %v176_v18 = vld [vmem:[%s569_s3 + $0xd0] sm:$0xff] }
   0x7   :  { %123 = vmatprep.mubr.f32.mxu0 %v394_v3  ;;  %294 = vmatpush3.msra.mxu0 %v165_v7  ;;  %v160_v19 = vld [vmem:[%s569_s3 + $0x50] sm:$0xff]  ;;  %v23_v20 = vld [vmem:[%s568_s0 + $0x18] sm:$0xf]  ;;  %v175_v21 = vld [vmem:[%s569_s3 + $0xc8] sm:$0xff] }
   0x8   :  { %295 = vmatprep.subr.mxu0 %v180_v8  ;;  %354 = vmatpush3.msra.mxu1 %v164_v9  ;;  %v159_v22 = vld [vmem:[%s569_s3 + $0x48] sm:$0xff]  ;;  %v174_v23 = vld [vmem:[%s569_s3 + $0xc0] sm:$0xff]  ;;  %v173_v25 = vld [vmem:[%s569_s3 + $0xb8] sm:$0xff] }
   0x9   :  { %296 = vmatpush3.msra.mxu0 %v164_v9  ;;  %339 = vmatprep.subr.mxu1 %v179_v11  ;;  %v158_v24 = vld [vmem:[%s569_s3 + $0x40] sm:$0xff]  ;;  %v157_v26 = vld [vmem:[%s569_s3 + $0x38] sm:$0xff]  ;;  %v172_v27 = vld [vmem:[%s569_s3 + $0xb0] sm:$0xff] }
   0xa   :  { %289 = vmatmul.mubr.msk.f32.gmra.mxu0 %vm40_vm0, %v21_v10  ;;  %297 = vmatprep.subr.mxu0 %v179_v11  ;;  %v156_v28 = vld [vmem:[%s569_s3 + $0x30] sm:$0xff]  ;;  %v171_v29 = vld [vmem:[%s569_s3 + $0xa8] sm:$0xff]  ;;  %v170_v31 = vld [vmem:[%s569_s3 + $0xa0] sm:$0xff] }
   0xb   :  { %129 = vmatprep.mubr.f32.mxu0 %v394_v3  ;;  %298 = vmatpush3.msra.mxu0 %v163_v12  ;;  %v155_v30 = vld [vmem:[%s569_s3 + $0x28] sm:$0xff]  ;;  %v154_v32 = vld [vmem:[%s569_s3 + $0x20] sm:$0xff]  ;;  %v169_v33 = vld [vmem:[%s569_s3 + $0x98] sm:$0xff] }
   0xc   :  { %299 = vmatprep.subr.mxu0 %v178_v13  ;;  %355 = vmatpush3.msra.mxu1 %v163_v12  ;;  %v153_v34 = vld [vmem:[%s569_s3 + $0x18] sm:$0xff]  ;;  %v168_v35 = vld [vmem:[%s569_s3 + $0x90] sm:$0xff]  ;;  %v167_v37 = vld [vmem:[%s569_s3 + $0x88] sm:$0xff] }
   0xd   :  { %300 = vmatpush3.msra.mxu0 %v162_v14  ;;  %340 = vmatprep.subr.mxu1 %v178_v13  ;;  %v152_v36 = vld [vmem:[%s569_s3 + $0x10] sm:$0xff]  ;;  %v151_v38 = vld [vmem:[%s569_s3 + $0x8] sm:$0xff]  ;;  %v166_v39 = vld [vmem:[%s569_s3 + $0x80] sm:$0xff] }
   0xe   :  { %290 = vmatmul.mubr.msk.f32.gmra.mxu0 %vm40_vm0, %v22_v15  ;;  %301 = vmatprep.subr.mxu0 %v177_v16  ;;  %v150_v40 = vld [vmem:[%s569_s3] sm:$0xff] }
   0xf   :  { %135 = vmatprep.mubr.f32.mxu0 %v394_v3  ;;  %302 = vmatpush3.msra.mxu0 %v161_v17  ;;  %v28_v44 = vld [vmem:[%s570_s2] sm:$0x3] }
  0x10   :  { %303 = vmatprep.subr.mxu0 %v176_v18  ;;  %356 = vmatpush3.msra.mxu1 %v162_v14  ;;  %v33_v46 = vrot.slane %v28_v44, %v32_v43  ;;  %v37_v47 = vrot.slane %v28_v44, %v36_v45  ;;  %v292_v9 = vld [vmem:[%s571_s4] ss:$0 sm:$0xff] }
  0x11   :  { %304 = vmatpush3.msra.mxu0 %v160_v19  ;;  %341 = vmatprep.subr.mxu1 %v177_v16 }
  0x12   :  { %291 = vmatmul.mubr.msk.f32.gmra.mxu0 %vm40_vm0, %v23_v20  ;;  %357 = vmatpush3.msra.mxu1 %v161_v17 }
  0x13   :  { %342 = vmatprep.subr.mxu1 %v176_v18  ;;  %305 = vmatprep.subr.mxu0 %v175_v21 }
  0x14   :  { %358 = vmatpush3.msra.mxu1 %v160_v19  ;;  %306 = vmatpush3.msra.mxu0 %v159_v22 }
  0x15   :  { %343 = vmatprep.subr.mxu1 %v175_v21  ;;  %307 = vmatprep.subr.mxu0 %v174_v23 }
  0x16   :  { %359 = vmatpush3.msra.mxu1 %v159_v22  ;;  %308 = vmatpush3.msra.mxu0 %v158_v24 }
  0x17   :  { %344 = vmatprep.subr.mxu1 %v174_v23  ;;  %309 = vmatprep.subr.mxu0 %v173_v25 }
  0x18   :  { %360 = vmatpush3.msra.mxu1 %v158_v24  ;;  %310 = vmatpush3.msra.mxu0 %v157_v26 }
  0x19   :  { %345 = vmatprep.subr.mxu1 %v173_v25  ;;  %311 = vmatprep.subr.mxu0 %v172_v27 }
  0x1a   :  { %361 = vmatpush3.msra.mxu1 %v157_v26  ;;  %312 = vmatpush3.msra.mxu0 %v156_v28 }
  0x1b   :  { %346 = vmatprep.subr.mxu1 %v172_v27  ;;  %313 = vmatprep.subr.mxu0 %v171_v29 }
  0x1c   :  { %362 = vmatpush3.msra.mxu1 %v156_v28  ;;  %314 = vmatpush3.msra.mxu0 %v155_v30 }
  0x1d   :  { %347 = vmatprep.subr.mxu1 %v171_v29  ;;  %315 = vmatprep.subr.mxu0 %v170_v31 }
  0x1e   :  { %363 = vmatpush3.msra.mxu1 %v155_v30  ;;  %316 = vmatpush3.msra.mxu0 %v154_v32 }
  0x1f   :  { %348 = vmatprep.subr.mxu1 %v170_v31  ;;  %317 = vmatprep.subr.mxu0 %v169_v33 }
  0x20   :  { %364 = vmatpush3.msra.mxu1 %v154_v32  ;;  %318 = vmatpush3.msra.mxu0 %v153_v34 }
  0x21   :  { %349 = vmatprep.subr.mxu1 %v169_v33  ;;  %319 = vmatprep.subr.mxu0 %v168_v35 }
  0x22   :  { %365 = vmatpush3.msra.mxu1 %v153_v34  ;;  %320 = vmatpush3.msra.mxu0 %v152_v36 }
  0x23   :  { %350 = vmatprep.subr.mxu1 %v168_v35  ;;  %321 = vmatprep.subr.mxu0 %v167_v37 }
  0x24   :  { %366 = vmatpush3.msra.mxu1 %v152_v36  ;;  %322 = vmatpush3.msra.mxu0 %v151_v38 }
  0x25   :  { %351 = vmatprep.subr.mxu1 %v167_v37  ;;  %323 = vmatprep.subr.mxu0 %v166_v39 }
  0x26   :  { %367 = vmatpush3.msra.mxu1 %v151_v38  ;;  %324 = vmatpush3.msra.mxu0 %v150_v40 }
  0x27   :  { %352 = vmatprep.subr.mxu1 %v166_v39 }
  0x28   :  { %368 = vmatpush3.msra.mxu1 %v150_v40 }
  0xc6   :  { %v119_v48 = vpop.f32.mrf.mxu0 }
  0xc7   :  { %v120_v49 = vadd.f32 %v119_v48, %v33_v46 }
  0xc8   :  { %v121_v50 = vpop.f32.mrf.mxu0 }
  0xc9   :  { %v122_v51 = vadd.f32 %v121_v50, %v37_v47 }
  0xca   :  { %v125_v52 = vpop.f32.mrf.mxu0 }
  0xcb   :  { %370 = vtanh.f32 %v122_v51  ;;  %v126_v53 = vadd.f32 %v125_v52, %v33_v46 }
  0xcc   :  { %372 = vtanh.f32 %v120_v49  ;;  %v127_v54 = vpop.f32.mrf.mxu0 }
  0xcd   :  { %v128_v55 = vadd.f32 %v127_v54, %v37_v47 }
  0xce   :  { %v131_v56 = vpop.f32.mrf.mxu0 }
  0xcf   :  { %374 = vtanh.f32 %v128_v55  ;;  %v132_v57 = vadd.f32 %v131_v56, %v33_v46 }
  0xd0   :  { %376 = vtanh.f32 %v126_v53  ;;  %v133_v58 = vpop.f32.mrf.mxu0 }
  0xd1   :  { %v134_v59 = vadd.f32 %v133_v58, %v37_v47 }
  0xd2   :  { %v137_v60 = vpop.f32.mrf.mxu0 }
  0xd3   :  { %378 = vtanh.f32 %v134_v59  ;;  %v138_v61 = vadd.f32 %v137_v60, %v33_v46 }
  0xd4   :  { %380 = vtanh.f32 %v132_v57  ;;  %v139_v62 = vpop.f32.mrf.mxu0 }
  0xd5   :  { %v140_v63 = vadd.f32 %v139_v62, %v37_v47 }
  0xd7   :  { %382 = vtanh.f32 %v140_v63 }
  0xd8   :  { %v371_v0 = vpop.eup %370  ;;  %384 = vtanh.f32 %v138_v61 }
  0xd9   :  { %v373_v1 = vpop.eup %372  ;;  %253 = vmatprep.mubr.f32.mxu0 %v371_v0 }
  0xda   :  { %254 = vmatmul.mubr.f32.vlgmr.msra.gmra.mxu0 %v373_v1 }
  0xdc   :  { %v375_v2 = vpop.eup %374 }
  0xdd   :  { %v377_v3 = vpop.eup %376  ;;  %258 = vmatprep.mubr.f32.mxu1 %v375_v2 }
  0xde   :  { %259 = vmatmul.mubr.f32.vlgmr.msra.gmra.mxu1 %v377_v3 }
  0xe0   :  { %v379_v4 = vpop.eup %378 }
  0xe1   :  { %v381_v5 = vpop.eup %380  ;;  %263 = vmatprep.mubr.f32.mxu1 %v379_v4 }
  0xe2   :  { %264 = vmatmul.mubr.f32.gmra.mxu1 %v381_v5 }
  0xe4   :  { %v383_v6 = vpop.eup %382 }
  0xe5   :  { %v385_v7 = vpop.eup %384  ;;  %268 = vmatprep.mubr.f32.mxu1 %v383_v6 }
  0xe6   :  { %269 = vmatmul.mubr.f32.gmra.mxu1 %v385_v7 }
 0x19a   :  { %v325_v8 = vpop.f32.mrf.mxu0 }
 0x19c   :  { %v326_v10 = vpop.f32.mrf.mxu0 }
 0x19d   :  { %v327_v11 = vadd.f32 %v326_v10, %v325_v8 }
 0x19e   :  { %v328_v12 = vpop.f32.mrf.mxu1 }
 0x19f   :  { %v256_v13 = vadd.f32 %v327_v11, %v292_v9 }
 0x1a0   :  { %v329_v14 = vpop.f32.mrf.mxu1 }
 0x1a1   :  { %386 = vtanh.f32 %v256_v13  ;;  %v330_v15 = vadd.f32 %v329_v14, %v328_v12 }
 0x1a2   :  { %v331_v16 = vpop.f32.mrf.mxu1 }
 0x1a3   :  { %v261_v17 = vadd.f32 %v330_v15, %v292_v9 }
 0x1a4   :  { %v332_v18 = vpop.f32.mrf.mxu1 }
 0x1a5   :  { %388 = vtanh.f32 %v261_v17  ;;  %v333_v19 = vadd.f32 %v332_v18, %v331_v16 }
 0x1a6   :  { %v334_v20 = vpop.f32.mrf.mxu1 }
 0x1a7   :  { %v266_v21 = vadd.f32 %v333_v19, %v292_v9 }
 0x1a8   :  { %v335_v22 = vpop.f32.mrf.mxu1 }
 0x1a9   :  { %390 = vtanh.f32 %v266_v21  ;;  %v336_v23 = vadd.f32 %v335_v22, %v334_v20 }
 0x1ab   :  { %v271_v24 = vadd.f32 %v336_v23, %v292_v9 }
 0x1ad   :  { %392 = vtanh.f32 %v271_v24 }
 0x1ae   :  { %v387_v25 = vpop.eup %386 }
 0x1af   :  { %279 = vst.msk [vmem:[%s572_s5] sm:$0xff] %vm278_vm1, %v387_v25 }
 0x1b2   :  { %v389_v26 = vpop.eup %388 }
 0x1b3   :  { %280 = vst.msk [vmem:[%s572_s5 + $0x8] sm:$0xff] %vm278_vm1, %v389_v26 }
 0x1b6   :  { %v391_v27 = vpop.eup %390 }
 0x1b7   :  { %281 = vst.msk [vmem:[%s572_s5 + $0x10] sm:$0xff] %vm278_vm1, %v391_v27 }
 0x1ba   :  { %v393_v28 = vpop.eup %392 }
 0x1bb   :  { %283 = vst.msk [vmem:[%s572_s5 + $0x18] sm:$0xf] %vm282_vm2, %v393_v28 }

// kernel: hvn_forward.24
= control target key start
LH: loop header
LB: loop body
LE: loop exit
PB: predicated region body
PF: predicated region fallthrough
CT: control target
= control target key end

     0   :  { %s737_s15 = smov 0   ;;  %s739_s16 = smov 0   ;;  %s799_s0 = inlined_call_operand.vmem [shape: f32[2,14,1], index: 0, kind: input, shape index: {}]   ;;  %s800_s1 = inlined_call_operand.vmem [shape: f32[2,14,14], index: 1, kind: input, shape index: {}]   ;;  %s801_s2 = inlined_call_operand.vmem [shape: f32[2,14,32], index: 2, kind: input, shape index: {}]   ;;  %s802_s3 = inlined_call_operand.vmem [shape: f32[32,32], index: 3, kind: input, shape index: {}]   ;;  %s803_s4 = inlined_call_operand.vmem [shape: f32[2,14,32], index: 4, kind: output, shape index: {}]  }
   0x1   :  { %s741_s17 = smov 0  }
   0x2 LB: > { %s26_s18 = sadd.s32 1, %s705_s16  ;;  %p609_p0 = scmp.ge.s32.totalorder %s709_s17, 1  ;;  %s709_s17 = sphi %s741_s17, %s14_s17   ;;  %s705_s16 = sphi %s739_s16, %s805_s16   ;;  %s701_s15 = sphi %s737_s15, %s804_s15  }
   0x3   : > { %p28_p1 = scmp.ge.s32.totalorder %s26_s18, 2  ;;  %p210_p2 = scmp.lt.s32.totalorder %s709_s17, 3 }
   0x5   : > { %s807_s18 = smov (%p28_p1, %s26_s18), 0  ;;  %p211_p3 = pnand %p609_p0, %p210_p2 }
   0x6   : > { %p259_p4 = scmp.lt.s32.totalorder (!%p211_p3), %s701_s15, 1 }
   0x7   : > { %214 = sbr.rel (%p211_p3) target bundleno = 430 (0x1ae), region = 36 }
   0xc   : > { %v298_v0 = vld [vmem:[%s802_s3 + $0x18] sm:$0xff]  ;;  %v297_v1 = vld [vmem:[%s802_s3 + $0x10] sm:$0xff]  ;;  %v296_v2 = vld [vmem:[%s802_s3 + $0x8] sm:$0xff]  ;;  %s809_s15 = smov (!%p259_p4, %s701_s15), 1  ;;  %vm299_vm0 = vcmask 261120   ;;  %vm385_vm1 = vcmask 113664  }
   0xd   : > { %639 = vmatprep.subr.mxu0 %v298_v0  ;;  %v295_v3 = vld [vmem:[%s802_s3] sm:$0xff]  ;;  %s767_s27 = sshll.u32 %s809_s15, 4  ;;  %v711_v7 = vmov 0   ;;  %vm392_vm2 = vcmask 1045504   ;;  %vm486_vm3 = vcmask 259072  }
   0xe   : > { %640 = vmatpush3.msra.mxu0 %v298_v0  ;;  %s282_s30 = scalar_lea.vmem %s801_s2, %s767_s27  ;;  %s276_s7 = scalar_lea.vmem %s800_s1, %s767_s27  ;;  %682 = vset.pattern.permute.xlu0 %v711_v7 }
   0xf   : > { %641 = vmatprep.subr.mxu0 %v297_v1  ;;  %v293_v4 = vld [vmem:[%s282_s30] sm:$0xff]  ;;  %v294_v5 = vld [vmem:[%s282_s30 + $0x8] sm:$0x3f]  ;;  %s266_s10 = scalar_lea.vmem %s799_s0, %s767_s27  ;;  %s291_s13 = scalar_lea.vmem %s803_s4, %s767_s27 }
  0x10   : > { %642 = vmatpush3.msra.mxu0 %v297_v1  ;;  %647 = vmatprep.mubr.msk.f32.mxu0 %vm299_vm0, %v293_v4  ;;  %v383_v6 = vld [vmem:[%s276_s7] sm:$0xff]  ;;  %v382_v9 = vld [vmem:[%s266_s10 + $0x8] sm:$0x3f] }
  0x11   : > { %643 = vmatprep.subr.mxu0 %v296_v2  ;;  %654 = vmatprep.mubr.msk.f32.mxu1 %vm385_vm1, %v383_v6  ;;  %v381_v8 = vld [vmem:[%s266_s10] sm:$0xff]  ;;  %v384_v12 = vld [vmem:[%s276_s7 + $0x8] sm:$0x3f] }
  0x12   : > { %644 = vmatpush3.msra.mxu0 %v296_v2  ;;  %473 = vperm.xlu0 %682, %v381_v8  }
  0x13   : > { %645 = vmatprep.subr.mxu0 %v295_v3 }
  0x14   : > { %646 = vmatpush3.msra.mxu0 %v295_v3 }
  0x15   : > { %648 = vmatmul.mubr.msk.f32.vlgmr.msra.gmra.mxu0 %vm299_vm0, %v294_v5 }
  0x16   : > { %478 = vperm.xlu0 %682, %v382_v9  }
  0x8d   : > { %v474_v13 = vpop.permute.xlu0 %473 }
  0x91   : > { %v479_v14 = vpop.permute.xlu0 %478 }
  0xd5   : > { %v649_v10 = vpop.f32.mrf.mxu0 }
  0xd6   : > { %650 = vmatprep.subr.msk.mxu1 %vm392_vm2, %v649_v10 }
  0xd7   : > { %v372_v11 = vpop.f32.mrf.mxu0  ;;  %651 = vmatpush3.msk.msra.mxu1 %vm392_vm2, %v649_v10 }
  0xd8   : > { %652 = vmatprep.subr.mxu1 %v372_v11 }
  0xd9   : > { %653 = vmatpush3.msra.mxu1 %v372_v11 }
  0xda   : > { %655 = vmatmul.mubr.msk.f32.vlgmr.msra.gmra.mxu1 %vm385_vm1, %v384_v12 }
 0x19a   : > { %v656_v15 = vpop.f32.mrf.mxu1 }
 0x19b   : > { %v482_v16 = vmul.f32 %v656_v15, %v479_v14 }
 0x19c   : > { %v462_v17 = vpop.f32.mrf.mxu1 }
 0x19d   : > { %683 = vtanh.f32 %v482_v16  ;;  %v481_v18 = vmul.f32 %v474_v13, %v462_v17 }
 0x19f   : > { %685 = vtanh.f32 %v481_v18 }
 0x1aa   : > { %v684_v19 = vpop.eup %683 }
 0x1ab   : > { %487 = vst.msk [vmem:[%s291_s13 + $0x8] sm:$0x3f] %vm486_vm3, %v684_v19 }
 0x1ac   : > { %v686_v20 = vpop.eup %685 }
 0x1ad   : > { %485 = vst.msk [vmem:[%s291_s13] sm:$0xff] %vm299_vm0, %v686_v20 }
 0x1ae PF: > { %s14_s17 = sadd.s32 1, %s709_s17   ;;  %s804_s15 = smov %s705_s16 }
 0x1af   : > { %p11_p5 = scmp.ge.s32.totalorder %s14_s17, 4   ;;  %s805_s16 = smov %s807_s18 }
 0x1b1   :  { %13 = sbr.rel (!%p11_p5) target bundleno = 2 (0x2), region = 72 }

// kernel: hvn_forward.26
= control target key start
LH: loop header
LB: loop body
LE: loop exit
PB: predicated region body
PF: predicated region fallthrough
CT: control target
= control target key end

     0   :  { %v628_v3 = vmov 0.0   ;;  %vm56_vm0 = vcmask 261120   ;;  %vm536_vm1 = vcmask 130048   ;;  %vm540_vm2 = vcmask 125952   ;;  %s925_s4 = inlined_call_operand.vmem [shape: f32[32,256], index: 4, kind: input, shape index: {}]   ;;  %s926_s3 = inlined_call_operand.vmem [shape: f32[32,256], index: 3, kind: input, shape index: {}]   ;;  %s927_s1 = inlined_call_operand.vmem [shape: f32[28,32], index: 1, kind: input, shape index: {}]   ;;  %s928_s0 = inlined_call_operand.vmem [shape: f32[28,32], index: 0, kind: input, shape index: {}]   ;;  %s929_s5 = inlined_call_operand.vmem [shape: f32[32,256], index: 5, kind: input, shape index: {}]   ;;  %s930_s2 = inlined_call_operand.vmem [shape: f32[28,32], index: 2, kind: input, shape index: {}]   ;;  %s931_s7 = inlined_call_operand.vmem [shape: f32[256,16], index: 7, kind: input, shape index: {}]   ;;  %s932_s6 = inlined_call_operand.vmem [shape: f32[1,256], index: 6, kind: input, shape index: {}]   ;;  %s933_s8 = inlined_call_operand.vmem [shape: f32[1,16], index: 8, kind: input, shape index: {}]   ;;  %s934_s9 = inlined_call_operand.vmem [shape: f32[28,16], index: 9, kind: output, shape index: {}]  }
   0x1   :  { %v55_v0 = vld [vmem:[%s925_s4 + $0x38] sm:$0xff]  ;;  %v54_v2 = vld [vmem:[%s925_s4 + $0x30] sm:$0xff]  ;;  %133 = vmatprep.mubr.f32.mxu0 %v628_v3  ;;  %234 = vmatprep.mubr.f32.mxu1 %v628_v3  ;;  %v53_v5 = vld [vmem:[%s925_s4 + $0x28] sm:$0xff] }
   0x2   :  { %v43_v1 = vld [vmem:[%s926_s3 + $0x38] sm:$0xff]  ;;  %93 = vmatprep.subr.mxu0 %v55_v0  ;;  %v42_v4 = vld [vmem:[%s926_s3 + $0x30] sm:$0xff]  ;;  %v41_v6 = vld [vmem:[%s926_s3 + $0x28] sm:$0xff] }
   0x3   :  { %194 = vmatprep.subr.mxu1 %v43_v1  ;;  %94 = vmatpush1.msra.mxu0 %v54_v2  ;;  %v52_v7 = vld [vmem:[%s925_s4 + $0x20] sm:$0xff]  ;;  %v51_v9 = vld [vmem:[%s925_s4 + $0x18] sm:$0xff]  ;;  %v50_v11 = vld [vmem:[%s925_s4 + $0x10] sm:$0xff] }
   0x4   :  { %195 = vmatpush1.msra.mxu1 %v42_v4  ;;  %v40_v8 = vld [vmem:[%s926_s3 + $0x20] sm:$0xff]  ;;  %95 = vmatprep.subr.mxu0 %v53_v5  ;;  %v39_v10 = vld [vmem:[%s926_s3 + $0x18] sm:$0xff]  ;;  %v38_v12 = vld [vmem:[%s926_s3 + $0x10] sm:$0xff] }
   0x5   :  { %196 = vmatprep.subr.mxu1 %v41_v6  ;;  %96 = vmatpush1.msra.mxu0 %v52_v7  ;;  %v49_v13 = vld [vmem:[%s925_s4 + $0x8] sm:$0xff]  ;;  %v48_v15 = vld [vmem:[%s925_s4] sm:$0xff]  ;;  %v270_v19 = vld [vmem:[%s929_s5 + $0x38] sm:$0xff] }
   0x6   :  { %197 = vmatpush1.msra.mxu1 %v40_v8  ;;  %v37_v14 = vld [vmem:[%s926_s3 + $0x8] sm:$0xff]  ;;  %97 = vmatprep.subr.mxu0 %v51_v9  ;;  %v36_v16 = vld [vmem:[%s926_s3] sm:$0xff]  ;;  %v269_v20 = vld [vmem:[%s929_s5 + $0x30] sm:$0xff] }
   0x7   :  { %198 = vmatprep.subr.mxu1 %v39_v10  ;;  %98 = vmatpush1.msra.mxu0 %v50_v11  ;;  %v44_v17 = vld [vmem:[%s927_s1] sm:$0xff]  ;;  %v268_v21 = vld [vmem:[%s929_s5 + $0x28] sm:$0xff]  ;;  %v266_v25 = vld [vmem:[%s929_s5 + $0x18] sm:$0xff]  ;;  %v382_v10 = vlaneseq }
   0x8   :  { %199 = vmatpush1.msra.mxu1 %v38_v12  ;;  %v32_v18 = vld [vmem:[%s928_s0] sm:$0xff]  ;;  %99 = vmatprep.subr.mxu0 %v49_v13  ;;  %v45_v22 = vld [vmem:[%s927_s1 + $0x8] sm:$0xff]  ;;  %v265_v26 = vld [vmem:[%s929_s5 + $0x10] sm:$0xff] }
   0x9   :  { %200 = vmatprep.subr.mxu1 %v37_v14  ;;  %100 = vmatpush1.msra.mxu0 %v48_v15  ;;  %v33_v23 = vld [vmem:[%s928_s0 + $0x8] sm:$0xff]  ;;  %v267_v24 = vld [vmem:[%s929_s5 + $0x20] sm:$0xff]  ;;  %v46_v27 = vld [vmem:[%s927_s1 + $0x10] sm:$0xff]  ;;  %v383_v14 = vshrl.u32 %v382_v10, 7 }
   0xa   :  { %201 = vmatpush1.msra.mxu1 %v36_v16  ;;  %546 = vmatmul.mubr.msk.f32.vlgmr.msra.gmra.mxu0 %vm56_vm0, %v44_v17  ;;  %v34_v28 = vld [vmem:[%s928_s0 + $0x10] sm:$0xff]  ;;  %v264_v29 = vld [vmem:[%s929_s5 + $0x8] sm:$0xff]  ;;  %v263_v30 = vld [vmem:[%s929_s5] sm:$0xff] }
   0xb   :  { %550 = vmatmul.mubr.msk.f32.vlgmr.msra.gmra.mxu1 %vm56_vm0, %v32_v18  ;;  %307 = vmatprep.subr.mxu0 %v270_v19  ;;  %v47_v31 = vld [vmem:[%s927_s1 + $0x18] sm:$0xf]  ;;  %v259_v33 = vld [vmem:[%s930_s2] sm:$0xff]  ;;  %v260_v34 = vld [vmem:[%s930_s2 + $0x8] sm:$0xff]  ;;  %v384_v18 = vsub.s32 0, %v383_v14 }
   0xc   :  { %139 = vmatprep.mubr.f32.mxu0 %v628_v3  ;;  %308 = vmatpush1.msra.mxu0 %v269_v20  ;;  %v35_v32 = vld [vmem:[%s928_s0 + $0x18] sm:$0xf]  ;;  %v261_v35 = vld [vmem:[%s930_s2 + $0x10] sm:$0xff]  ;;  %v437_v41 = vld [vmem:[%s931_s7 + $0xe8] sm:$0xff]  ;;  %v388_v20 = vsub.s32 1, %v383_v14 }
   0xd   :  { %240 = vmatprep.mubr.f32.mxu1 %v628_v3  ;;  %309 = vmatprep.subr.mxu0 %v268_v21  ;;  %v262_v36 = vld [vmem:[%s930_s2 + $0x18] sm:$0xf]  ;;  %v438_v39 = vld [vmem:[%s931_s7 + $0xf0] sm:$0xff]  ;;  %v421_v42 = vld [vmem:[%s931_s7 + $0x68] sm:$0xff] }
   0xe   :  { %547 = vmatmul.mubr.msk.f32.gmra.mxu0 %vm56_vm0, %v45_v22  ;;  %v439_v37 = vld [vmem:[%s931_s7 + $0xf8] sm:$0xff]  ;;  %v422_v40 = vld [vmem:[%s931_s7 + $0x70] sm:$0xff]  ;;  %v436_v43 = vld [vmem:[%s931_s7 + $0xe0] sm:$0xff] }
   0xf   :  { %551 = vmatmul.mubr.msk.f32.gmra.mxu1 %vm56_vm0, %v33_v23  ;;  %310 = vmatpush1.msra.mxu0 %v267_v24  ;;  %v423_v38 = vld [vmem:[%s931_s7 + $0x78] sm:$0xff]  ;;  %v420_v44 = vld [vmem:[%s931_s7 + $0x60] sm:$0xff]  ;;  %v434_v47 = vld [vmem:[%s931_s7 + $0xd0] sm:$0xff] }
  0x10   :  { %145 = vmatprep.mubr.f32.mxu0 %v628_v3  ;;  %246 = vmatprep.mubr.f32.mxu1 %v628_v3  ;;  %v435_v45 = vld [vmem:[%s931_s7 + $0xd8] sm:$0xff]  ;;  %v418_v48 = vld [vmem:[%s931_s7 + $0x50] sm:$0xff]  ;;  %v433_v49 = vld [vmem:[%s931_s7 + $0xc8] sm:$0xff] }
  0x11   :  { %311 = vmatprep.subr.mxu0 %v266_v25  ;;  %559 = vmatprep.subr.mxu1 %v439_v37  ;;  %v419_v46 = vld [vmem:[%s931_s7 + $0x58] sm:$0xff]  ;;  %v417_v50 = vld [vmem:[%s931_s7 + $0x48] sm:$0xff]  ;;  %v432_v51 = vld [vmem:[%s931_s7 + $0xc0] sm:$0xff] }
  0x12   :  { %312 = vmatpush1.msra.mxu0 %v265_v26  ;;  %560 = vmatpush3.msra.mxu1 %v423_v38  ;;  %v416_v52 = vld [vmem:[%s931_s7 + $0x40] sm:$0xff]  ;;  %v431_v53 = vld [vmem:[%s931_s7 + $0xb8] sm:$0xff]  ;;  %v430_v55 = vld [vmem:[%s931_s7 + $0xb0] sm:$0xff] }
  0x13   :  { %548 = vmatmul.mubr.msk.f32.gmra.mxu0 %vm56_vm0, %v46_v27  ;;  %552 = vmatmul.mubr.msk.f32.gmra.mxu1 %vm56_vm0, %v34_v28  ;;  %v415_v54 = vld [vmem:[%s931_s7 + $0x38] sm:$0xff]  ;;  %v414_v56 = vld [vmem:[%s931_s7 + $0x30] sm:$0xff]  ;;  %v429_v57 = vld [vmem:[%s931_s7 + $0xa8] sm:$0xff] }
  0x14   :  { %151 = vmatprep.mubr.f32.mxu0 %v628_v3  ;;  %252 = vmatprep.mubr.f32.mxu1 %v628_v3  ;;  %v413_v58 = vld [vmem:[%s931_s7 + $0x28] sm:$0xff]  ;;  %v428_v59 = vld [vmem:[%s931_s7 + $0xa0] sm:$0xff]  ;;  %v427_v61 = vld [vmem:[%s931_s7 + $0x98] sm:$0xff] }
  0x15   :  { %313 = vmatprep.subr.mxu0 %v264_v29  ;;  %561 = vmatprep.subr.mxu1 %v438_v39  ;;  %v412_v60 = vld [vmem:[%s931_s7 + $0x20] sm:$0xff]  ;;  %v411_v62 = vld [vmem:[%s931_s7 + $0x18] sm:$0xff]  ;;  %v426_v63 = vld [vmem:[%s931_s7 + $0x90] sm:$0xff] }
  0x16   :  { %314 = vmatpush1.msra.mxu0 %v263_v30  ;;  %562 = vmatpush3.msra.mxu1 %v422_v40  ;;  %v410_v0 = vld [vmem:[%s931_s7 + $0x10] sm:$0xff]  ;;  %v425_v1 = vld [vmem:[%s931_s7 + $0x88] sm:$0xff]  ;;  %v408_v4 = vld [vmem:[%s931_s7] sm:$0xff] }
  0x17   :  { %549 = vmatmul.mubr.msk.f32.gmra.mxu0 %vm56_vm0, %v47_v31  ;;  %553 = vmatmul.mubr.msk.f32.gmra.mxu1 %vm56_vm0, %v35_v32  ;;  %v409_v2 = vld [vmem:[%s931_s7 + $0x8] sm:$0xff]  ;;  %v380_v19 = vld [vmem:[%s932_s6] sm:$0x3] }
  0x18   :  { %347 = vmatprep.mubr.f32.mxu0 %v628_v3  ;;  %563 = vmatprep.subr.mxu1 %v437_v41  ;;  %v385_v25 = vrot.slane %v380_v19, %v384_v18  ;;  %v389_v28 = vrot.slane %v380_v19, %v388_v20 }
  0x19   :  { %564 = vmatpush3.msra.mxu1 %v421_v42 }
  0x1a   :  { %565 = vmatprep.subr.mxu1 %v436_v43 }
  0x1b   :  { %554 = vmatmul.mubr.msk.f32.vlgmr.msra.gmra.mxu0 %vm56_vm0, %v259_v33  ;;  %566 = vmatpush3.msra.mxu1 %v420_v44 }
  0x1c   :  { %353 = vmatprep.mubr.f32.mxu0 %v628_v3  ;;  %567 = vmatprep.subr.mxu1 %v435_v45 }
  0x1d   :  { %568 = vmatpush3.msra.mxu1 %v419_v46 }
  0x1e   :  { %569 = vmatprep.subr.mxu1 %v434_v47 }
  0x1f   :  { %555 = vmatmul.mubr.msk.f32.gmra.mxu0 %vm56_vm0, %v260_v34  ;;  %570 = vmatpush3.msra.mxu1 %v418_v48 }
  0x20   :  { %359 = vmatprep.mubr.f32.mxu0 %v628_v3  ;;  %571 = vmatprep.subr.mxu1 %v433_v49 }
  0x21   :  { %572 = vmatpush3.msra.mxu1 %v417_v50 }
  0x22   :  { %573 = vmatprep.subr.mxu1 %v432_v51 }
  0x23   :  { %556 = vmatmul.mubr.msk.f32.gmra.mxu0 %vm56_vm0, %v261_v35  ;;  %574 = vmatpush3.msra.mxu1 %v416_v52 }
  0x24   :  { %365 = vmatprep.mubr.f32.mxu0 %v628_v3  ;;  %575 = vmatprep.subr.mxu1 %v431_v53  ;;  %v424_v3 = vld [vmem:[%s931_s7 + $0x80] sm:$0xff] }
  0x25   :  { %576 = vmatpush3.msra.mxu1 %v415_v54 }
  0x26   :  { %577 = vmatprep.subr.mxu1 %v430_v55 }
  0x27   :  { %557 = vmatmul.mubr.msk.f32.gmra.mxu0 %vm56_vm0, %v262_v36  ;;  %578 = vmatpush3.msra.mxu1 %v414_v56 }
  0x28   :  { %579 = vmatprep.subr.mxu1 %v429_v57 }
  0x29   :  { %580 = vmatpush3.msra.mxu1 %v413_v58 }
  0x2a   :  { %581 = vmatprep.subr.mxu1 %v428_v59 }
  0x2b   :  { %582 = vmatpush3.msra.mxu1 %v412_v60 }
  0x2c   :  { %583 = vmatprep.subr.mxu1 %v427_v61 }
  0x2d   :  { %584 = vmatpush3.msra.mxu1 %v411_v62 }
  0x2e   :  { %585 = vmatprep.subr.mxu1 %v426_v63 }
  0x2f   :  { %586 = vmatpush3.msra.mxu1 %v410_v0 }
  0x30   :  { %587 = vmatprep.subr.mxu1 %v425_v1 }
  0x31   :  { %588 = vmatpush3.msra.mxu1 %v409_v2 }
  0x32   :  { %589 = vmatprep.subr.mxu1 %v424_v3 }
  0x33   :  { %590 = vmatpush3.msra.mxu1 %v408_v4 }
  0xca   :  { %v135_v5 = vpop.f32.mrf.mxu0 }
  0xcb   :  { %v236_v6 = vpop.f32.mrf.mxu1 }
  0xcc   :  { %v137_v7 = vpop.f32.mrf.mxu0  ;;  %v237_v23 = vadd.f32 %v236_v6, %v135_v5  ;;  %v558_v5 = vld [vmem:[%s933_s8] ss:$0 sm:$0xff] }
  0xcd   :  { %v238_v8 = vpop.f32.mrf.mxu1 }
  0xce   :  { %v141_v9 = vpop.f32.mrf.mxu0  ;;  %v239_v26 = vadd.f32 %v238_v8, %v137_v7 }
  0xcf   :  { %v242_v11 = vpop.f32.mrf.mxu1 }
  0xd0   :  { %v143_v12 = vpop.f32.mrf.mxu0  ;;  %v243_v31 = vadd.f32 %v242_v11, %v141_v9 }
  0xd1   :  { %v244_v15 = vpop.f32.mrf.mxu1 }
  0xd2   :  { %v245_v35 = vadd.f32 %v244_v15, %v143_v12 }
  0xd3   :  { %v147_v13 = vpop.f32.mrf.mxu0  ;;  %v248_v21 = vpop.f32.mrf.mxu1 }
  0xd4   :  { %v249_v40 = vadd.f32 %v248_v21, %v147_v13 }
  0xd5   :  { %v149_v16 = vpop.f32.mrf.mxu0  ;;  %v250_v29 = vpop.f32.mrf.mxu1 }
  0xd6   :  { %v251_v44 = vadd.f32 %v250_v29, %v149_v16 }
  0xd7   :  { %v153_v17 = vpop.f32.mrf.mxu0  ;;  %v254_v38 = vpop.f32.mrf.mxu1 }
  0xd8   :  { %v255_v49 = vadd.f32 %v254_v38, %v153_v17 }
  0xd9   :  { %v155_v22 = vpop.f32.mrf.mxu0  ;;  %v256_v47 = vpop.f32.mrf.mxu1 }
  0xda   :  { %v257_v53 = vadd.f32 %v256_v47, %v155_v22 }
  0xdb   :  { %v349_v24 = vpop.f32.mrf.mxu0 }
  0xdc   :  { %v372_v27 = vadd.f32 %v349_v24, %v237_v23 }
  0xdd   :  { %v351_v30 = vpop.f32.mrf.mxu0 }
  0xde   :  { %v373_v32 = vadd.f32 %v351_v30, %v239_v26  ;;  %v392_v33 = vadd.f32 %v385_v25, %v372_v27 }
  0xdf   :  { %v355_v34 = vpop.f32.mrf.mxu0 }
  0xe0   :  { %v393_v36 = vadd.f32 %v389_v28, %v373_v32  ;;  %v374_v37 = vadd.f32 %v355_v34, %v243_v31 }
  0xe1   :  { %v357_v39 = vpop.f32.mrf.mxu0 }
  0xe2   :  { %604 = vtanh.f32 %v393_v36  ;;  %v375_v41 = vadd.f32 %v357_v39, %v245_v35  ;;  %v394_v42 = vadd.f32 %v385_v25, %v374_v37 }
  0xe3   :  { %606 = vtanh.f32 %v392_v33  ;;  %v361_v43 = vpop.f32.mrf.mxu0 }
  0xe4   :  { %v395_v45 = vadd.f32 %v389_v28, %v375_v41  ;;  %v376_v46 = vadd.f32 %v361_v43, %v249_v40 }
  0xe5   :  { %v363_v48 = vpop.f32.mrf.mxu0 }
  0xe6   :  { %608 = vtanh.f32 %v395_v45  ;;  %v377_v50 = vadd.f32 %v363_v48, %v251_v44  ;;  %v396_v51 = vadd.f32 %v385_v25, %v376_v46 }
  0xe7   :  { %610 = vtanh.f32 %v394_v42  ;;  %v367_v52 = vpop.f32.mrf.mxu0 }
  0xe8   :  { %v397_v54 = vadd.f32 %v389_v28, %v377_v50  ;;  %v378_v55 = vadd.f32 %v367_v52, %v255_v49 }
  0xe9   :  { %v369_v56 = vpop.f32.mrf.mxu0 }
  0xea   :  { %612 = vtanh.f32 %v397_v54  ;;  %v379_v57 = vadd.f32 %v369_v56, %v257_v53  ;;  %v398_v58 = vadd.f32 %v385_v25, %v378_v55 }
  0xeb   :  { %614 = vtanh.f32 %v396_v51 }
  0xec   :  { %v399_v59 = vadd.f32 %v389_v28, %v379_v57 }
  0xee   :  { %616 = vtanh.f32 %v399_v59 }
  0xef   :  { %v605_v60 = vpop.eup %604  ;;  %618 = vtanh.f32 %v398_v58 }
  0xf0   :  { %v607_v61 = vpop.eup %606  ;;  %511 = vmatprep.mubr.f32.mxu1 %v605_v60 }
  0xf1   :  { %512 = vmatmul.mubr.f32.vlgmr.msra.gmra.mxu1 %v607_v61 }
  0xf3   :  { %v609_v62 = vpop.eup %608 }
  0xf4   :  { %v611_v63 = vpop.eup %610  ;;  %516 = vmatprep.mubr.f32.mxu1 %v609_v62 }
  0xf5   :  { %517 = vmatmul.mubr.f32.gmra.mxu1 %v611_v63 }
  0xf7   :  { %v613_v0 = vpop.eup %612 }
  0xf8   :  { %v615_v1 = vpop.eup %614  ;;  %521 = vmatprep.mubr.f32.mxu1 %v613_v0 }
  0xf9   :  { %522 = vmatmul.mubr.f32.gmra.mxu1 %v615_v1 }
  0xfb   :  { %v617_v2 = vpop.eup %616 }
  0xfc   :  { %v619_v3 = vpop.eup %618  ;;  %526 = vmatprep.mubr.f32.mxu1 %v617_v2 }
  0xfd   :  { %527 = vmatmul.mubr.f32.gmra.mxu1 %v619_v3 }
 0x1b1   :  { %v591_v4 = vpop.f32.mrf.mxu1 }
 0x1b3   :  { %v592_v6 = vpop.f32.mrf.mxu1 }
 0x1b4   :  { %v593_v7 = vadd.f32 %v592_v6, %v591_v4 }
 0x1b5   :  { %v594_v8 = vpop.f32.mrf.mxu1 }
 0x1b6   :  { %v514_v9 = vadd.f32 %v593_v7, %v558_v5 }
 0x1b7   :  { %v595_v10 = vpop.f32.mrf.mxu1 }
 0x1b8   :  { %620 = vtanh.f32 %v514_v9  ;;  %v596_v11 = vadd.f32 %v595_v10, %v594_v8 }
 0x1b9   :  { %v597_v12 = vpop.f32.mrf.mxu1 }
 0x1ba   :  { %v519_v13 = vadd.f32 %v596_v11, %v558_v5 }
 0x1bb   :  { %v598_v14 = vpop.f32.mrf.mxu1 }
 0x1bc   :  { %622 = vtanh.f32 %v519_v13  ;;  %v599_v15 = vadd.f32 %v598_v14, %v597_v12 }
 0x1bd   :  { %v600_v16 = vpop.f32.mrf.mxu1 }
 0x1be   :  { %v524_v17 = vadd.f32 %v599_v15, %v558_v5 }
 0x1bf   :  { %v601_v18 = vpop.f32.mrf.mxu1 }
 0x1c0   :  { %624 = vtanh.f32 %v524_v17  ;;  %v602_v19 = vadd.f32 %v601_v18, %v600_v16 }
 0x1c2   :  { %v529_v20 = vadd.f32 %v602_v19, %v558_v5 }
 0x1c4   :  { %626 = vtanh.f32 %v529_v20 }
 0x1c5   :  { %v621_v21 = vpop.eup %620 }
 0x1c6   :  { %537 = vst.msk [vmem:[%s934_s9] sm:$0xff] %vm536_vm1, %v621_v21 }
 0x1c9   :  { %v623_v22 = vpop.eup %622 }
 0x1ca   :  { %538 = vst.msk [vmem:[%s934_s9 + $0x8] sm:$0xff] %vm536_vm1, %v623_v22 }
 0x1cd   :  { %v625_v23 = vpop.eup %624 }
 0x1ce   :  { %539 = vst.msk [vmem:[%s934_s9 + $0x10] sm:$0xff] %vm536_vm1, %v625_v23 }
 0x1d1   :  { %v627_v24 = vpop.eup %626 }
 0x1d2   :  { %541 = vst.msk [vmem:[%s934_s9 + $0x18] sm:$0xf] %vm540_vm2, %v627_v24 }

// kernel: hvn_forward.27
= control target key start
LH: loop header
LB: loop body
LE: loop exit
PB: predicated region body
PF: predicated region fallthrough
CT: control target
= control target key end

     0   :  { %s1611_s0 = inlined_call_operand.vmem [shape: f32[2,8,16], index: 0, kind: input, shape index: {}]   ;;  %s1612_s1 = inlined_call_operand.vmem [shape: f32[2,14,16], index: 1, kind: input, shape index: {}]   ;;  %s1613_s2 = inlined_call_operand.vmem [shape: f32[16,512], index: 2, kind: input, shape index: {}]   ;;  %s1614_s3 = inlined_call_operand.vmem [shape: f32[16,512], index: 3, kind: input, shape index: {}]   ;;  %s1615_s4 = inlined_call_operand.vmem [shape: f32[1,512], index: 4, kind: input, shape index: {}]   ;;  %s1616_s5 = inlined_call_operand.vmem [shape: f32[512,1], index: 5, kind: input, shape index: {}]   ;;  %s1617_s6 = inlined_call_operand.<no memory space> [shape: f32[1,1], index: 6, kind: input, shape index: {}]   ;;  %s1618_s7 = inlined_call_operand.vmem [shape: f32[2,1,1], index: 7, kind: output, shape index: {0}]   ;;  %s1619_s8 = inlined_call_operand.hbm [shape: f32[2,1,32], index: 8, kind: output, shape index: {1}]  }
   0x1   :  { %v14_v0 = vstv %s1617_s6 }
   0x2   :  { %15 = vst [vmem:[#allocation2] sm:$0x1] %v14_v0 }
   0x3   :  { %16 = vsyncpa [#allocation4], 0 }
   0x4   :  { %18 = vsyncpa [#allocation4 + $0x1], 0  ;;  %s1254_s29 = smov 0   ;;  %s1256_s30 = smov 0  }
   0x5   :  { %s1258_s9 = smov 0   ;;  %s1260_s10 = smov 0  }
   0x6 LB: > { %s1275_s6 = sadd.s32 4294967295, %s1201_s10   ;;  %s1007_s11 = sadd.s32 4294967294, %s1201_s10   ;;  %s1201_s10 = sphi %s1260_s10, %s1625_s10   ;;  %s1197_s9 = sphi %s1258_s9, %s1624_s9   ;;  %s1193_s30 = sphi %s1256_s30, %s1623_s30   ;;  %s1189_s29 = sphi %s1254_s29, %s1622_s29  }
   0x7   : > { %s1279_s12 = sadd.s32 1, %s1201_s10   ;;  %s214_s13 = sadd.s32 1, %s1197_s9 }
   0x8   : > { %s211_s14 = ssub.s32 %s1201_s10, %s1279_s12  ;;  %p224_p0 = scmp.ne.s32.totalorder %s1197_s9, %s1193_s30 }
   0x9   : > { %p212_p1 = scmp.eq.s32.totalorder %s211_s14, 0  ;;  %p225_p2 = scmp.eq.s32.totalorder %s1275_s6, 1 }
   0xa   : > { %p230_p3 = scmp.ne.s32.totalorder %s1193_s30, %s1189_s29  ;;  %p231_p4 = scmp.eq.s32.totalorder %s1007_s11, 1 }
   0xb   : > { %s1290_s15 = scalar_select %p212_p1, %s1197_s9, %s214_s13  }
   0xc   : > { %p1292_p5 = por %p225_p2, %p224_p0  ;;  %p1296_p6 = por %p231_p4, %p230_p3 }
   0xd   : > { %p1010_p7 = scmp.ge.s32.totalorder %s1201_s10, 1  ;;  %p279_p8 = scmp.lt.s32.totalorder %s1201_s10, 3 }
   0xf   : > { %p280_p9 = pnand %p1010_p7, %p279_p8 }
  0x10   : > { %p319_p10 = scmp.lt.s32.totalorder (!%p280_p9), %s1275_s6, 1  ;;  %s1204_s13 = smov (!%p280_p9), 16  }
  0x11   : > { %283 = sbr.rel (%p280_p9) target bundleno = 463 (0x1cf), region = 48  ;;  %s317_s19 = sand.u32 (!%p280_p9), 1, %s1193_s30  }
  0x12   : > { %s318_s21 = scalar_lea.vmem (!%p280_p9), [#allocation3], %s317_s19  ;;  %s1018_s22 = sshll.u32 (!%p280_p9), %s1275_s6, 4 }
  0x13   : > { %s921_s23 = sshll.u32 (!%p280_p9), %s318_s21, 4  ;;  %s906_s27 = scalar_lea.sflag (!%p280_p9), [#allocation4], %s317_s19  ;;  %s922_s23 = int_to_ptr.vmem [resolvable:$true] %s921_s23 }
  0x14   : > { %s1141_s28 = scalar_lea.vmem (!%p280_p9), %s922_s23, 16 }
  0x15   : > { %p1142_p11 = scmp.ne.s32.totalorder (!%p280_p9), %s922_s23, %s1141_s28 }
  0x16   : > { %v365_v1 = vld [vmem:[%s1614_s3 + $0x28] sm:$0xff]  ;;  %v364_v2 = vld [vmem:[%s1614_s3 + $0x20] sm:$0xff]  ;;  %v367_v3 = vld [vmem:[%s1614_s3 + $0x38] sm:$0xff]  ;;  %s1328_s20 = scalar_select %p319_p10, %s1275_s6, 1  ;;  %v1203_v11 = vmov 0.0   ;;  %vm332_vm0 = vcmask 130048  }
  0x17   : > { %399 = vmatprep.subr.mxu0 %v365_v1  ;;  %470 = vmatprep.subr.mxu1 %v367_v3  ;;  %v361_v4 = vld [vmem:[%s1614_s3 + $0x8] sm:$0xff]  ;;  %v366_v5 = vld [vmem:[%s1614_s3 + $0x30] sm:$0xff]  ;;  %v360_v6 = vld [vmem:[%s1614_s3] sm:$0xff]  ;;  %vm343_vm1 = vcmask 128000   ;;  %vm895_vm2 = vcmask 122880   ;;  %vm900_vm3 = vcmask 254080   ;;  %p1143_p12 = pnand %p1142_p11, %p1292_p5 }
  0x18   : > { %400 = vmatpush1.msra.mxu0 %v364_v2  ;;  %471 = vmatpush1.msra.mxu1 %v366_v5  ;;  %v363_v7 = vld [vmem:[%s1614_s3 + $0x18] sm:$0xff]  ;;  %v362_v8 = vld [vmem:[%s1614_s3 + $0x10] sm:$0xff]  ;;  %v357_v9 = vld [vmem:[%s1613_s2 + $0x28] sm:$0xff]  ;;  %s1021_s25 = sshll.u32 %s1328_s20, 4  ;;  %s1011_s26 = sshll.u32 %s1328_s20, 3 }
  0x19   : > { %401 = vmatprep.subr.mxu0 %v361_v4  ;;  %472 = vmatprep.subr.mxu1 %v363_v7  ;;  %v359_v10 = vld [vmem:[%s1613_s2 + $0x38] sm:$0xff]  ;;  %s327_s11 = scalar_lea.vmem %s1612_s1, %s1021_s25  ;;  %s322_s18 = scalar_lea.vmem %s1611_s0, %s1011_s26  ;;  %v356_v30 = vld [vmem:[%s1613_s2 + $0x20] sm:$0xff]  ;;  %v358_v31 = vld [vmem:[%s1613_s2 + $0x30] sm:$0xff] }
  0x1a   : > { %402 = vmatpush1.msra.mxu0 %v360_v6  ;;  %435 = vmatprep.mubr.f32.mxu0 %v1203_v11  ;;  %v340_v12 = vld [vmem:[%s327_s11] sm:$0xff]  ;;  %v341_v13 = vld [vmem:[%s327_s11 + $0x8] sm:$0x3f]  ;;  %v355_v33 = vld [vmem:[%s1613_s2 + $0x18] sm:$0xff]  ;;  %s919_s26 = scalar_lea.hbm %s1619_s8, %s1018_s22  ;;  %p1144_p13 = pneg %p1143_p12 }
  0x1b   : > { %473 = vmatpush1.msra.mxu1 %v362_v8  ;;  %506 = vmatprep.mubr.f32.mxu1 %v1203_v11  ;;  %v331_v14 = vld [vmem:[%s322_s18] sm:$0xff]  ;;  %v342_v15 = vsel %vm332_vm0, %v340_v12, 0.0  ;;  %v344_v16 = vsel %vm343_vm1, %v341_v13, 0.0  ;;  %v353_v32 = vld [vmem:[%s1613_s2 + $0x8] sm:$0xff]  ;;  %v354_v35 = vld [vmem:[%s1613_s2 + $0x10] sm:$0xff]  ;;  %s1205_s11 = smov [#allocation3]  }
  0x1c   : > { %544 = vmatprep.subr.mxu0 %v357_v9  ;;  %615 = vmatprep.subr.mxu1 %v359_v10  ;;  %v333_v17 = vsel %vm332_vm0, %v331_v14, 0.0  ;;  %v345_v18 = vadd.f32 %v344_v16, %v342_v15  ;;  %v352_v34 = vld [vmem:[%s1613_s2] sm:$0xff]  ;;  %v719_v37 = vld [vmem:[%s1616_s5 + $0xf8] sm:$0xff]  ;;  %v718_v41 = vld [vmem:[%s1616_s5 + $0xf0] sm:$0xff] }
  0x1d   : > { %v334_v19 = vrot.slane %v333_v17, 4  ;;  %v751_v38 = vld [vmem:[%s1616_s5 + $0x1f8] sm:$0xff]  ;;  %v750_v42 = vld [vmem:[%s1616_s5 + $0x1f0] sm:$0xff]  ;;  %v717_v45 = vld [vmem:[%s1616_s5 + $0xe8] sm:$0xff] }
  0x1e   : > { %v346_v20 = vrot.slane %v345_v18, 4  ;;  %v703_v39 = vld [vmem:[%s1616_s5 + $0x78] sm:$0xff]  ;;  %v702_v43 = vld [vmem:[%s1616_s5 + $0x70] sm:$0xff]  ;;  %v749_v46 = vld [vmem:[%s1616_s5 + $0x1e8] sm:$0xff] }
  0x1f   : > { %v335_v21 = vadd.f32 %v334_v19, %v333_v17  ;;  %v735_v40 = vld [vmem:[%s1616_s5 + $0x178] sm:$0xff]  ;;  %v734_v44 = vld [vmem:[%s1616_s5 + $0x170] sm:$0xff]  ;;  %v701_v47 = vld [vmem:[%s1616_s5 + $0x68] sm:$0xff] }
  0x20   : > { %v347_v22 = vadd.f32 %v346_v20, %v345_v18  ;;  %v733_v48 = vld [vmem:[%s1616_s5 + $0x168] sm:$0xff]  ;;  %v716_v49 = vld [vmem:[%s1616_s5 + $0xe0] sm:$0xff]  ;;  %v715_v53 = vld [vmem:[%s1616_s5 + $0xd8] sm:$0xff] }
  0x21   : > { %v336_v23 = vrot.slane %v335_v21, 2  ;;  %v748_v50 = vld [vmem:[%s1616_s5 + $0x1e0] sm:$0xff]  ;;  %v747_v54 = vld [vmem:[%s1616_s5 + $0x1d8] sm:$0xff]  ;;  %v714_v57 = vld [vmem:[%s1616_s5 + $0xd0] sm:$0xff] }
  0x22   : > { %v348_v24 = vrot.slane %v347_v22, 2  ;;  %v700_v51 = vld [vmem:[%s1616_s5 + $0x60] sm:$0xff]  ;;  %v699_v55 = vld [vmem:[%s1616_s5 + $0x58] sm:$0xff]  ;;  %v746_v58 = vld [vmem:[%s1616_s5 + $0x1d0] sm:$0xff] }
  0x23   : > { %v337_v25 = vadd.f32 %v336_v23, %v335_v21  ;;  %v732_v52 = vld [vmem:[%s1616_s5 + $0x160] sm:$0xff]  ;;  %v731_v56 = vld [vmem:[%s1616_s5 + $0x158] sm:$0xff]  ;;  %v698_v59 = vld [vmem:[%s1616_s5 + $0x50] sm:$0xff] }
  0x24   : > { %v349_v26 = vadd.f32 %v348_v24, %v347_v22  ;;  %v730_v60 = vld [vmem:[%s1616_s5 + $0x150] sm:$0xff]  ;;  %v713_v61 = vld [vmem:[%s1616_s5 + $0xc8] sm:$0xff]  ;;  %v712_v1 = vld [vmem:[%s1616_s5 + $0xc0] sm:$0xff] }
  0x25   : > { %v338_v28 = vrot.slane %v337_v25, 1  ;;  %v745_v62 = vld [vmem:[%s1616_s5 + $0x1c8] sm:$0xff]  ;;  %v744_v2 = vld [vmem:[%s1616_s5 + $0x1c0] sm:$0xff]  ;;  %v711_v5 = vld [vmem:[%s1616_s5 + $0xb8] sm:$0xff] }
  0x26   : > { %v350_v27 = vrot.slane %v349_v26, 1  ;;  %v697_v63 = vld [vmem:[%s1616_s5 + $0x48] sm:$0xff]  ;;  %v696_v3 = vld [vmem:[%s1616_s5 + $0x40] sm:$0xff]  ;;  %v743_v6 = vld [vmem:[%s1616_s5 + $0x1b8] sm:$0xff] }
  0x27   : > { %v1370_v36 = vadd.f32 %v338_v28, %v337_v25  ;;  %v729_v0 = vld [vmem:[%s1616_s5 + $0x148] sm:$0xff]  ;;  %v728_v4 = vld [vmem:[%s1616_s5 + $0x140] sm:$0xff]  ;;  %v695_v7 = vld [vmem:[%s1616_s5 + $0x38] sm:$0xff] }
  0x28   : > { %v1346_v29 = vadd.f32 %v350_v27, %v349_v26  ;;  %v727_v8 = vld [vmem:[%s1616_s5 + $0x138] sm:$0xff]  ;;  %v710_v9 = vld [vmem:[%s1616_s5 + $0xb0] sm:$0xff]  ;;  %v709_v13 = vld [vmem:[%s1616_s5 + $0xa8] sm:$0xff] }
  0x29   : > { %v742_v10 = vld [vmem:[%s1616_s5 + $0x1b0] sm:$0xff]  ;;  %v741_v14 = vld [vmem:[%s1616_s5 + $0x1a8] sm:$0xff]  ;;  %v708_v17 = vld [vmem:[%s1616_s5 + $0xa0] sm:$0xff]  ;;  %896 = vst.msk [vmem:[%s318_s21] sm:$0x1] %vm895_vm2, %v1370_v36 }
  0x2a   : > { %1014 = vmatmul.mubr.msk.f32.vlgmr.msra.gmra.mxu0 %vm332_vm0, %v1346_v29  ;;  %1015 = vmatmul.mubr.msk.f32.vlgmr.msra.gmra.mxu1 %vm332_vm0, %v1346_v29  ;;  %v726_v12 = vld [vmem:[%s1616_s5 + $0x130] sm:$0xff]  ;;  %v693_v15 = vld [vmem:[%s1616_s5 + $0x28] sm:$0xff]  ;;  %v740_v18 = vld [vmem:[%s1616_s5 + $0x1a0] sm:$0xff] }
  0x2b   : > { %545 = vmatpush1.msra.mxu0 %v356_v30  ;;  %616 = vmatpush1.msra.mxu1 %v358_v31  ;;  %v725_v16 = vld [vmem:[%s1616_s5 + $0x128] sm:$0xff]  ;;  %v692_v19 = vld [vmem:[%s1616_s5 + $0x20] sm:$0xff]  ;;  %v707_v21 = vld [vmem:[%s1616_s5 + $0x98] sm:$0xff] }
  0x2c   : > { %546 = vmatprep.subr.mxu0 %v353_v32  ;;  %617 = vmatprep.subr.mxu1 %v355_v33  ;;  %v724_v20 = vld [vmem:[%s1616_s5 + $0x120] sm:$0xff]  ;;  %v739_v22 = vld [vmem:[%s1616_s5 + $0x198] sm:$0xff]  ;;  %v706_v25 = vld [vmem:[%s1616_s5 + $0x90] sm:$0xff] }
  0x2d   : > { %547 = vmatpush1.msra.mxu0 %v352_v34  ;;  %580 = vmatprep.mubr.f32.mxu0 %v1203_v11  ;;  %v691_v23 = vld [vmem:[%s1616_s5 + $0x18] sm:$0xff]  ;;  %v738_v26 = vld [vmem:[%s1616_s5 + $0x190] sm:$0xff]  ;;  %v705_v30 = vld [vmem:[%s1616_s5 + $0x88] sm:$0xff] }
  0x2e   : > { %618 = vmatpush1.msra.mxu1 %v354_v35  ;;  %651 = vmatprep.mubr.f32.mxu1 %v1203_v11  ;;  %v694_v11 = vld [vmem:[%s1616_s5 + $0x30] sm:$0xff]  ;;  %v723_v24 = vld [vmem:[%s1616_s5 + $0x118] sm:$0xff]  ;;  %v737_v31 = vld [vmem:[%s1616_s5 + $0x188] sm:$0xff] }
  0x2f   : > { %1016 = vmatmul.mubr.msk.f32.vlgmr.msra.gmra.mxu0 %vm332_vm0, %v1370_v36  ;;  %1017 = vmatmul.mubr.msk.f32.vlgmr.msra.gmra.mxu1 %vm332_vm0, %v1370_v36  ;;  %v690_v27 = vld [vmem:[%s1616_s5 + $0x10] sm:$0xff]  ;;  %v689_v32 = vld [vmem:[%s1616_s5 + $0x8] sm:$0xff]  ;;  %v704_v34 = vld [vmem:[%s1616_s5 + $0x80] sm:$0xff] }
  0x30   : > { %1022 = vmatprep.subr.mxu0 %v719_v37  ;;  %1057 = vmatprep.subr.mxu1 %v751_v38  ;;  %v722_v28 = vld [vmem:[%s1616_s5 + $0x110] sm:$0xff]  ;;  %v721_v33 = vld [vmem:[%s1616_s5 + $0x108] sm:$0xff]  ;;  %v736_v35 = vld [vmem:[%s1616_s5 + $0x180] sm:$0xff] }
  0x31   : > { %1023 = vmatpush3.msra.mxu0 %v703_v39  ;;  %1058 = vmatpush3.msra.mxu1 %v735_v40  ;;  %v688_v37 = vld [vmem:[%s1616_s5] sm:$0xff]  ;;  %v660_v39 = vlaneseq }
  0x32   : > { %1024 = vmatprep.subr.mxu0 %v718_v41  ;;  %1059 = vmatprep.subr.mxu1 %v750_v42  ;;  %v720_v38 = vld [vmem:[%s1616_s5 + $0x100] sm:$0xff] }
  0x33   : > { %1025 = vmatpush3.msra.mxu0 %v702_v43  ;;  %1060 = vmatpush3.msra.mxu1 %v734_v44  ;;  %v661_v40 = vshrl.u32 %v660_v39, 7  ;;  %v658_v44 = vld [vmem:[%s1615_s4] sm:$0xf] }
  0x34   : > { %1026 = vmatprep.subr.mxu0 %v717_v45  ;;  %1061 = vmatprep.subr.mxu1 %v749_v46 }
  0x35   : > { %1027 = vmatpush3.msra.mxu0 %v701_v47  ;;  %1062 = vmatpush3.msra.mxu1 %v733_v48  ;;  %v662_v43 = vsub.s32 0, %v661_v40  ;;  %v670_v45 = vsub.s32 2, %v661_v40  ;;  %v666_v48 = vsub.s32 1, %v661_v40 }
  0x36   : > { %1028 = vmatprep.subr.mxu0 %v716_v49  ;;  %1063 = vmatprep.subr.mxu1 %v748_v50  ;;  %v674_v49 = vsub.s32 3, %v661_v40 }
  0x37   : > { %1029 = vmatpush3.msra.mxu0 %v700_v51  ;;  %1064 = vmatpush3.msra.mxu1 %v732_v52  ;;  %v663_v50 = vrot.slane %v658_v44, %v662_v43 }
  0x38   : > { %1030 = vmatprep.subr.mxu0 %v715_v53  ;;  %1065 = vmatprep.subr.mxu1 %v747_v54  ;;  %v671_v53 = vrot.slane %v658_v44, %v670_v45 }
  0x39   : > { %1031 = vmatpush3.msra.mxu0 %v699_v55  ;;  %1066 = vmatpush3.msra.mxu1 %v731_v56  ;;  %v667_v55 = vrot.slane %v658_v44, %v666_v48  ;;  %v675_v56 = vrot.slane %v658_v44, %v674_v49 }
  0x3a   : > { %1032 = vmatprep.subr.mxu0 %v714_v57  ;;  %1067 = vmatprep.subr.mxu1 %v746_v58 }
  0x3b   : > { %1033 = vmatpush3.msra.mxu0 %v698_v59  ;;  %1068 = vmatpush3.msra.mxu1 %v730_v60 }
  0x3c   : > { %1034 = vmatprep.subr.mxu0 %v713_v61  ;;  %1069 = vmatprep.subr.mxu1 %v745_v62 }
  0x3d   : > { %1035 = vmatpush3.msra.mxu0 %v697_v63  ;;  %1070 = vmatpush3.msra.mxu1 %v729_v0 }
  0x3e   : > { %1036 = vmatprep.subr.mxu0 %v712_v1  ;;  %1071 = vmatprep.subr.mxu1 %v744_v2 }
  0x3f   : > { %1037 = vmatpush3.msra.mxu0 %v696_v3  ;;  %1072 = vmatpush3.msra.mxu1 %v728_v4 }
  0x40   : > { %1038 = vmatprep.subr.mxu0 %v711_v5  ;;  %1073 = vmatprep.subr.mxu1 %v743_v6 }
  0x41   : > { %1039 = vmatpush3.msra.mxu0 %v695_v7  ;;  %1074 = vmatpush3.msra.mxu1 %v727_v8 }
  0x42   : > { %1040 = vmatprep.subr.mxu0 %v710_v9  ;;  %1075 = vmatprep.subr.mxu1 %v742_v10 }
  0x43   : > { %1041 = vmatpush3.msra.mxu0 %v694_v11  ;;  %1076 = vmatpush3.msra.mxu1 %v726_v12 }
  0x44   : > { %1042 = vmatprep.subr.mxu0 %v709_v13  ;;  %1077 = vmatprep.subr.mxu1 %v741_v14 }
  0x45   : > { %1043 = vmatpush3.msra.mxu0 %v693_v15  ;;  %1078 = vmatpush3.msra.mxu1 %v725_v16 }
  0x46   : > { %1044 = vmatprep.subr.mxu0 %v708_v17  ;;  %1079 = vmatprep.subr.mxu1 %v740_v18 }
  0x47   : > { %1045 = vmatpush3.msra.mxu0 %v692_v19  ;;  %1080 = vmatpush3.msra.mxu1 %v724_v20 }
  0x48   : > { %1046 = vmatprep.subr.mxu0 %v707_v21  ;;  %1081 = vmatprep.subr.mxu1 %v739_v22 }
  0x49   : > { %1047 = vmatpush3.msra.mxu0 %v691_v23  ;;  %1082 = vmatpush3.msra.mxu1 %v723_v24 }
  0x4a   : > { %1048 = vmatprep.subr.mxu0 %v706_v25  ;;  %1083 = vmatprep.subr.mxu1 %v738_v26 }
  0x4b   : > { %1049 = vmatpush3.msra.mxu0 %v690_v27  ;;  %1084 = vmatpush3.msra.mxu1 %v722_v28 }
  0x4c   : > { %1050 = vmatprep.subr.mxu0 %v705_v30  ;;  %1085 = vmatprep.subr.mxu1 %v737_v31 }
  0x4d   : > { %1051 = vmatpush3.msra.mxu0 %v689_v32  ;;  %1086 = vmatpush3.msra.mxu1 %v721_v33 }
  0x4e   : > { %1052 = vmatprep.subr.mxu0 %v704_v34  ;;  %1087 = vmatprep.subr.mxu1 %v736_v35 }
  0x4f   : > { %1053 = vmatpush3.msra.mxu0 %v688_v37  ;;  %1088 = vmatpush3.msra.mxu1 %v720_v38 }
  0x50   : > { %897 = vrot.lane.b32.xlu0 %v1346_v29, %s1204_s13  ;;  %s1145_s13 = sshll.u32 %s1205_s11, 4  ;;  %s1146_s13 = int_to_ptr.vmem [resolvable:$false] %s1145_s13 }
  0x51   : > { %s1147_s14 = scalar_lea.vmem %s1146_s13, 32  ;;  %p1148_p0 = scmp.lt.s32.totalorder %s922_s23, %s1146_s13 }
  0x52   : > { %p1149_p1 = scmp.lt.s32.totalorder %s1147_s14, %s1141_s28 }
  0x54   : > { %p1150_p2 = por %p1149_p1, %p1148_p0 }
  0x56   : > { %p1151_p3 = pnand %p1150_p2, %p1144_p13 }
  0xc2   : > { %v898_v5 = vpop.permute.xlu0 %897 }
  0xc3   : > { %901 = vst.msk [vmem:[%s318_s21] sm:$0x1] %vm900_vm3, %v898_v5 }
  0xea   : > { %v437_v41 = vpop.f32.mrf.mxu0  ;;  %v508_v42 = vpop.f32.mrf.mxu1 }
  0xec   : > { %v439_v46 = vpop.f32.mrf.mxu0  ;;  %v510_v47 = vpop.f32.mrf.mxu1 }
  0xef   : > { %v582_v51 = vpop.f32.mrf.mxu0  ;;  %v653_v52 = vpop.f32.mrf.mxu1 }
  0xf0   : > { %v583_v54 = vadd.f32 %v582_v51, %v437_v41  ;;  %v654_v29 = vadd.f32 %v653_v52, %v508_v42 }
  0xf1   : > { %v584_v57 = vpop.f32.mrf.mxu0  ;;  %v655_v58 = vpop.f32.mrf.mxu1 }
  0xf2   : > { %v680_v59 = vadd.f32 %v663_v50, %v583_v54  ;;  %v585_v60 = vadd.f32 %v584_v57, %v439_v46  ;;  %v656_v61 = vadd.f32 %v655_v58, %v510_v47  ;;  %v682_v62 = vadd.f32 %v671_v53, %v654_v29 }
  0xf4   : > { %v681_v63 = vadd.f32 %v667_v55, %v585_v60  ;;  %v683_v0 = vadd.f32 %v675_v56, %v656_v61  ;;  %1133 = vtanh.f32 %v680_v59 }
  0xf6   : > { %1135 = vtanh.f32 %v681_v63 }
  0xf7   : > { %1137 = vtanh.f32 %v683_v0 }
  0xf8   : > { %1139 = vtanh.f32 %v682_v62 }
 0x101   : > { %v1134_v1 = vpop.eup %1133 }
 0x103   : > { %v1136_v2 = vpop.eup %1135 }
 0x104   : > { %v1138_v3 = vpop.eup %1137  ;;  %817 = vmatprep.mubr.f32.mxu0 %v1136_v2 }
 0x105   : > { %v1140_v4 = vpop.eup %1139  ;;  %887 = vmatprep.mubr.f32.mxu1 %v1138_v3  ;;  %818 = vmatmul.mubr.f32.vlgmr.msra.gmra.mxu0 %v1134_v1 }
 0x106   : > { %888 = vmatmul.mubr.f32.vlgmr.msra.gmra.mxu1 %v1140_v4 }
 0x107   : > { %1154 = shalt.err (!%p1151_p3)
}
 0x108   : > { %s1155_s6 = scalar_lea.hbm %s919_s26, 16  ;;  %s1159_s21 = scalar_lea.hbm %s1619_s8, 32 }
 0x109   : > { %p1156_p4 = scmp.ne.s32.totalorder %s919_s26, %s1155_s6  ;;  %p1160_p9 = scmp.lt.s32.totalorder %s919_s26, %s1619_s8 }
 0x10a   : > { %p1161_p10 = scmp.lt.s32.totalorder %s1159_s21, %s1155_s6 }
 0x10b   : > { %p1157_p7 = pnand %p1156_p4, %p1292_p5 }
 0x10c   : > { %p1162_p11 = por %p1161_p10, %p1160_p9 }
 0x10d   : > { %p1158_p8 = pneg %p1157_p7 }
 0x10f   : > { %p1163_p12 = pnand %p1162_p11, %p1158_p8 }
 0x111   : > { %1166 = shalt.err (!%p1163_p12)
}
 0x112   : > { %1092 = dma.vmem_to_hbm [thread:$0]  (%p1292_p5), %s922_s23, 16, %s919_s26, %s906_s27   ;;  %v752_v7 = vld [vmem:[#allocation2] sm:$0x1]  ;;  %vm893_vm4 = vcmask 0  }
 0x113   : > { %s330_s11 = scalar_lea.vmem %s1618_s7, %s1328_s20 }
 0x1c5   : > { %v1054_v36 = vpop.f32.mrf.mxu0 }
 0x1c6   : > { %v1089_v6 = vpop.f32.mrf.mxu1 }
 0x1c7   : > { %v1055_v8 = vpop.f32.mrf.mxu0 }
 0x1c8   : > { %v1056_v9 = vadd.f32 %v1055_v8, %v1054_v36  ;;  %v1090_v10 = vpop.f32.mrf.mxu1 }
 0x1c9   : > { %v1091_v12 = vadd.f32 %v1090_v10, %v1089_v6 }
 0x1ca   : > { %v820_v11 = vadd.f32 %v1056_v9, %v752_v7 }
 0x1cc   : > { %v890_v13 = vadd.f32 %v1091_v12, %v820_v11 }
 0x1ce   : > { %894 = vst.msk [vmem:[%s330_s11] sm:$0x1] %vm893_vm4, %v890_v13 }
 0x1cf PF: > { %p1098_p5 = scmp.ge.s32.totalorder %s1201_s10, 2  ;;  %s939_s16 = sand.u32 1, %s1189_s29  }
 0x1d0   : > { %s940_s23 = scalar_lea.sflag [#allocation4], %s939_s16 }
 0x1d1   : > { %p1095_p13 = pnand %p1098_p5, %p1296_p6 }
 0x1d3   : > { %p1096_p0 = pneg %p1095_p13 }
 0x1d5   : > { %1184 = dma.done.wait (%p1096_p0), %s940_s23, 16  }
 0x1d6   : > { %1186 = vsyncadd (%p1096_p0), %s940_s23, 4294967280  ;;  %p21_p1 = scmp.ge.s32.totalorder %s1279_s12, 4   ;;  %s1622_s29 = smov %s1193_s30 }
 0x1d7   : > { %s1623_s30 = smov %s1197_s9  ;;  %s1624_s9 = smov %s1290_s15 }
 0x1d8   : > { %s1625_s10 = smov %s1279_s12  ;;  %23 = sbr.rel (!%p21_p1) target bundleno = 6 (0x6), region = 98 }
 0x1dd   :  { %944 = vsyncpa [#allocation4], 1 }
 0x1de   :  { %946 = vsyncpa [#allocation4 + $0x1], 1 }

</bundles_post_ra>
